<compile_context>
chip_gen: v7x
topology: tpu7x:2x2x1
jax: 0.10.0
libtpu: 0.0.40
codegen_flags: <defaults>
</compile_context>

<pallas_src>
import math
import functools
from functools import lru_cache

import numpy as np
import jax
import jax.numpy as jnp
from jax.experimental import pallas as pl
from jax.experimental.pallas import tpu as pltpu

MATMUL_DTYPE = jnp.bfloat16       # MXU-native operand dtype (f32 accumulate)
BN_EPS = 1e-5
_TAPS = tuple((dy, dx) for dy in (-1, 0, 1) for dx in (-1, 0, 1))  # tap t = (dy+1)*3+(dx+1)
_VMEM_LIMIT = 48 * 1024 * 1024    # headroom under v7x's 64 MiB physical VMEM
_MEM_CHUNK = 512                  # memory-axis tile (rows of T*H*W) for the attention


# ------------------------------------------------------------------ helpers

def _pad_rows(W):
    """Row padding so every 3x3 tap window read stays in bounds and stores stay 8-aligned."""
    return ((W + 1 + 7) // 8) * 8


def _mem_chunk(thw):
    """Lane-aligned memory-axis tile (multiple of 128 dividing THW, else one full chunk)."""
    if thw % 128 != 0:
        return thw
    mc = min(_MEM_CHUNK, thw)
    while thw % mc:
        mc -= 128
    return mc


@lru_cache(maxsize=16)
def _tap_masks(n_images, H, W):
    """(9, n_images*H*W, 1) f32 validity masks: 1.0 where the 3x3 tap stays inside the
    image, 0.0 where PyTorch 'same' zero padding applies (also kills flat-row shifts that
    would cross a batch boundary).  Host-side constants -> no in-kernel iota needed."""
    n = n_images * H * W
    f = np.arange(n)
    y = (f % (H * W)) // W
    x = f % W
    m = np.zeros((9, n, 1), np.float32)
    for t, (dy, dx) in enumerate(_TAPS):
        ok = (y + dy >= 0) & (y + dy < H) & (x + dx >= 0) & (x + dx < W)
        m[t, ok, 0] = 1.0
    return jnp.asarray(m)


def _nchw_to_flat(x):                       # (B,C,H,W) -> (B*H*W, C)
    B, C, H, W = x.shape
    return jnp.transpose(x, (0, 2, 3, 1)).reshape(B * H * W, C)


def _flat_to_nchw(x, B, H, W):              # (B*H*W, C) -> (B,C,H,W)
    C = x.shape[-1]
    return jnp.transpose(x.reshape(B, H, W, C), (0, 3, 1, 2))


def _conv_params(key, cin, cout, scale=0.05):
    kw, kb = jax.random.split(key)
    w = scale * jax.random.normal(kw, (3, 3, cin, cout), jnp.float32)
    b = scale * jax.random.normal(kb, (cout,), jnp.float32)
    return w, b


def _flat_w(w):                             # (3,3,Cin,Cout) f32 -> tap-major (9*Cin, Cout) bf16
    kh, kw, cin, cout = w.shape
    return w.reshape(kh * kw * cin, cout).astype(MATMUL_DTYPE)


# ------------------------------------------------------------------ in-kernel conv

def _conv3x3(x, pad_ref, masks_ref, w_ref, b_row, *, W):
    """3x3 'same' conv of flat channels-last x:(N, Cin) f32 -> (N, Cout) f32.

    im2col-by-shifted-window: stage x once into the row-padded VMEM scratch, read the nine
    taps back as shifted window loads (no gather matmuls), mask image borders, pack the
    taps lane-aligned into a (N, 9*Cin) bf16 slab and run ONE big-K MXU matmul with the
    pre-flattened (9*Cin, Cout) weights.  Accumulation happens inside the MXU, so there is
    no 9-way f32 accumulator read-modify-write through the vreg file."""
    N, Cin = x.shape
    assert pad_ref.shape[1] == Cin and w_ref.shape[0] == 9 * Cin
    P = (pad_ref.shape[0] - N) // 2          # 8-aligned, >= W+1
    pad_ref[pl.ds(P, N), :] = x              # aligned staging store
    taps = []
    for t, (dy, dx) in enumerate(_TAPS):
        off = dy * W + dx
        tap = pad_ref[pl.ds(P + off, N), :]  # rows outside the image are masked below
        valid = masks_ref[t] > 0.5           # (N, 1) -> lane-broadcast inside the select
        taps.append(jnp.where(valid, tap, 0.0).astype(MATMUL_DTYPE))
    slab = jnp.concatenate(taps, axis=1)     # (N, 9*Cin) lane-aligned concat
    return jnp.dot(slab, w_ref[...], preferred_element_type=jnp.float32) + b_row


# ------------------------------------------------------------------ kernels

def _memorize_kernel(fea_ref, corr_ref, masks_ref,
                     w1_ref, b1_ref, gamma_ref, beta_ref, w2_ref, b2_ref,
                     wkv_ref, bkv_ref,
                     k_ref, v_ref,
                     pad_a, pad_b, *, W):
    """Fused memorize path: add + conv(128->512) + BN + ReLU + conv(512->128) +
    fused Key|Value conv (N=256).  All intermediates stay in VMEM."""
    C = fea_ref.shape[1]
    x = fea_ref[...] + corr_ref[...]                                   # f32 elementwise add
    h = _conv3x3(x, pad_a, masks_ref, w1_ref, b1_ref[...], W=W)        # (N, 512) f32
    # BatchNorm2d(512): training-mode batch statistics over all B*H*W rows.
    # TODO(synk): eval-mode running_mean/var not ported (reference defaults to train mode).
    mean = jnp.mean(h, axis=0, keepdims=True)
    var = jnp.mean(jnp.square(h - mean), axis=0, keepdims=True)
    h = (h - mean) * jax.lax.rsqrt(var + BN_EPS)
    h = jnp.maximum(h * gamma_ref[...] + beta_ref[...], 0.0)
    r4 = _conv3x3(h, pad_b, masks_ref, w2_ref, b2_ref[...], W=W)       # (N, 128) f32
    kv = _conv3x3(r4, pad_a, masks_ref, wkv_ref, bkv_ref[...], W=W)    # (N, 256) Key|Value
    k_ref[...] = kv[:, :C].astype(k_ref.dtype)
    v_ref[...] = kv[:, C:].astype(v_ref.dtype)


def _segment_kernel(frame_ref, masks_ref, wkv_ref, bkv_ref, mi_ref, mo_ref,
                    out_ref, pad_q, qk_scr, m_scr, l_scr, acc_scr, *, W):
    """Fused segment path, grid = (batch [parallel], memory-chunk [arbitrary]).

    At the first memory chunk the fused KV_Q conv (Key|Value, N=256) runs once per image:
    the query key is parked in VMEM scratch and the value half is written straight into
    the concat output.  The memory attention runs as an online softmax over (C, MC)
    chunks of the (B, C, T*H*W) memory so long memories never have to fit VMEM."""
    C = frame_ref.shape[2]
    m_idx = pl.program_id(1)

    @pl.when(m_idx == 0)
    def _():
        qkv = _conv3x3(frame_ref[0], pad_q, masks_ref, wkv_ref, bkv_ref[...], W=W)
        qk_scr[...] = qkv[:, :C].astype(qk_scr.dtype)
        out_ref[0, :, C:] = qkv[:, C:].astype(out_ref.dtype)   # q_out half of the concat
        m_scr[...] = jnp.full_like(m_scr, -jnp.inf)
        l_scr[...] = jnp.zeros_like(l_scr)
        acc_scr[...] = jnp.zeros_like(acc_scr)

    mi = mi_ref[0].astype(MATMUL_DTYPE)       # (C, MC) memory-key chunk (cast in VMEM)
    mo = mo_ref[0].astype(MATMUL_DTYPE)       # (C, MC) memory-value chunk
    # logits[q, m] = <query[q], mem_key[m]> / sqrt(C)   (mi stays (C, MC): no transpose)
    s = jnp.dot(qk_scr[...], mi, preferred_element_type=jnp.float32) * (1.0 / math.sqrt(C))
    m_new = jnp.maximum(m_scr[...], jnp.max(s, axis=1, keepdims=True))
    alpha = jnp.exp(m_scr[...] - m_new)
    p = jnp.exp(s - m_new)
    l_scr[...] = alpha * l_scr[...] + jnp.sum(p, axis=1, keepdims=True)
    # mem[q, c] = sum_m p[q, m] * mem_val[c, m]  -> lane-dense (HW, C)
    pv = jax.lax.dot_general(p.astype(MATMUL_DTYPE), mo, (((1,), (1,)), ((), ())),
                             preferred_element_type=jnp.float32)
    acc_scr[...] = alpha * acc_scr[...] + pv
    m_scr[...] = m_new

    @pl.when(m_idx == pl.num_programs(1) - 1)
    def _():
        out_ref[0, :, :C] = (acc_scr[...] *
                             pl.reciprocal(l_scr[...], approx=True)).astype(out_ref.dtype)


# ------------------------------------------------------------------ module

class LTM:
    """JAX/Pallas port of model/EMIP_long/LTM.py::LTM (forward paths only)."""

    def __init__(self, key):
        ks = jax.random.split(key, 6)
        # f32 master weights (also drive the pure-JAX reference)
        self.km_key_w, self.km_key_b = _conv_params(ks[0], 128, 128)
        self.km_val_w, self.km_val_b = _conv_params(ks[1], 128, 128)
        self.kq_key_w, self.kq_key_b = _conv_params(ks[2], 128, 128)
        self.kq_val_w, self.kq_val_b = _conv_params(ks[3], 128, 128)
        self.fu_w1, self.fu_b1 = _conv_params(ks[4], 128, 512)
        self.fu_w2, self.fu_b2 = _conv_params(ks[5], 512, 128)
        self.bn_gamma = jnp.ones((1, 512), jnp.float32)    # BatchNorm2d affine (identity init)
        self.bn_beta = jnp.zeros((1, 512), jnp.float32)
        # MXU-ready operands: tap-major (9*Cin, Cout) bf16, Key|Value fused to N=256
        self.fu_w1_f = _flat_w(self.fu_w1);  self.fu_b1_r = self.fu_b1.reshape(1, -1)
        self.fu_w2_f = _flat_w(self.fu_w2);  self.fu_b2_r = self.fu_b2.reshape(1, -1)
        self.km_kv_w = jnp.concatenate([_flat_w(self.km_key_w), _flat_w(self.km_val_w)], axis=1)
        self.km_kv_b = jnp.concatenate([self.km_key_b, self.km_val_b]).reshape(1, -1)
        self.kq_kv_w = jnp.concatenate([_flat_w(self.kq_key_w), _flat_w(self.kq_val_w)], axis=1)
        self.kq_kv_b = jnp.concatenate([self.kq_key_b, self.kq_val_b]).reshape(1, -1)
        # TODO(synk): fusion.conv1_m, NeighborConnectionDecoder, DimensionalReduction,
        # Pad_memory and Soft_aggregation are built in the reference __init__ but never
        # used by forward(); not ported.

    # ---- memorize: one fused pallas_call (add + conv + BN + ReLU + conv + fused KV) ----
    def memorize(self, fea, corr):
        in_f = fea[0]                                  # (B, C, H, W)
        B, C, H, W = in_f.shape
        n = B * H * W
        P = _pad_rows(W)
        kernel = functools.partial(_memorize_kernel, W=W)
        k_flat, v_flat = pl.pallas_call(
            kernel,
            out_shape=(jax.ShapeDtypeStruct((n, C), jnp.float32),
                       jax.ShapeDtypeStruct((n, C), jnp.float32)),
            scratch_shapes=[pltpu.VMEM((n + 2 * P, 128), jnp.float32),   # conv staging, Cin=128
                            pltpu.VMEM((n + 2 * P, 512), jnp.float32)],  # conv staging, Cin=512
            compiler_params=pltpu.CompilerParams(vmem_limit_bytes=_VMEM_LIMIT),
        )(_nchw_to_flat(in_f), _nchw_to_flat(corr), _tap_masks(B, H, W),
          self.fu_w1_f, self.fu_b1_r, self.bn_gamma, self.bn_beta,
          self.fu_w2_f, self.fu_b2_r, self.km_kv_w, self.km_kv_b)
        # TODO(synk): storing K/V as flat bf16 (B, HW, C) end-to-end would drop this NCHW
        # round trip and halve memory traffic, but changes the module's public interface.
        k4 = _flat_to_nchw(k_flat, B, H, W)[None, :, :, None, :, :]   # (1,B,C,1,H,W)
        v4 = _flat_to_nchw(v_flat, B, H, W)[None, :, :, None, :, :]
        return k4, v4

    # ---- segment: one fused pallas_call (KV_Q + tiled memory attention + concat) ----
    def segment(self, frame_ori, keys, values, num_objects):
        frame = frame_ori[0]                           # (B, C, H, W)
        B, C, H, W = frame.shape
        T = keys.shape[3]
        HW, THW = H * W, T * H * W
        P = _pad_rows(W)
        mc = _mem_chunk(THW)
        kernel = functools.partial(_segment_kernel, W=W)
        out = pl.pallas_call(
            kernel,
            grid=(B, THW // mc),
            in_specs=[
                pl.BlockSpec((1, HW, C), lambda b, m: (b, 0, 0)),        # frame (per image)
                pl.BlockSpec((9, HW, 1), lambda b, m: (0, 0, 0)),        # tap masks
                pl.BlockSpec((9 * C, 2 * C), lambda b, m: (0, 0)),       # fused K|V weights
                pl.BlockSpec((1, 2 * C), lambda b, m: (0, 0)),           # fused K|V bias
                pl.BlockSpec((1, C, mc), lambda b, m: (b, 0, m)),        # memory keys chunk
                pl.BlockSpec((1, C, mc), lambda b, m: (b, 0, m)),        # memory values chunk
            ],
            out_specs=pl.BlockSpec((1, HW, 2 * C), lambda b, m: (b, 0, 0)),
            out_shape=jax.ShapeDtypeStruct((B, HW, 2 * C), jnp.float32),
            scratch_shapes=[
                pltpu.VMEM((HW + 2 * P, C), jnp.float32),   # padded conv staging
                pltpu.VMEM((HW, C), MATMUL_DTYPE),          # query key
                pltpu.VMEM((HW, 1), jnp.float32),           # running max
                pltpu.VMEM((HW, 1), jnp.float32),           # running sum
                pltpu.VMEM((HW, C), jnp.float32),           # attention accumulator
            ],
            compiler_params=pltpu.CompilerParams(
                dimension_semantics=("parallel", "arbitrary"),
                vmem_limit_bytes=_VMEM_LIMIT),
        )(jnp.transpose(frame, (0, 2, 3, 1)).reshape(B, HW, C),
          _tap_masks(1, H, W), self.kq_kv_w, self.kq_kv_b,
          keys[0].reshape(B, C, THW),       # free reshapes: no transpose / cast round trip
          values[0].reshape(B, C, THW))
        return jnp.transpose(out.reshape(B, H, W, 2 * C), (0, 3, 1, 2))   # (B, 2C, H, W)

    def forward(self, *args, **kwargs):
        if len(args) > 3:
            return self.segment(*args, **kwargs)
        return self.memorize(*args, **kwargs)

    __call__ = forward


# ----------------------------- pure-JAX references (f32) ---------------------

def _conv3x3_ref(x_nhwc, w_hwio, b):
    y = jax.lax.conv_general_dilated(x_nhwc, w_hwio, (1, 1), 'SAME',
                                     dimension_numbers=('NHWC', 'HWIO', 'NHWC'))
    return y + b.reshape(1, 1, 1, -1)


def _memorize_ref(ltm, fea, corr):
    in_f = fea[0]
    x = jnp.transpose(in_f + corr, (0, 2, 3, 1))
    h = _conv3x3_ref(x, ltm.fu_w1, ltm.fu_b1)
    mean = jnp.mean(h, axis=(0, 1, 2), keepdims=True)
    var = jnp.mean(jnp.square(h - mean), axis=(0, 1, 2), keepdims=True)
    h = (h - mean) * jax.lax.rsqrt(var + BN_EPS)
    h = h * ltm.bn_gamma.reshape(1, 1, 1, -1) + ltm.bn_beta.reshape(1, 1, 1, -1)
    h = jnp.maximum(h, 0.0)
    r4 = _conv3x3_ref(h, ltm.fu_w2, ltm.fu_b2)
    k = jnp.transpose(_conv3x3_ref(r4, ltm.km_key_w, ltm.km_key_b), (0, 3, 1, 2))
    v = jnp.transpose(_conv3x3_ref(r4, ltm.km_val_w, ltm.km_val_b), (0, 3, 1, 2))
    return k[None, :, :, None], v[None, :, :, None]


def _segment_ref(ltm, frame_ori, keys, values, num_objects):
    frame = frame_ori[0]
    B, C, H, W = frame.shape
    T = keys.shape[3]
    x = jnp.transpose(frame, (0, 2, 3, 1))
    k = jnp.transpose(_conv3x3_ref(x, ltm.kq_key_w, ltm.kq_key_b), (0, 3, 1, 2))
    v = jnp.transpose(_conv3x3_ref(x, ltm.kq_val_w, ltm.kq_val_b), (0, 3, 1, 2))
    mi = jnp.transpose(keys[0].reshape(B, C, T * H * W), (0, 2, 1))
    qi = k.reshape(B, C, H * W)
    p = jnp.einsum('bmd,bdq->bmq', mi, qi) / math.sqrt(C)
    p = jax.nn.softmax(p, axis=1)
    mo = values[0].reshape(B, C, T * H * W)
    mem = jnp.einsum('bdm,bmq->bdq', mo, p).reshape(B, C, H, W)
    return jnp.concatenate([mem, v], axis=1)


def _check(name, got, want, tol=0.05):
    # max-normalized check (kernels use bf16 MXU operands + approx reciprocal: ~1-2%
    # expected); tightened from 0.1 so structural / tap-indexing bugs (O(1) error) and
    # gross numeric regressions both fail.
    got = np.asarray(got, np.float64)
    want = np.asarray(want, np.float64)
    err = float(np.max(np.abs(got - want)) / (np.max(np.abs(want)) + 1e-9))
    assert err < tol, f"{name}: normalized max error {err:.4f} >= {tol}"


# ----------------------------- demo / smoke test -----------------------------

if __name__ == "__main__":
    B, C, T, H, W = 2, 128, 2, 8, 8          # C=128 is fixed by the module
    root = jax.random.PRNGKey(0)
    k_params, k_frame, k_keys, k_vals, k_fea, k_corr = jax.random.split(root, 6)

    ltm = LTM(k_params)

    # --- segment path (len(args) > 3): fused KV_Q + tiled memory attention kernel ---
    frame_ori = jax.random.normal(k_frame, (1, B, C, H, W), jnp.float32)
    keys = jax.random.normal(k_keys, (1, B, C, T, H, W), jnp.float32)
    values = jax.random.normal(k_vals, (1, B, C, T, H, W), jnp.float32)
    m4 = ltm(frame_ori, keys, values, 1)
    m4 = jax.block_until_ready(m4)
    assert m4.shape == (B, 2 * C, H, W), m4.shape
    _check("segment m4", m4, _segment_ref(ltm, frame_ori, keys, values, 1))

    # --- memorize path (len(args) <= 3): fused add+conv+BN+ReLU+conv+KV kernel ---
    fea = jax.random.normal(k_fea, (1, B, C, H, W), jnp.float32)
    corr = jax.random.normal(k_corr, (B, C, H, W), jnp.float32)
    k4, v4 = ltm(fea, corr)
    jax.block_until_ready((k4, v4))
    assert k4.shape == (1, B, C, 1, H, W), k4.shape
    assert v4.shape == (1, B, C, 1, H, W), v4.shape
    k4_ref, v4_ref = _memorize_ref(ltm, fea, corr)
    _check("memorize k4", k4, k4_ref)
    _check("memorize v4", v4, v4_ref)

    print("KERNEL_OK")
</pallas_src>

<mosaic_0001>
module attributes {stable_mosaic.version = 11 : i64} {
  func.func @_segment_kernel(%arg0: i32, %arg1: i32, %arg2: memref<1x64x128xf32, #tpu.memory_space<vmem>>, %arg3: memref<9x64x1xf32, #tpu.memory_space<vmem>>, %arg4: memref<1152x256xbf16, #tpu.memory_space<vmem>>, %arg5: memref<1x256xf32, #tpu.memory_space<vmem>>, %arg6: memref<1x128x128xf32, #tpu.memory_space<vmem>>, %arg7: memref<1x128x128xf32, #tpu.memory_space<vmem>>, %arg8: memref<1x64x256xf32, #tpu.memory_space<vmem>>, %arg9: memref<96x128xf32, #tpu.memory_space<vmem>>, %arg10: memref<64x128xbf16, #tpu.memory_space<vmem>>, %arg11: memref<64x1xf32, #tpu.memory_space<vmem>>, %arg12: memref<64x1xf32, #tpu.memory_space<vmem>>, %arg13: memref<64x128xf32, #tpu.memory_space<vmem>>) attributes {dimension_semantics = [#tpu.dimension_semantics<parallel>, #tpu.dimension_semantics<arbitrary>], iteration_bounds = array<i64: 2, 1>, scalar_prefetch = 0 : i64, scratch_operands = 5 : i64, tpu.core_type = #tpu.core_type<tc>, window_params = [{transform_indices = @transform_0, window_bounds = array<i64: 1, 64, 128>}, {pipeline_mode = #tpu.pipeline_mode<synchronous>, transform_indices = @transform_1, window_bounds = array<i64: 9, 64, 1>}, {pipeline_mode = #tpu.pipeline_mode<synchronous>, transform_indices = @transform_2, window_bounds = array<i64: 1152, 256>}, {pipeline_mode = #tpu.pipeline_mode<synchronous>, transform_indices = @transform_3, window_bounds = array<i64: 1, 256>}, {transform_indices = @transform_4, window_bounds = array<i64: 1, 128, 128>}, {transform_indices = @transform_5, window_bounds = array<i64: 1, 128, 128>}, {transform_indices = @transform_6, window_bounds = array<i64: 1, 64, 256>}]} {
    %c0_i32 = arith.constant 0 : i32
    %0 = arith.cmpi eq, %arg1, %c0_i32 : i32
    %1 = arith.extui %0 : i1 to i32
    %c0_i32_0 = arith.constant 0 : i32
    %2 = arith.cmpi ne, %1, %c0_i32_0 : i32
    scf.if %2 {
      %c0_28 = arith.constant 0 : index
      %c0_29 = arith.constant 0 : index
      %c0_30 = arith.constant 0 : index
      %40 = vector.load %arg2[%c0_28, %c0_29, %c0_30] : memref<1x64x128xf32, #tpu.memory_space<vmem>>, vector<1x64x128xf32>
      %41 = vector.shape_cast %40 : vector<1x64x128xf32> to vector<64x128xf32>
      %c0_31 = arith.constant 0 : index
      %c0_32 = arith.constant 0 : index
      %42 = vector.load %arg5[%c0_31, %c0_32] : memref<1x256xf32, #tpu.memory_space<vmem>>, vector<1x256xf32>
      %c16 = arith.constant 16 : index
      %c0_33 = arith.constant 0 : index
      %43 = vector.load %arg9[%c16, %c0_33] : memref<96x128xf32, #tpu.memory_space<vmem>>, vector<64x128xf32>
      tpu.vector_store %arg9[%c16, %c0_33], %41 {strides = array<i32>} : memref<96x128xf32, #tpu.memory_space<vmem>>, vector<64x128xf32>,
      %c7 = arith.constant 7 : index
      %c0_34 = arith.constant 0 : index
      %44 = vector.load %arg9[%c7, %c0_34] : memref<96x128xf32, #tpu.memory_space<vmem>>, vector<64x128xf32>
      %c0_35 = arith.constant 0 : index
      %c0_36 = arith.constant 0 : index
      %c0_37 = arith.constant 0 : index
      %45 = vector.load %arg3[%c0_35, %c0_36, %c0_37] : memref<9x64x1xf32, #tpu.memory_space<vmem>>, vector<1x64x1xf32>
      %46 = vector.shape_cast %45 : vector<1x64x1xf32> to vector<64x1xf32>
      %cst_38 = arith.constant 5.000000e-01 : f32
      %47 = vector.broadcast %cst_38 : f32 to vector<64x1xf32>
      %48 = arith.cmpf ogt, %46, %47 : vector<64x1xf32>
      %cst_39 = arith.constant 0.000000e+00 : f32
      %49 = vector.shape_cast %48 : vector<64x1xi1> to vector<64x1xi1>
      %50 = vector.broadcast %49 : vector<64x1xi1> to vector<64x128xi1>
      %51 = vector.broadcast %cst_39 : f32 to vector<64x128xf32>
      %52 = arith.select %50, %44, %51 : vector<64x128xi1>, vector<64x128xf32>
      %53 = arith.truncf %52 : vector<64x128xf32> to vector<64x128xbf16>
      %c8 = arith.constant 8 : index
      %c0_40 = arith.constant 0 : index
      %54 = vector.load %arg9[%c8, %c0_40] : memref<96x128xf32, #tpu.memory_space<vmem>>, vector<64x128xf32>
      %c1 = arith.constant 1 : index
      %c0_41 = arith.constant 0 : index
      %c0_42 = arith.constant 0 : index
      %55 = vector.load %arg3[%c1, %c0_41, %c0_42] : memref<9x64x1xf32, #tpu.memory_space<vmem>>, vector<1x64x1xf32>
      %56 = vector.shape_cast %55 : vector<1x64x1xf32> to vector<64x1xf32>
      %cst_43 = arith.constant 5.000000e-01 : f32
      %57 = vector.broadcast %cst_43 : f32 to vector<64x1xf32>
      %58 = arith.cmpf ogt, %56, %57 : vector<64x1xf32>
      %cst_44 = arith.constant 0.000000e+00 : f32
      %59 = vector.shape_cast %58 : vector<64x1xi1> to vector<64x1xi1>
      %60 = vector.broadcast %59 : vector<64x1xi1> to vector<64x128xi1>
      %61 = vector.broadcast %cst_44 : f32 to vector<64x128xf32>
      %62 = arith.select %60, %54, %61 : vector<64x128xi1>, vector<64x128xf32>
      %63 = arith.truncf %62 : vector<64x128xf32> to vector<64x128xbf16>
      %c9 = arith.constant 9 : index
      %c0_45 = arith.constant 0 : index
      %64 = vector.load %arg9[%c9, %c0_45] : memref<96x128xf32, #tpu.memory_space<vmem>>, vector<64x128xf32>
      %c2 = arith.constant 2 : index
      %c0_46 = arith.constant 0 : index
      %c0_47 = arith.constant 0 : index
      %65 = vector.load %arg3[%c2, %c0_46, %c0_47] : memref<9x64x1xf32, #tpu.memory_space<vmem>>, vector<1x64x1xf32>
      %66 = vector.shape_cast %65 : vector<1x64x1xf32> to vector<64x1xf32>
      %cst_48 = arith.constant 5.000000e-01 : f32
      %67 = vector.broadcast %cst_48 : f32 to vector<64x1xf32>
      %68 = arith.cmpf ogt, %66, %67 : vector<64x1xf32>
      %cst_49 = arith.constant 0.000000e+00 : f32
      %69 = vector.shape_cast %68 : vector<64x1xi1> to vector<64x1xi1>
      %70 = vector.broadcast %69 : vector<64x1xi1> to vector<64x128xi1>
      %71 = vector.broadcast %cst_49 : f32 to vector<64x128xf32>
      %72 = arith.select %70, %64, %71 : vector<64x128xi1>, vector<64x128xf32>
      %73 = arith.truncf %72 : vector<64x128xf32> to vector<64x128xbf16>
      %c15 = arith.constant 15 : index
      %c0_50 = arith.constant 0 : index
      %74 = vector.load %arg9[%c15, %c0_50] : memref<96x128xf32, #tpu.memory_space<vmem>>, vector<64x128xf32>
      %c3 = arith.constant 3 : index
      %c0_51 = arith.constant 0 : index
      %c0_52 = arith.constant 0 : index
      %75 = vector.load %arg3[%c3, %c0_51, %c0_52] : memref<9x64x1xf32, #tpu.memory_space<vmem>>, vector<1x64x1xf32>
      %76 = vector.shape_cast %75 : vector<1x64x1xf32> to vector<64x1xf32>
      %cst_53 = arith.constant 5.000000e-01 : f32
      %77 = vector.broadcast %cst_53 : f32 to vector<64x1xf32>
      %78 = arith.cmpf ogt, %76, %77 : vector<64x1xf32>
      %cst_54 = arith.constant 0.000000e+00 : f32
      %79 = vector.shape_cast %78 : vector<64x1xi1> to vector<64x1xi1>
      %80 = vector.broadcast %79 : vector<64x1xi1> to vector<64x128xi1>
      %81 = vector.broadcast %cst_54 : f32 to vector<64x128xf32>
      %82 = arith.select %80, %74, %81 : vector<64x128xi1>, vector<64x128xf32>
      %83 = arith.truncf %82 : vector<64x128xf32> to vector<64x128xbf16>
      %c16_55 = arith.constant 16 : index
      %c0_56 = arith.constant 0 : index
      %84 = vector.load %arg9[%c16_55, %c0_56] : memref<96x128xf32, #tpu.memory_space<vmem>>, vector<64x128xf32>
      %c4 = arith.constant 4 : index
      %c0_57 = arith.constant 0 : index
      %c0_58 = arith.constant 0 : index
      %85 = vector.load %arg3[%c4, %c0_57, %c0_58] : memref<9x64x1xf32, #tpu.memory_space<vmem>>, vector<1x64x1xf32>
      %86 = vector.shape_cast %85 : vector<1x64x1xf32> to vector<64x1xf32>
      %cst_59 = arith.constant 5.000000e-01 : f32
      %87 = vector.broadcast %cst_59 : f32 to vector<64x1xf32>
      %88 = arith.cmpf ogt, %86, %87 : vector<64x1xf32>
      %cst_60 = arith.constant 0.000000e+00 : f32
      %89 = vector.shape_cast %88 : vector<64x1xi1> to vector<64x1xi1>
      %90 = vector.broadcast %89 : vector<64x1xi1> to vector<64x128xi1>
      %91 = vector.broadcast %cst_60 : f32 to vector<64x128xf32>
      %92 = arith.select %90, %84, %91 : vector<64x128xi1>, vector<64x128xf32>
      %93 = arith.truncf %92 : vector<64x128xf32> to vector<64x128xbf16>
      %c17 = arith.constant 17 : index
      %c0_61 = arith.constant 0 : index
      %94 = vector.load %arg9[%c17, %c0_61] : memref<96x128xf32, #tpu.memory_space<vmem>>, vector<64x128xf32>
      %c5 = arith.constant 5 : index
      %c0_62 = arith.constant 0 : index
      %c0_63 = arith.constant 0 : index
      %95 = vector.load %arg3[%c5, %c0_62, %c0_63] : memref<9x64x1xf32, #tpu.memory_space<vmem>>, vector<1x64x1xf32>
      %96 = vector.shape_cast %95 : vector<1x64x1xf32> to vector<64x1xf32>
      %cst_64 = arith.constant 5.000000e-01 : f32
      %97 = vector.broadcast %cst_64 : f32 to vector<64x1xf32>
      %98 = arith.cmpf ogt, %96, %97 : vector<64x1xf32>
      %cst_65 = arith.constant 0.000000e+00 : f32
      %99 = vector.shape_cast %98 : vector<64x1xi1> to vector<64x1xi1>
      %100 = vector.broadcast %99 : vector<64x1xi1> to vector<64x128xi1>
      %101 = vector.broadcast %cst_65 : f32 to vector<64x128xf32>
      %102 = arith.select %100, %94, %101 : vector<64x128xi1>, vector<64x128xf32>
      %103 = arith.truncf %102 : vector<64x128xf32> to vector<64x128xbf16>
      %c23 = arith.constant 23 : index
      %c0_66 = arith.constant 0 : index
      %104 = vector.load %arg9[%c23, %c0_66] : memref<96x128xf32, #tpu.memory_space<vmem>>, vector<64x128xf32>
      %c6 = arith.constant 6 : index
      %c0_67 = arith.constant 0 : index
      %c0_68 = arith.constant 0 : index
      %105 = vector.load %arg3[%c6, %c0_67, %c0_68] : memref<9x64x1xf32, #tpu.memory_space<vmem>>, vector<1x64x1xf32>
      %106 = vector.shape_cast %105 : vector<1x64x1xf32> to vector<64x1xf32>
      %cst_69 = arith.constant 5.000000e-01 : f32
      %107 = vector.broadcast %cst_69 : f32 to vector<64x1xf32>
      %108 = arith.cmpf ogt, %106, %107 : vector<64x1xf32>
      %cst_70 = arith.constant 0.000000e+00 : f32
      %109 = vector.shape_cast %108 : vector<64x1xi1> to vector<64x1xi1>
      %110 = vector.broadcast %109 : vector<64x1xi1> to vector<64x128xi1>
      %111 = vector.broadcast %cst_70 : f32 to vector<64x128xf32>
      %112 = arith.select %110, %104, %111 : vector<64x128xi1>, vector<64x128xf32>
      %113 = arith.truncf %112 : vector<64x128xf32> to vector<64x128xbf16>
      %c24 = arith.constant 24 : index
      %c0_71 = arith.constant 0 : index
      %114 = vector.load %arg9[%c24, %c0_71] : memref<96x128xf32, #tpu.memory_space<vmem>>, vector<64x128xf32>
      %c7_72 = arith.constant 7 : index
      %c0_73 = arith.constant 0 : index
      %c0_74 = arith.constant 0 : index
      %115 = vector.load %arg3[%c7_72, %c0_73, %c0_74] : memref<9x64x1xf32, #tpu.memory_space<vmem>>, vector<1x64x1xf32>
      %116 = vector.shape_cast %115 : vector<1x64x1xf32> to vector<64x1xf32>
      %cst_75 = arith.constant 5.000000e-01 : f32
      %117 = vector.broadcast %cst_75 : f32 to vector<64x1xf32>
      %118 = arith.cmpf ogt, %116, %117 : vector<64x1xf32>
      %cst_76 = arith.constant 0.000000e+00 : f32
      %119 = vector.shape_cast %118 : vector<64x1xi1> to vector<64x1xi1>
      %120 = vector.broadcast %119 : vector<64x1xi1> to vector<64x128xi1>
      %121 = vector.broadcast %cst_76 : f32 to vector<64x128xf32>
      %122 = arith.select %120, %114, %121 : vector<64x128xi1>, vector<64x128xf32>
      %123 = arith.truncf %122 : vector<64x128xf32> to vector<64x128xbf16>
      %c25 = arith.constant 25 : index
      %c0_77 = arith.constant 0 : index
      %124 = vector.load %arg9[%c25, %c0_77] : memref<96x128xf32, #tpu.memory_space<vmem>>, vector<64x128xf32>
      %c8_78 = arith.constant 8 : index
      %c0_79 = arith.constant 0 : index
      %c0_80 = arith.constant 0 : index
      %125 = vector.load %arg3[%c8_78, %c0_79, %c0_80] : memref<9x64x1xf32, #tpu.memory_space<vmem>>, vector<1x64x1xf32>
      %126 = vector.shape_cast %125 : vector<1x64x1xf32> to vector<64x1xf32>
      %cst_81 = arith.constant 5.000000e-01 : f32
      %127 = vector.broadcast %cst_81 : f32 to vector<64x1xf32>
      %128 = arith.cmpf ogt, %126, %127 : vector<64x1xf32>
      %cst_82 = arith.constant 0.000000e+00 : f32
      %129 = vector.shape_cast %128 : vector<64x1xi1> to vector<64x1xi1>
      %130 = vector.broadcast %129 : vector<64x1xi1> to vector<64x128xi1>
      %131 = vector.broadcast %cst_82 : f32 to vector<64x128xf32>
      %132 = arith.select %130, %124, %131 : vector<64x128xi1>, vector<64x128xf32>
      %133 = arith.truncf %132 : vector<64x128xf32> to vector<64x128xbf16>
      %134 = tpu.concatenate %53, %63, %73, %83, %93, %103, %113, %123, %133 in 1 : vector<64x128xbf16>, vector<64x128xbf16>, vector<64x128xbf16>, vector<64x128xbf16>, vector<64x128xbf16>, vector<64x128xbf16>, vector<64x128xbf16>, vector<64x128xbf16>, vector<64x128xbf16> -> vector<64x1152xbf16>
      %c0_83 = arith.constant 0 : index
      %c0_84 = arith.constant 0 : index
      %135 = vector.load %arg4[%c0_83, %c0_84] : memref<1152x256xbf16, #tpu.memory_space<vmem>>, vector<1152x256xbf16>
      %cst_85 = arith.constant dense<0.000000e+00> : vector<64x256xf32>
      %136 = tpu.matmul %134, %135, %cst_85 {dimension_numbers = #tpu.dot_dimension_numbers<[1], [0], [0], [1], [0, 0, 1, 1], [], []>} : vector<64x1152xbf16>, vector<1152x256xbf16>, vector<64x256xf32> -> vector<64x256xf32>
      %137 = vector.broadcast %42 : vector<1x256xf32> to vector<64x256xf32>
      %138 = arith.addf %136, %137 : vector<64x256xf32>
      %139 = vector.extract_strided_slice %138 {offsets = [0, 0], sizes = [64, 128], strides = [1, 1]} : vector<64x256xf32> to vector<64x128xf32>
      %140 = arith.truncf %139 : vector<64x128xf32> to vector<64x128xbf16>
      %c0_86 = arith.constant 0 : index
      %c0_87 = arith.constant 0 : index
      %141 = vector.load %arg10[%c0_86, %c0_87] : memref<64x128xbf16, #tpu.memory_space<vmem>>, vector<64x128xbf16>
      tpu.vector_store %arg10[%c0_86, %c0_87], %140 {strides = array<i32>} : memref<64x128xbf16, #tpu.memory_space<vmem>>, vector<64x128xbf16>,
      %142 = vector.extract_strided_slice %138 {offsets = [0, 128], sizes = [64, 128], strides = [1, 1]} : vector<64x256xf32> to vector<64x128xf32>
      %c0_88 = arith.constant 0 : index
      %c0_89 = arith.constant 0 : index
      %c128 = arith.constant 128 : index
      %143 = vector.load %arg8[%c0_88, %c0_89, %c128] : memref<1x64x256xf32, #tpu.memory_space<vmem>>, vector<1x64x128xf32>
      %144 = vector.shape_cast %143 : vector<1x64x128xf32> to vector<64x128xf32>
      %145 = vector.shape_cast %142 : vector<64x128xf32> to vector<1x64x128xf32>
      tpu.vector_store %arg8[%c0_88, %c0_89, %c128], %145 {strides = array<i32>} : memref<1x64x256xf32, #tpu.memory_space<vmem>>, vector<1x64x128xf32>,
      %cst_90 = arith.constant 0xFF800000 : f32
      %146 = vector.broadcast %cst_90 : f32 to vector<64x1xf32>
      %c0_91 = arith.constant 0 : index
      %c0_92 = arith.constant 0 : index
      %147 = vector.load %arg11[%c0_91, %c0_92] : memref<64x1xf32, #tpu.memory_space<vmem>>, vector<64x1xf32>
      tpu.vector_store %arg11[%c0_91, %c0_92], %146 {strides = array<i32>} : memref<64x1xf32, #tpu.memory_space<vmem>>, vector<64x1xf32>,
      %cst_93 = arith.constant 0.000000e+00 : f32
      %148 = vector.broadcast %cst_93 : f32 to vector<64x1xf32>
      %c0_94 = arith.constant 0 : index
      %c0_95 = arith.constant 0 : index
      %149 = vector.load %arg12[%c0_94, %c0_95] : memref<64x1xf32, #tpu.memory_space<vmem>>, vector<64x1xf32>
      tpu.vector_store %arg12[%c0_94, %c0_95], %148 {strides = array<i32>} : memref<64x1xf32, #tpu.memory_space<vmem>>, vector<64x1xf32>,
      %cst_96 = arith.constant 0.000000e+00 : f32
      %150 = vector.broadcast %cst_96 : f32 to vector<64x128xf32>
      %c0_97 = arith.constant 0 : index
      %c0_98 = arith.constant 0 : index
      %151 = vector.load %arg13[%c0_97, %c0_98] : memref<64x128xf32, #tpu.memory_space<vmem>>, vector<64x128xf32>
      tpu.vector_store %arg13[%c0_97, %c0_98], %150 {strides = array<i32>} : memref<64x128xf32, #tpu.memory_space<vmem>>, vector<64x128xf32>,
    } else {
    }
    %c0 = arith.constant 0 : index
    %c0_1 = arith.constant 0 : index
    %c0_2 = arith.constant 0 : index
    %3 = vector.load %arg6[%c0, %c0_1, %c0_2] : memref<1x128x128xf32, #tpu.memory_space<vmem>>, vector<1x128x128xf32>
    %4 = vector.shape_cast %3 : vector<1x128x128xf32> to vector<128x128xf32>
    %5 = arith.truncf %4 : vector<128x128xf32> to vector<128x128xbf16>
    %c0_3 = arith.constant 0 : index
    %c0_4 = arith.constant 0 : index
    %c0_5 = arith.constant 0 : index
    %6 = vector.load %arg7[%c0_3, %c0_4, %c0_5] : memref<1x128x128xf32, #tpu.memory_space<vmem>>, vector<1x128x128xf32>
    %7 = vector.shape_cast %6 : vector<1x128x128xf32> to vector<128x128xf32>
    %8 = arith.truncf %7 : vector<128x128xf32> to vector<128x128xbf16>
    %c0_6 = arith.constant 0 : index
    %c0_7 = arith.constant 0 : index
    %9 = vector.load %arg10[%c0_6, %c0_7] : memref<64x128xbf16, #tpu.memory_space<vmem>>, vector<64x128xbf16>
    %cst = arith.constant dense<0.000000e+00> : vector<64x128xf32>
    %10 = tpu.matmul %9, %5, %cst {dimension_numbers = #tpu.dot_dimension_numbers<[1], [0], [0], [1], [0, 0, 1, 1], [], []>} : vector<64x128xbf16>, vector<128x128xbf16>, vector<64x128xf32> -> vector<64x128xf32>
    %cst_8 = arith.constant 0.0883883461 : f32
    %11 = vector.broadcast %cst_8 : f32 to vector<64x128xf32>
    %12 = arith.mulf %10, %11 : vector<64x128xf32>
    %c0_9 = arith.constant 0 : index
    %c0_10 = arith.constant 0 : index
    %13 = vector.load %arg11[%c0_9, %c0_10] : memref<64x1xf32, #tpu.memory_space<vmem>>, vector<64x1xf32>
    %cst_11 = arith.constant dense<0xFF800000> : vector<64xf32>
    %14 = vector.multi_reduction <maximumf>, %12, %cst_11 [1] : vector<64x128xf32> to vector<64xf32>
    %15 = vector.shape_cast %14 : vector<64xf32> to vector<64x1xf32>
    %16 = arith.maximumf %13, %15 : vector<64x1xf32>
    %c0_12 = arith.constant 0 : index
    %c0_13 = arith.constant 0 : index
    %17 = vector.load %arg11[%c0_12, %c0_13] : memref<64x1xf32, #tpu.memory_space<vmem>>, vector<64x1xf32>
    %18 = arith.subf %17, %16 : vector<64x1xf32>
    %19 = math.exp %18 : vector<64x1xf32>
    %20 = vector.broadcast %16 : vector<64x1xf32> to vector<64x128xf32>
    %21 = arith.subf %12, %20 : vector<64x128xf32>
    %22 = math.exp %21 : vector<64x128xf32>
    %c0_14 = arith.constant 0 : index
    %c0_15 = arith.constant 0 : index
    %23 = vector.load %arg12[%c0_14, %c0_15] : memref<64x1xf32, #tpu.memory_space<vmem>>, vector<64x1xf32>
    %24 = arith.mulf %19, %23 : vector<64x1xf32>
    %cst_16 = arith.constant dense<0.000000e+00> : vector<64xf32>
    %25 = vector.multi_reduction <add>, %22, %cst_16 [1] : vector<64x128xf32> to vector<64xf32>
    %26 = vector.shape_cast %25 : vector<64xf32> to vector<64x1xf32>
    %27 = arith.addf %24, %26 : vector<64x1xf32>
    %c0_17 = arith.constant 0 : index
    %c0_18 = arith.constant 0 : index
    %28 = vector.load %arg12[%c0_17, %c0_18] : memref<64x1xf32, #tpu.memory_space<vmem>>, vector<64x1xf32>
    tpu.vector_store %arg12[%c0_17, %c0_18], %27 {strides = array<i32>} : memref<64x1xf32, #tpu.memory_space<vmem>>, vector<64x1xf32>,
    %29 = arith.truncf %22 : vector<64x128xf32> to vector<64x128xbf16>
    %cst_19 = arith.constant dense<0.000000e+00> : vector<64x128xf32>
    %30 = tpu.matmul %29, %8, %cst_19 {dimension_numbers = #tpu.dot_dimension_numbers<[1], [1], [0], [0], [0, 0, 1, 0], [], []>} : vector<64x128xbf16>, vector<128x128xbf16>, vector<64x128xf32> -> vector<64x128xf32>
    %c0_20 = arith.constant 0 : index
    %c0_21 = arith.constant 0 : index
    %31 = vector.load %arg13[%c0_20, %c0_21] : memref<64x128xf32, #tpu.memory_space<vmem>>, vector<64x128xf32>
    %32 = vector.broadcast %19 : vector<64x1xf32> to vector<64x128xf32>
    %33 = arith.mulf %32, %31 : vector<64x128xf32>
    %34 = arith.addf %33, %30 : vector<64x128xf32>
    %c0_22 = arith.constant 0 : index
    %c0_23 = arith.constant 0 : index
    %35 = vector.load %arg13[%c0_22, %c0_23] : memref<64x128xf32, #tpu.memory_space<vmem>>, vector<64x128xf32>
    tpu.vector_store %arg13[%c0_22, %c0_23], %34 {strides = array<i32>} : memref<64x128xf32, #tpu.memory_space<vmem>>, vector<64x128xf32>,
    %c0_24 = arith.constant 0 : index
    %c0_25 = arith.constant 0 : index
    %36 = vector.load %arg11[%c0_24, %c0_25] : memref<64x1xf32, #tpu.memory_space<vmem>>, vector<64x1xf32>
    tpu.vector_store %arg11[%c0_24, %c0_25], %16 {strides = array<i32>} : memref<64x1xf32, #tpu.memory_space<vmem>>, vector<64x1xf32>,
    %c0_i32_26 = arith.constant 0 : i32
    %37 = arith.cmpi eq, %arg1, %c0_i32_26 : i32
    %38 = arith.extui %37 : i1 to i32
    %c0_i32_27 = arith.constant 0 : i32
    %39 = arith.cmpi ne, %38, %c0_i32_27 : i32
    scf.if %39 {
      %c0_28 = arith.constant 0 : index
      %c0_29 = arith.constant 0 : index
      %40 = vector.load %arg13[%c0_28, %c0_29] : memref<64x128xf32, #tpu.memory_space<vmem>>, vector<64x128xf32>
      %c0_30 = arith.constant 0 : index
      %c0_31 = arith.constant 0 : index
      %41 = vector.load %arg12[%c0_30, %c0_31] : memref<64x1xf32, #tpu.memory_space<vmem>>, vector<64x1xf32>
      %42 = tpu.reciprocal %41 {approx = true} : vector<64x1xf32> -> vector<64x1xf32>
      %43 = vector.broadcast %42 : vector<64x1xf32> to vector<64x128xf32>
      %44 = arith.mulf %40, %43 : vector<64x128xf32>
      %c0_32 = arith.constant 0 : index
      %c0_33 = arith.constant 0 : index
      %c0_34 = arith.constant 0 : index
      %45 = vector.load %arg8[%c0_32, %c0_33, %c0_34] : memref<1x64x256xf32, #tpu.memory_space<vmem>>, vector<1x64x128xf32>
      %46 = vector.shape_cast %45 : vector<1x64x128xf32> to vector<64x128xf32>
      %47 = vector.shape_cast %44 : vector<64x128xf32> to vector<1x64x128xf32>
      tpu.vector_store %arg8[%c0_32, %c0_33, %c0_34], %47 {strides = array<i32>} : memref<1x64x256xf32, #tpu.memory_space<vmem>>, vector<1x64x128xf32>,
    } else {
    }
    return
  }
  func.func @transform_0(%arg0: i32, %arg1: i32) -> (i32, i32, i32) {
    %c0_i32 = arith.constant 0 : i32
    %c0_i32_0 = arith.constant 0 : i32
    %c0_i32_1 = arith.constant 0 : i32
    return %arg0, %c0_i32, %c0_i32_0 : i32, i32, i32
  }
  func.func @transform_1(%arg0: i32, %arg1: i32) -> (i32, i32, i32) {
    %c0_i32 = arith.constant 0 : i32
    %c0_i32_0 = arith.constant 0 : i32
    %c0_i32_1 = arith.constant 0 : i32
    %c0_i32_2 = arith.constant 0 : i32
    return %c0_i32, %c0_i32_0, %c0_i32_1 : i32, i32, i32
  }
  func.func @transform_2(%arg0: i32, %arg1: i32) -> (i32, i32) {
    %c0_i32 = arith.constant 0 : i32
    %c0_i32_0 = arith.constant 0 : i32
    %c0_i32_1 = arith.constant 0 : i32
    return %c0_i32, %c0_i32_0 : i32, i32
  }
  func.func @transform_3(%arg0: i32, %arg1: i32) -> (i32, i32) {
    %c0_i32 = arith.constant 0 : i32
    %c0_i32_0 = arith.constant 0 : i32
    %c0_i32_1 = arith.constant 0 : i32
    return %c0_i32, %c0_i32_0 : i32, i32
  }
  func.func @transform_4(%arg0: i32, %arg1: i32) -> (i32, i32, i32) {
    %c0_i32 = arith.constant 0 : i32
    %c0_i32_0 = arith.constant 0 : i32
    return %arg0, %c0_i32, %arg1 : i32, i32, i32
  }
  func.func @transform_5(%arg0: i32, %arg1: i32) -> (i32, i32, i32) {
    %c0_i32 = arith.constant 0 : i32
    %c0_i32_0 = arith.constant 0 : i32
    return %arg0, %c0_i32, %arg1 : i32, i32, i32
  }
  func.func @transform_6(%arg0: i32, %arg1: i32) -> (i32, i32, i32) {
    %c0_i32 = arith.constant 0 : i32
    %c0_i32_0 = arith.constant 0 : i32
    %c0_i32_1 = arith.constant 0 : i32
    return %arg0, %c0_i32, %c0_i32_0 : i32, i32, i32
  }
}

</mosaic_0001>

<bundles_post_ra>
// kernel: tpu_custom_call.1
= control target key start
LH: loop header
LB: loop body
LE: loop exit
PB: predicated region body
PF: predicated region fallthrough
CT: control target
= control target key end

     0   :  { %11 = vsyncpa [#allocation8], 0  ;;  %s5048_s0 = inlined_call_operand.hbm [shape: f32[2,64,128], index: 0, kind: input, shape index: {}]   ;;  %s5049_s1 = inlined_call_operand.vmem [shape: f32[9,64,1], index: 1, kind: input, shape index: {}]   ;;  %s5050_s2 = inlined_call_operand.hbm [shape: bf16[1152,256], index: 2, kind: input, shape index: {}]   ;;  %s5051_s3 = inlined_call_operand.vmem [shape: f32[1,256], index: 3, kind: input, shape index: {}]   ;;  %s5052_s4 = inlined_call_operand.vmem [shape: f32[2,128,128], index: 4, kind: input, shape index: {}]   ;;  %s5053_s5 = inlined_call_operand.vmem [shape: f32[2,128,128], index: 5, kind: input, shape index: {}]   ;;  %s5054_s6 = inlined_call_operand.hbm [shape: f32[2,64,256], index: 6, kind: output, shape index: {}]  }
   0x1   :  { %13 = vsyncpa [#allocation8 + $0x1], 0 }
   0x2   :  { %14 = vsyncpa [#allocation11], 0 }
   0x3   :  { %15 = vsyncpa [#allocation9], 0 }
   0x4   :  { %17 = vsyncpa [#allocation9 + $0x1], 0  ;;  %s4055_s21 = smov 0   ;;  %s4057_s22 = smov 0  }
   0x5   :  { %s4059_s23 = smov 0   ;;  %s4061_s24 = smov 0  }
   0x6   :  { %s4063_s25 = smov 0   ;;  %s4065_s26 = smov 0  }
   0x7 LB: > { %s3021_s27 = sadd.s32 4294967295, %s4008_s26   ;;  %s3022_s28 = sadd.s32 4294967294, %s4008_s26   ;;  %s4008_s26 = sphi %s4065_s26, %s23_s26   ;;  %s4004_s25 = sphi %s4063_s25, %s5082_s25   ;;  %s4000_s24 = sphi %s4061_s24, %s5081_s24   ;;  %s3996_s23 = sphi %s4059_s23, %s5080_s23   ;;  %s3992_s22 = sphi %s4057_s22, %s5079_s22   ;;  %s3988_s21 = sphi %s4055_s21, %s5078_s21  }
   0x8   : > { %p55_p0 = scmp.ne.s32.totalorder %s3992_s22, %s3988_s21  ;;  %p4089_p1 = scmp.eq.s32.totalorder %s3021_s27, 0 }
   0x9   : > { %p4093_p2 = scmp.eq.s32.totalorder %s3021_s27, 1  ;;  %p204_p3 = scmp.eq.s32.totalorder %s3022_s28, 1 }
   0xa   : > { %s5061_s29 = scalar_select %p4089_p1, 1, 0 }
   0xb   : > { %s5062_s30 = scalar_select %p4093_p2, 1, 0 }
   0xc   : > { %p4099_p4 = por %p4089_p1, %p55_p0  ;;  %p3023_p5 = scmp.ge.s32.totalorder %s4008_s26, 1 }
   0xd   : > { %p4104_p6 = por %p204_p3, %p55_p0  ;;  %p211_p7 = scmp.lt.s32.totalorder %s4008_s26, 3 }
   0xe   : > { %s5063_s7 = scalar_select %p4099_p4, 1, 0 }
   0xf   : > { %s5064_s8 = scalar_select %p4104_p6, 1, 0 }
  0x10   : > { %p4109_p8 = pnand %p3023_p5, %p211_p7  ;;  %s4010_s10 = smov [#allocation10]  }
  0x11   : > { %s226_s11 = sshll.u32 %s4010_s10, 4  ;;  %s35_s13 = sadd.s32 1, %s4004_s25  ;;  %s227_s11 = int_to_ptr.vmem [resolvable:$true] %s226_s11 }
  0x12   : > { %s5065_s9 = scalar_select %p4109_p8, 1, 0 }
  0x13   : > { %p3522_p9 = pneg %p4109_p8  ;;  %s3864_s16 = scalar_lea.hbm %s5050_s2, 18432 }
  0x14   : > { %p3865_p12 = scmp.ne.s32.totalorder %s5050_s2, %s3864_s16  ;;  %p3871_p5 = scmp.lt.u32.totalorder %s3864_s16, %s5050_s2 }
  0x15   : > { %p4118_p11 = pnand %p3522_p9, %p4089_p1 }
  0x17   : > { %p3866_p13 = pneg %p4118_p11 }
  0x19   : > { %p3867_p0 = pnand %p3866_p13, %p3865_p12 }
  0x1b   : > { %p3868_p3 = pneg %p3867_p0 }
  0x1d   : > { %p3873_p7 = pnand %p3871_p5, %p3868_p3 }
  0x1f   : > { %3876 = shalt.err (!%p3873_p7)
}
  0x20   : > { %s3877_s27 = scalar_lea.vmem %s227_s11, 18432  ;;  %p3885_p1 = scmp.lt.s32.totalorder %s227_s11, %s227_s11 }
  0x21   : > { %p3878_p9 = scmp.ne.s32.totalorder %s227_s11, %s3877_s27  ;;  %p3886_p4 = scmp.lt.s32.totalorder %s3877_s27, %s3877_s27 }
  0x23   : > { %p3880_p10 = pnand %p3878_p9, %p3866_p13  ;;  %p3887_p8 = por %p3886_p4, %p3885_p1 }
  0x25   : > { %p3881_p6 = pneg %p3880_p10 }
  0x27   : > { %p3888_p2 = pnand %p3887_p8, %p3881_p6 }
  0x29   : > { %3891 = shalt.err (!%p3888_p2)
}
  0x2a   : > { %s5059_s28 = smov 128   ;;  %s5060_s10 = smov 8  }
  0x2b   : > { %3525 = dma.hbm_to_vmem [thread:$0]  (!%p4118_p11), %s5050_s2, 18432, %s227_s11, [#allocation11], %s5059_s28, %s5059_s28, %s5060_s10  }
  0x2c   : > { %p37_p1 = scmp.ge.s32.totalorder %s35_s13, 2  ;;  %s42_s16 = sadd.s32 1, %s3996_s23 }
  0x2d   : > { %p49_p2 = scmp.ne.s32.totalorder %s3996_s23, %s3992_s22  ;;  %p50_p4 = scmp.eq.s32.totalorder %s4008_s26, 0 }
  0x2e   : > { %s5084_s13 = smov (%p37_p1, %s35_s13), 0  ;;  %p5068_p8 = scmp.ne.s32.totalorder %s5062_s30, 0 }
  0x2f   : > { %p4148_p6 = por %p50_p4, %p49_p2  ;;  %s39_s18 = ssub.s32 %s4004_s25, %s5084_s13 }
  0x30   : > { %p4154_p10 = por %p5068_p8, %p49_p2  ;;  %p3535_p12 = scmp.lt.s32.totalorder %s4008_s26, 2 }
  0x31   : > { %p40_p11 = scmp.eq.s32.totalorder %s39_s18, 0  ;;  %s243_s11 = sand.u32 1, %s3996_s23  }
  0x32   : > { %s3026_s19 = sshll.u32 %s243_s11, 6  ;;  %s3358_s27 = sshll.u32 %s4004_s25, 10 }
  0x33   : > { %s4163_s20 = scalar_select %p40_p11, %s3996_s23, %s42_s16  }
  0x34   : > { %s4169_s28 = scalar_lea.hbm %s5048_s0, %s3358_s27  ;;  %s247_s30 = scalar_lea.vmem [#allocation7], %s3026_s19 }
  0x35   : > { %s254_s10 = sshll.u32 %s247_s30, 4  ;;  %p4175_p13 = pnand %p3535_p12, %p4148_p6  ;;  %s4171_s10 = int_to_ptr.vmem [resolvable:$true] %s254_s10 }
  0x36   : > { %s4179_s16 = scalar_lea.sflag [#allocation8], %s243_s11  ;;  %s3892_s14 = scalar_lea.hbm %s4169_s28, 1024 }
  0x37   : > { %p3893_p0 = scmp.ne.s32.totalorder %s4169_s28, %s3892_s14  ;;  %p3894_p3 = pneg %p4175_p13 }
  0x38   : > { %s3897_s17 = scalar_lea.hbm %s5048_s0, 2048  ;;  %p3898_p9 = scmp.lt.u32.totalorder %s4169_s28, %s5048_s0 }
  0x39   : > { %p3895_p5 = pnand %p3894_p3, %p3893_p0  ;;  %p3899_p1 = scmp.lt.u32.totalorder %s3897_s17, %s3892_s14 }
  0x3a   : > { %p3901_p4 = scmp.lt.u32.totalorder %s3892_s14, %s4169_s28 }
  0x3b   : > { %p3896_p7 = pneg %p3895_p5  ;;  %p3900_p2 = por %p3899_p1, %p3898_p9 }
  0x3d   : > { %p3902_p6 = por %p3901_p4, %p3900_p2 }
  0x3f   : > { %p3903_p8 = pnand %p3902_p6, %p3896_p7 }
  0x41   : > { %3906 = shalt.err (!%p3903_p8)
}
  0x42   : > { %s3907_s11 = scalar_lea.vmem %s4171_s10, 1024  ;;  %s4013_s19 = smov [#allocation7]  }
  0x43   : > { %p3908_p12 = scmp.ne.s32.totalorder %s4171_s10, %s3907_s11  ;;  %s3912_s27 = sshll.u32 %s4013_s19, 4  ;;  %s3913_s27 = int_to_ptr.vmem [resolvable:$false] %s3912_s27 }
  0x44   : > { %s3914_s15 = scalar_lea.vmem %s3913_s27, 2048  ;;  %p3915_p5 = scmp.lt.s32.totalorder %s4171_s10, %s3913_s27 }
  0x45   : > { %p3910_p11 = pnand %p3908_p12, %p3894_p3  ;;  %p3916_p9 = scmp.lt.s32.totalorder %s3914_s15, %s3907_s11 }
  0x47   : > { %p3911_p0 = pneg %p3910_p11  ;;  %p3917_p1 = por %p3916_p9, %p3915_p5 }
  0x49   : > { %p3918_p2 = pnand %p3917_p1, %p3911_p0 }
  0x4b   : > { %3921 = shalt.err (!%p3918_p2)
}
  0x4c   : > { %s5071_s14 = smov 8   ;;  %s5072_s17 = smov 128  }
  0x4d   : > { %3529 = dma.hbm_to_vmem [thread:$0]  (!%p4175_p13), %s4169_s28, 1024, %s4171_s10, %s4179_s16, %s5072_s17, %s5072_s17, %s5071_s14  }
  0x4e   : > { %p5073_p3 = scmp.ne.s32.totalorder %s5065_s9, 0 }
  0x4f   : > { %s4213_s30 = sand.u32 (!%p5073_p3), 1, %s3992_s22   ;;  %p5074_p7 = scmp.ne.s32.totalorder (!%p5073_p3), %s5063_s7, 0 }
  0x50   : > { %288 = sbr.rel (%p5073_p3) target bundleno = 1420 (0x58c), region = 44  ;;  %s3030_s11 = sshll.u32 (!%p5073_p3), %s4213_s30, 6 }
  0x51   : > { %s291_s19 = scalar_lea.sflag (!%p5073_p3), [#allocation8], %s4213_s30  ;;  %s4217_s27 = scalar_lea.vmem (!%p5073_p3), [#allocation7], %s3030_s11 }
  0x57   : > { %3975 = dma.done.wait (%p5074_p7), %s291_s19, 1024  }
  0x58   : > { %3977 = vsyncadd (%p5074_p7), %s291_s19, 4294966272  ;;  %p5075_p13 = scmp.ne.s32.totalorder %s5061_s29, 0 }
  0x5a   : > { %3979 = dma.done.wait (%p5075_p13), [#allocation11], 18432  }
  0x5b   : > { %3981 = vsyncadd (%p5075_p13), [#allocation11], 4294948864  ;;  %v4014_v0 = vmov 0   ;;  %v3053_v1 = vld [vmem:[%s5049_s1 + $0xc0] sm:$0xff]  ;;  %v3054_v3 = vld [vmem:[%s5049_s1 + $0xc8] sm:$0xff]  ;;  %p343_p4 = scmp.lt.s32.totalorder %s4000_s24, 1 }
  0x5c   : > { %3595 = vset.pattern.permute.xlu1 %v4014_v0  ;;  %3594 = vset.pattern.permute.xlu0 %v4014_v0  ;;  %v3045_v2 = vld [vmem:[%s5049_s1 + $0x80] sm:$0xff]  ;;  %vm628_vm0 = vcmp.gt.f32.partialorder %v3053_v1, 0.5  ;;  %vm629_vm2 = vcmp.gt.f32.partialorder %v3054_v3, 0.5  ;;  %v3046_v4 = vld [vmem:[%s5049_s1 + $0x88] sm:$0xff]  ;;  %v3055_v7 = vld [vmem:[%s5049_s1 + $0xd0] sm:$0xff]  ;;  %s3032_s10 = sshll.u32 %s4213_s30, 7 }
  0x5d   : > { %vm551_vm1 = vcmp.gt.f32.partialorder %v3045_v2, 0.5  ;;  %v636_v5 = vsel %vm628_vm0, 1, %v4014_v0  ;;  %vm552_vm3 = vcmp.gt.f32.partialorder %v3046_v4, 0.5  ;;  %v3056_v8 = vld [vmem:[%s5049_s1 + $0xd8] sm:$0xff]  ;;  %v637_v9 = vsel %vm629_vm2, 1, %v4014_v0  ;;  %v3047_v11 = vld [vmem:[%s5049_s1 + $0x90] sm:$0xff] }
  0x5e   : > { %v559_v6 = vsel %vm551_vm1, 1, %v4014_v0  ;;  %645 = vperm.xlu0 %3594, %v636_v5   ;;  %v560_v10 = vsel %vm552_vm3, 1, %v4014_v0  ;;  %vm630_vm4 = vcmp.gt.f32.partialorder %v3055_v7, 0.5  ;;  %vm631_vm5 = vcmp.gt.f32.partialorder %v3056_v8, 0.5  ;;  %v3048_v12 = vld [vmem:[%s5049_s1 + $0x98] sm:$0xff]  ;;  %v3057_v15 = vld [vmem:[%s5049_s1 + $0xe0] sm:$0xff] }
  0x5f   : > { %568 = vperm.xlu1 %3595, %v559_v6   ;;  %v638_v13 = vsel %vm630_vm4, 1, %v4014_v0  ;;  %v639_v14 = vsel %vm631_vm5, 1, %v4014_v0  ;;  %vm553_vm6 = vcmp.gt.f32.partialorder %v3047_v11, 0.5  ;;  %vm554_vm7 = vcmp.gt.f32.partialorder %v3048_v12, 0.5  ;;  %v3058_v16 = vld [vmem:[%s5049_s1 + $0xe8] sm:$0xff]  ;;  %v3049_v19 = vld [vmem:[%s5049_s1 + $0xa0] sm:$0xff] }
  0x60   : > { %v561_v17 = vsel %vm553_vm6, 1, %v4014_v0  ;;  %v562_v18 = vsel %vm554_vm7, 1, %v4014_v0  ;;  %vm632_vm8 = vcmp.gt.f32.partialorder %v3057_v15, 0.5  ;;  %vm633_vm9 = vcmp.gt.f32.partialorder %v3058_v16, 0.5  ;;  %v3050_v20 = vld [vmem:[%s5049_s1 + $0xa8] sm:$0xff]  ;;  %v3059_v23 = vld [vmem:[%s5049_s1 + $0xf0] sm:$0xff] }
  0x61   : > { %v640_v21 = vsel %vm632_vm8, 1, %v4014_v0  ;;  %v641_v22 = vsel %vm633_vm9, 1, %v4014_v0  ;;  %vm555_vm10 = vcmp.gt.f32.partialorder %v3049_v19, 0.5  ;;  %vm556_vm11 = vcmp.gt.f32.partialorder %v3050_v20, 0.5  ;;  %v3060_v24 = vld [vmem:[%s5049_s1 + $0xf8] sm:$0xff]  ;;  %v3051_v30 = vld [vmem:[%s5049_s1 + $0xb0] sm:$0xff] }
  0x62   : > { %648 = vperm.xlu0 %3594, %v637_v9   ;;  %v3596_v25 = vld [vmem:[#allocation10 + $0x104] ss:$8 sps:$4 sm:$0xff]   ;;  %v3598_v26 = vld [vmem:[#allocation10 + $0x100] ss:$8 sps:$4 sm:$0xff]   ;;  %v563_v27 = vsel %vm555_vm10, 1, %v4014_v0  ;;  %v564_v28 = vsel %vm556_vm11, 1, %v4014_v0 }
  0x63   : > { %571 = vperm.xlu1 %3595, %v560_v10   ;;  %2021 = vmatprep.subr.bf16.mxu0 %v3596_v25  ;;  %v3599_v29 = vld [vmem:[#allocation10 + $0x114] ss:$8 sps:$4 sm:$0xff]   ;;  %vm634_vm12 = vcmp.gt.f32.partialorder %v3059_v23, 0.5  ;;  %vm635_vm13 = vcmp.gt.f32.partialorder %v3060_v24, 0.5  ;;  %v3601_v32 = vld [vmem:[#allocation10 + $0x110] ss:$8 sps:$4 sm:$0xff]  }
  0x64   : > { %v3052_v31 = vld [vmem:[%s5049_s1 + $0xb8] sm:$0xff]  ;;  %2022 = vmatpush1.bf16.msra.mxu0 %v3598_v26  ;;  %v3602_v33 = vld [vmem:[#allocation10 + $0x124] ss:$8 sps:$4 sm:$0xff]   ;;  %v642_v34 = vsel %vm634_vm12, 1, %v4014_v0  ;;  %v643_v35 = vsel %vm635_vm13, 1, %v4014_v0  ;;  %vm557_vm14 = vcmp.gt.f32.partialorder %v3051_v30, 0.5 }
  0x65   : > { %2023 = vmatprep.subr.bf16.mxu0 %v3599_v29  ;;  %vm558_vm15 = vcmp.gt.f32.partialorder %v3052_v31, 0.5  ;;  %v3069_v36 = vld [vmem:[%s5049_s1 + $0x140] sm:$0xff]  ;;  %v3070_v37 = vld [vmem:[%s5049_s1 + $0x148] sm:$0xff]  ;;  %v3605_v39 = vld [vmem:[#allocation10 + $0x134] ss:$8 sps:$4 sm:$0xff]   ;;  %v565_v40 = vsel %vm557_vm14, 1, %v4014_v0 }
  0x66   : > { %651 = vperm.xlu0 %3594, %v638_v13   ;;  %v3604_v38 = vld [vmem:[#allocation10 + $0x120] ss:$8 sps:$4 sm:$0xff]   ;;  %v566_v41 = vsel %vm558_vm15, 1, %v4014_v0  ;;  %vm782_vm0 = vcmp.gt.f32.partialorder %v3069_v36, 0.5  ;;  %vm783_vm1 = vcmp.gt.f32.partialorder %v3070_v37, 0.5  ;;  %v3072_v61 = vld [vmem:[%s5049_s1 + $0x158] sm:$0xff] }
  0x67   : > { %654 = vperm.xlu1 %3595, %v639_v14   ;;  %v3061_v42 = vld [vmem:[%s5049_s1 + $0x100] sm:$0xff]  ;;  %v3062_v43 = vld [vmem:[%s5049_s1 + $0x108] sm:$0xff]  ;;  %v3607_v44 = vld [vmem:[#allocation10 + $0x130] ss:$8 sps:$4 sm:$0xff]   ;;  %v790_v46 = vsel %vm782_vm0, 1, %v4014_v0  ;;  %v791_v47 = vsel %vm783_vm1, 1, %v4014_v0 }
  0x68   : > { %2024 = vmatpush1.bf16.msra.mxu0 %v3601_v32  ;;  %v3608_v45 = vld [vmem:[#allocation10 + $0x144] ss:$8 sps:$4 sm:$0xff]   ;;  %vm705_vm2 = vcmp.gt.f32.partialorder %v3061_v42, 0.5  ;;  %vm706_vm3 = vcmp.gt.f32.partialorder %v3062_v43, 0.5  ;;  %v3610_v50 = vld [vmem:[#allocation10 + $0x140] ss:$8 sps:$4 sm:$0xff]  }
  0x69   : > { %2025 = vmatprep.subr.bf16.mxu0 %v3602_v33  ;;  %v3038_v48 = vld [vmem:[%s5049_s1 + $0x48] sm:$0xff]  ;;  %v3037_v49 = vld [vmem:[%s5049_s1 + $0x40] sm:$0xff]  ;;  %v3611_v51 = vld [vmem:[#allocation10 + $0x154] ss:$8 sps:$4 sm:$0xff]   ;;  %v713_v52 = vsel %vm705_vm2, 1, %v4014_v0  ;;  %v714_v53 = vsel %vm706_vm3, 1, %v4014_v0 }
  0x6a   : > { %574 = vperm.xlu0 %3594, %v561_v17   ;;  %v390_v54 = vld [vmem:[%s5049_s1 + $0x8] sm:$0xff]  ;;  %v389_v55 = vld [vmem:[%s5049_s1] sm:$0xff]  ;;  %vm475_vm4 = vcmp.gt.f32.partialorder %v3038_v48, 0.5  ;;  %vm474_vm5 = vcmp.gt.f32.partialorder %v3037_v49, 0.5  ;;  %v3613_v56 = vld [vmem:[#allocation10 + $0x150] ss:$8 sps:$4 sm:$0xff]  }
  0x6b   : > { %577 = vperm.xlu1 %3595, %v562_v18   ;;  %v3614_v57 = vld [vmem:[#allocation10 + $0x164] ss:$8 sps:$4 sm:$0xff]   ;;  %v483_v59 = vsel %vm475_vm4, 1, %v4014_v0  ;;  %v482_v60 = vsel %vm474_vm5, 1, %v4014_v0  ;;  %v3071_v62 = vld [vmem:[%s5049_s1 + $0x150] sm:$0xff]  ;;  %vm398_vm6 = vcmp.gt.f32.partialorder %v390_v54, 0.5 }
  0x6c   : > { %2026 = vmatpush1.bf16.msra.mxu0 %v3604_v38  ;;  %v3626_v58 = vld [vmem:[#allocation10 + $0x4] ss:$8 sps:$4 sm:$0xff]   ;;  %v3616_v63 = vld [vmem:[#allocation10 + $0x160] ss:$8 sps:$4 sm:$0xff]   ;;  %vm397_vm7 = vcmp.gt.f32.partialorder %v389_v55, 0.5  ;;  %v406_v5 = vsel %vm398_vm6, 1, %v4014_v0 }
  0x6d   : > { %2027 = vmatprep.subr.bf16.mxu0 %v3605_v39  ;;  %1948 = vmatprep.subr.bf16.mxu1 %v3626_v58  ;;  %v3630_v1 = vld [vmem:[#allocation10] ss:$8 sps:$4 sm:$0xff]   ;;  %v3617_v2 = vld [vmem:[#allocation10 + $0x174] ss:$8 sps:$4 sm:$0xff]   ;;  %v3636_v4 = vld [vmem:[#allocation10 + $0x10] ss:$8 sps:$4 sm:$0xff]  }
  0x6e   : > { %657 = vperm.xlu0 %3594, %v640_v21   ;;  %1949 = vmatpush1.bf16.msra.mxu1 %v3630_v1  ;;  %v3632_v3 = vld [vmem:[#allocation10 + $0x14] ss:$8 sps:$4 sm:$0xff]   ;;  %v405_v6 = vsel %vm397_vm7, 1, %v4014_v0  ;;  %v3619_v9 = vld [vmem:[#allocation10 + $0x170] ss:$8 sps:$4 sm:$0xff]   ;;  %vm785_vm8 = vcmp.gt.f32.partialorder %v3072_v61, 0.5 }
  0x6f   : > { %660 = vperm.xlu1 %3595, %v641_v22   ;;  %v3064_v7 = vld [vmem:[%s5049_s1 + $0x118] sm:$0xff]  ;;  %v3063_v8 = vld [vmem:[%s5049_s1 + $0x110] sm:$0xff]  ;;  %1950 = vmatprep.subr.bf16.mxu1 %v3632_v3  ;;  %vm784_vm9 = vcmp.gt.f32.partialorder %v3071_v62, 0.5  ;;  %v3638_v10 = vld [vmem:[#allocation10 + $0x24] ss:$8 sps:$4 sm:$0xff]   ;;  %v793_v13 = vsel %vm785_vm8, 1, %v4014_v0 }
  0x70   : > { %2028 = vmatpush1.bf16.msra.mxu0 %v3607_v44  ;;  %v3620_v11 = vld [vmem:[#allocation10 + $0x184] ss:$8 sps:$4 sm:$0xff]   ;;  %v3642_v12 = vld [vmem:[#allocation10 + $0x20] ss:$8 sps:$4 sm:$0xff]   ;;  %v792_v14 = vsel %vm784_vm9, 1, %v4014_v0  ;;  %v3040_v15 = vld [vmem:[%s5049_s1 + $0x58] sm:$0xff] }
  0x71   : > { %2029 = vmatprep.subr.bf16.mxu0 %v3608_v45  ;;  %v3644_v16 = vld [vmem:[#allocation10 + $0x34] ss:$8 sps:$4 sm:$0xff]   ;;  %vm708_vm10 = vcmp.gt.f32.partialorder %v3064_v7, 0.5  ;;  %vm707_vm11 = vcmp.gt.f32.partialorder %v3063_v8, 0.5  ;;  %v3622_v17 = vld [vmem:[#allocation10 + $0x180] ss:$8 sps:$4 sm:$0xff]  }
  0x72   : > { %580 = vperm.xlu0 %3594, %v563_v27   ;;  %1951 = vmatpush1.bf16.msra.mxu1 %v3636_v4  ;;  %v3039_v18 = vld [vmem:[%s5049_s1 + $0x50] sm:$0xff]  ;;  %v392_v21 = vld [vmem:[%s5049_s1 + $0x18] sm:$0xff]  ;;  %v716_v22 = vsel %vm708_vm10, 1, %v4014_v0  ;;  %v715_v23 = vsel %vm707_vm11, 1, %v4014_v0  ;;  %v3650_v24 = vld [vmem:[#allocation10 + $0x44] ss:$8 sps:$4 sm:$0xff]  }
  0x73   : > { %583 = vperm.xlu1 %3595, %v564_v28   ;;  %1952 = vmatprep.subr.bf16.mxu1 %v3638_v10  ;;  %v3623_v19 = vld [vmem:[#allocation10 + $0x194] ss:$8 sps:$4 sm:$0xff]   ;;  %v3648_v20 = vld [vmem:[#allocation10 + $0x30] ss:$8 sps:$4 sm:$0xff]   ;;  %vm477_vm12 = vcmp.gt.f32.partialorder %v3040_v15, 0.5  ;;  %vm476_vm13 = vcmp.gt.f32.partialorder %v3039_v18, 0.5 }
  0x74   : > { %2030 = vmatpush1.bf16.msra.mxu0 %v3610_v50  ;;  %v391_v25 = vld [vmem:[%s5049_s1 + $0x10] sm:$0xff]  ;;  %v3628_v27 = vld [vmem:[#allocation10 + $0x1a4] ss:$8 sps:$4 sm:$0xff]   ;;  %v3654_v28 = vld [vmem:[#allocation10 + $0x40] ss:$8 sps:$4 sm:$0xff]   ;;  %vm400_vm14 = vcmp.gt.f32.partialorder %v392_v21, 0.5 }
  0x75   : > { %2031 = vmatprep.subr.bf16.mxu0 %v3611_v51  ;;  %v3625_v26 = vld [vmem:[#allocation10 + $0x190] ss:$8 sps:$4 sm:$0xff]   ;;  %v485_v29 = vsel %vm477_vm12, 1, %v4014_v0  ;;  %v484_v30 = vsel %vm476_vm13, 1, %v4014_v0  ;;  %v3074_v31 = vld [vmem:[%s5049_s1 + $0x168] sm:$0xff]  ;;  %vm399_vm15 = vcmp.gt.f32.partialorder %v391_v25, 0.5 }
  0x76   : > { %663 = vperm.xlu0 %3594, %v642_v34   ;;  %1953 = vmatpush1.bf16.msra.mxu1 %v3642_v12  ;;  %v3656_v32 = vld [vmem:[#allocation10 + $0x54] ss:$8 sps:$4 sm:$0xff]   ;;  %v3073_v33 = vld [vmem:[%s5049_s1 + $0x160] sm:$0xff]  ;;  %v3066_v36 = vld [vmem:[%s5049_s1 + $0x128] sm:$0xff]  ;;  %vm787_vm0 = vcmp.gt.f32.partialorder %v3074_v31, 0.5  ;;  %s4770_s18 = scalar_lea.vmem [#allocation12], %s3032_s10 }
  0x77   : > { %666 = vperm.xlu1 %3595, %v643_v35   ;;  %1954 = vmatprep.subr.bf16.mxu1 %v3644_v16  ;;  %v3631_v34 = vld [vmem:[#allocation10 + $0x1a0] ss:$8 sps:$4 sm:$0xff]   ;;  %v3634_v35 = vld [vmem:[#allocation10 + $0x1b4] ss:$8 sps:$4 sm:$0xff]   ;;  %v3660_v37 = vld [vmem:[#allocation10 + $0x50] ss:$8 sps:$4 sm:$0xff]  }
  0x78   : > { %2032 = vmatpush1.bf16.msra.mxu0 %v3613_v56  ;;  %v4365_v38 = vld [vmem:[%s4217_s27] sm:$0xff]  ;;  %v4368_v39 = vld [vmem:[%s4217_s27 + $0x8] sm:$0xff]  ;;  %vm786_vm1 = vcmp.gt.f32.partialorder %v3073_v33, 0.5  ;;  %v3637_v44 = vld [vmem:[#allocation10 + $0x1b0] ss:$8 sps:$4 sm:$0xff]   ;;  %vm710_vm2 = vcmp.gt.f32.partialorder %v3066_v36, 0.5 }
  0x79   : > { %2033 = vmatprep.subr.bf16.mxu0 %v3614_v57  ;;  %v3065_v42 = vld [vmem:[%s5049_s1 + $0x120] sm:$0xff]  ;;  %373 = vst [vmem:[#allocation2 + $0x10] sm:$0xff] %v4365_v38  ;;  %374 = vst [vmem:[#allocation2 + $0x18] sm:$0xff] %v4368_v39  ;;  %v4382_v48 = vld [vmem:[%s4217_s27 + $0x18] sm:$0xff]  ;;  %v795_v49 = vsel %vm787_vm0, 1, %v4014_v0  ;;  %v794_v50 = vsel %vm786_vm1, 1, %v4014_v0  ;;  %v3297_v10 = vpack.c.bf16 %v4368_v39, %v4365_v38 }
  0x7a   : > { %586 = vperm.xlu0 %3594, %v565_v40   ;;  %1955 = vmatpush1.bf16.msra.mxu1 %v3648_v20  ;;  %v408_v40 = vsel %vm400_vm14, 1, %v4014_v0  ;;  %v3662_v43 = vld [vmem:[#allocation10 + $0x64] ss:$8 sps:$4 sm:$0xff]   ;;  %376 = vst [vmem:[#allocation2 + $0x28] sm:$0xff] %v4382_v48  ;;  %vm709_vm3 = vcmp.gt.f32.partialorder %v3065_v42, 0.5  ;;  %v718_v58 = vsel %vm710_vm2, 1, %v4014_v0 }
  0x7b   : > { %589 = vperm.xlu1 %3595, %v566_v41   ;;  %1956 = vmatprep.subr.bf16.mxu1 %v3650_v24  ;;  %v407_v41 = vsel %vm399_vm15, 1, %v4014_v0  ;;  %v3640_v45 = vld [vmem:[#allocation10 + $0x1c4] ss:$8 sps:$4 sm:$0xff]   ;;  %v3643_v55 = vld [vmem:[#allocation10 + $0x1c0] ss:$8 sps:$4 sm:$0xff]   ;;  %v3068_v16 = vld [vmem:[%s5049_s1 + $0x138] sm:$0xff] }
  0x7c   : > { %2034 = vmatpush1.bf16.msra.mxu0 %v3616_v63  ;;  %v3042_v51 = vld [vmem:[%s5049_s1 + $0x68] sm:$0xff]  ;;  %v3041_v54 = vld [vmem:[%s5049_s1 + $0x60] sm:$0xff]  ;;  %v3646_v56 = vld [vmem:[#allocation10 + $0x1d4] ss:$8 sps:$4 sm:$0xff]   ;;  %vm712_vm10 = vcmp.gt.f32.partialorder %v3068_v16, 0.5  ;;  %s3361_s15 = sshll.u32 %s4000_s24, 11 }
  0x7d   : > { %2035 = vmatprep.subr.bf16.mxu0 %v3617_v2  ;;  %v3673_v57 = vld [vmem:[#allocation10 + $0x70] ss:$8 sps:$4 sm:$0xff]   ;;  %vm479_vm4 = vcmp.gt.f32.partialorder %v3042_v51, 0.5  ;;  %v3674_v61 = vld [vmem:[#allocation10 + $0x84] ss:$8 sps:$4 sm:$0xff]   ;;  %vm478_vm5 = vcmp.gt.f32.partialorder %v3041_v54, 0.5  ;;  %s4996_s11 = scalar_lea.hbm %s5054_s6, %s3361_s15 }
  0x7e   : > { %799 = vperm.xlu0 %3594, %v790_v46   ;;  %1957 = vmatpush1.bf16.msra.mxu1 %v3654_v28  ;;  %v3667_v46 = vld [vmem:[#allocation10 + $0x60] ss:$8 sps:$4 sm:$0xff]   ;;  %v3649_v63 = vld [vmem:[#allocation10 + $0x1d0] ss:$8 sps:$4 sm:$0xff]   ;;  %v3652_v1 = vld [vmem:[#allocation10 + $0x1e4] ss:$8 sps:$4 sm:$0xff]  }
  0x7f   : > { %802 = vperm.xlu1 %3595, %v791_v47   ;;  %1958 = vmatprep.subr.bf16.mxu1 %v3656_v32  ;;  %v4379_v47 = vld [vmem:[%s4217_s27 + $0x10] sm:$0xff]  ;;  %v393_v62 = vld [vmem:[%s5049_s1 + $0x20] sm:$0xff]  ;;  %v487_v3 = vsel %vm479_vm4, 1, %v4014_v0  ;;  %v486_v4 = vsel %vm478_vm5, 1, %v4014_v0  ;;  %v371_v24 = vld [vmem:[%s4217_s27 + $0x38] sm:$0xff]  ;;  %v720_v32 = vsel %vm712_vm10, 1, %v4014_v0 }
  0x80   : > { %2036 = vmatpush1.bf16.msra.mxu0 %v3619_v9  ;;  %375 = vst [vmem:[#allocation2 + $0x20] sm:$0xff] %v4379_v47  ;;  %v3679_v2 = vld [vmem:[#allocation10 + $0x80] ss:$8 sps:$4 sm:$0xff]   ;;  %v3680_v7 = vld [vmem:[#allocation10 + $0x94] ss:$8 sps:$4 sm:$0xff]   ;;  %vm401_vm7 = vcmp.gt.f32.partialorder %v393_v62, 0.5 }
  0x81   : > { %2037 = vmatprep.subr.bf16.mxu0 %v3620_v11  ;;  %v4416_v8 = vld [vmem:[%s4217_s27 + $0x20] sm:$0xff]  ;;  %v4419_v9 = vld [vmem:[%s4217_s27 + $0x28] sm:$0xff]  ;;  %v3658_v12 = vld [vmem:[#allocation10 + $0x1f4] ss:$8 sps:$4 sm:$0xff]   ;;  %v409_v15 = vsel %vm401_vm7, 1, %v4014_v0  ;;  %380 = vst [vmem:[#allocation2 + $0x48] sm:$0xff] %v371_v24 }
  0x82   : > { %722 = vperm.xlu0 %3594, %v713_v52   ;;  %1959 = vmatpush1.bf16.msra.mxu1 %v3660_v37  ;;  %v3668_v52 = vld [vmem:[#allocation10 + $0x74] ss:$8 sps:$4 sm:$0xff]   ;;  %v3655_v11 = vld [vmem:[#allocation10 + $0x1e0] ss:$8 sps:$4 sm:$0xff]   ;;  %377 = vst [vmem:[#allocation2 + $0x30] sm:$0xff] %v4416_v8  ;;  %378 = vst [vmem:[#allocation2 + $0x38] sm:$0xff] %v4419_v9  ;;  %v3258_v20 = vpack.c.bf16 %v4416_v8, %v4382_v48 }
  0x83   : > { %725 = vperm.xlu1 %3595, %v714_v53   ;;  %1960 = vmatprep.subr.bf16.mxu1 %v3662_v43  ;;  %v4393_v53 = vpack.c.bf16 %v4379_v47, %v4368_v39  ;;  %v3661_v18 = vld [vmem:[#allocation10 + $0x1f0] ss:$8 sps:$4 sm:$0xff]   ;;  %v3666_v21 = vld [vmem:[#allocation10 + $0x204] ss:$8 sps:$4 sm:$0xff]   ;;  %v3703_v37 = vld [vmem:[#allocation10 + $0xc0] ss:$8 sps:$4 sm:$0xff]   ;;  %v3309_v43 = vpack.c.bf16 %v4419_v9, %v4416_v8 }
  0x84   : > { %2038 = vmatpush1.bf16.msra.mxu0 %v3622_v17  ;;  %v3067_v17 = vld [vmem:[%s5049_s1 + $0x130] sm:$0xff]  ;;  %v3044_v28 = vld [vmem:[%s5049_s1 + $0x78] sm:$0xff]  ;;  %v3710_v51 = vld [vmem:[#allocation10 + $0xe4] ss:$8 sps:$4 sm:$0xff]  }
  0x85   : > { %2039 = vmatprep.subr.bf16.mxu0 %v3623_v19  ;;  %v3686_v19 = vld [vmem:[#allocation10 + $0xa4] ss:$8 sps:$4 sm:$0xff]   ;;  %vm711_vm11 = vcmp.gt.f32.partialorder %v3067_v17, 0.5  ;;  %v3697_v31 = vld [vmem:[#allocation10 + $0xb0] ss:$8 sps:$4 sm:$0xff]   ;;  %vm481_vm12 = vcmp.gt.f32.partialorder %v3044_v28, 0.5 }
  0x86   : > { %491 = vperm.xlu0 %3594, %v482_v60   ;;  %1961 = vmatpush1.bf16.msra.mxu1 %v3667_v46  ;;  %v717_v60 = vsel %vm709_vm3, 1, %v4014_v0  ;;  %v719_v33 = vsel %vm711_vm11, 1, %v4014_v0  ;;  %v395_v36 = vld [vmem:[%s5049_s1 + $0x30] sm:$0xff]  ;;  %v3077_v54 = vld [vmem:[%s5049_s1 + $0x180] sm:$0xff]  ;;  %v3094_v62 = vld [vmem:[%s5049_s1 + $0x208] sm:$0xff] }
  0x87   : > { %494 = vperm.xlu1 %3595, %v483_v59   ;;  %v394_v59 = vld [vmem:[%s5049_s1 + $0x28] sm:$0xff]  ;;  %1962 = vmatprep.subr.bf16.mxu1 %v3668_v52  ;;  %v3704_v42 = vld [vmem:[#allocation10 + $0xd4] ss:$8 sps:$4 sm:$0xff]   ;;  %vm403_vm15 = vcmp.gt.f32.partialorder %v395_v36, 0.5  ;;  %v3709_v46 = vld [vmem:[#allocation10 + $0xd0] ss:$8 sps:$4 sm:$0xff]  }
  0x88   : > { %2040 = vmatpush1.bf16.msra.mxu0 %v3625_v26  ;;  %vm402_vm6 = vcmp.gt.f32.partialorder %v394_v59, 0.5  ;;  %v3078_v52 = vld [vmem:[%s5049_s1 + $0x188] sm:$0xff]  ;;  %vm859_vm3 = vcmp.gt.f32.partialorder %v3077_v54, 0.5  ;;  %vm1014_vm4 = vcmp.gt.f32.partialorder %v3094_v62, 0.5  ;;  %v3096_v16 = vld [vmem:[%s5049_s1 + $0x218] sm:$0xff]  ;;  %v3095_v17 = vld [vmem:[%s5049_s1 + $0x210] sm:$0xff] }
  0x89   : > { %2041 = vmatprep.subr.bf16.mxu0 %v3628_v27  ;;  %v3692_v27 = vld [vmem:[#allocation10 + $0xb4] ss:$8 sps:$4 sm:$0xff]   ;;  %vm860_vm2 = vcmp.gt.f32.partialorder %v3078_v52, 0.5  ;;  %vm1016_vm10 = vcmp.gt.f32.partialorder %v3096_v16, 0.5  ;;  %vm1015_vm11 = vcmp.gt.f32.partialorder %v3095_v17, 0.5  ;;  %v4585_v16 = vld [vmem:[#allocation2 + $0x21] sm:$0xff] }
  0x8a   : > { %414 = vperm.xlu0 %3594, %v405_v6   ;;  %1963 = vmatpush1.bf16.msra.mxu1 %v3673_v57  ;;  %v3075_v6 = vld [vmem:[%s5049_s1 + $0x170] sm:$0xff]  ;;  %v1024_v24 = vsel %vm1016_vm10, 1, %v4014_v0  ;;  %v4568_v62 = vld [vmem:[#allocation2 + $0x1f] sm:$0xff] }
  0x8b   : > { %417 = vperm.xlu1 %3595, %v406_v5   ;;  %v3076_v5 = vld [vmem:[%s5049_s1 + $0x178] sm:$0xff]  ;;  %1964 = vmatprep.subr.bf16.mxu1 %v3674_v61  ;;  %vm788_vm9 = vcmp.gt.f32.partialorder %v3075_v6, 0.5  ;;  %v1022_v6 = vsel %vm1014_vm4, 1, %v4014_v0  ;;  %v3091_v36 = vld [vmem:[%s5049_s1 + $0x1f0] sm:$0xff]  ;;  %v3773_v8 = vld [vmem:[#allocation10 + $0x360] ss:$8 sps:$4 sm:$0xff]  }
  0x8c   : > { %2042 = vmatpush1.bf16.msra.mxu0 %v3631_v34  ;;  %vm789_vm8 = vcmp.gt.f32.partialorder %v3076_v5, 0.5  ;;  %v796_v26 = vsel %vm788_vm9, 1, %v4014_v0  ;;  %v3698_v34 = vld [vmem:[#allocation10 + $0xc4] ss:$8 sps:$4 sm:$0xff]   ;;  %v3087_v5 = vld [vmem:[%s5049_s1 + $0x1d0] sm:$0xff] }
  0x8d   : > { %2043 = vmatprep.subr.bf16.mxu0 %v3634_v35  ;;  %v797_v25 = vsel %vm789_vm8, 1, %v4014_v0  ;;  %v396_v35 = vld [vmem:[%s5049_s1 + $0x38] sm:$0xff]  ;;  %vm938_vm7 = vcmp.gt.f32.partialorder %v3087_v5, 0.5 }
  0x8e   : > { %805 = vperm.xlu0 %3594, %v792_v14   ;;  %1965 = vmatpush1.bf16.msra.mxu1 %v3679_v2  ;;  %v410_v14 = vsel %vm402_vm6, 1, %v4014_v0  ;;  %vm404_vm14 = vcmp.gt.f32.partialorder %v396_v35, 0.5  ;;  %v868_v2 = vsel %vm860_vm2, 1, %v4014_v0  ;;  %v3092_v35 = vld [vmem:[%s5049_s1 + $0x1f8] sm:$0xff] }
  0x8f   : > { %808 = vperm.xlu1 %3595, %v793_v13   ;;  %v3685_v13 = vld [vmem:[#allocation10 + $0x90] ss:$8 sps:$4 sm:$0xff]   ;;  %1966 = vmatprep.subr.bf16.mxu1 %v3680_v7  ;;  %vm943_vm2 = vcmp.gt.f32.partialorder %v3092_v35, 0.5  ;;  %v3781_v9 = vld [vmem:[#allocation10 + $0x374] ss:$8 sps:$4 sm:$0xff]  }
  0x90   : > { %2044 = vmatpush1.bf16.msra.mxu0 %v3637_v44  ;;  %v3086_v44 = vld [vmem:[%s5049_s1 + $0x1c8] sm:$0xff]  ;;  %v4561_v54 = vld [vmem:[#allocation2 + $0x11] sm:$0xff] }
  0x91   : > { %2045 = vmatprep.subr.bf16.mxu0 %v3640_v45  ;;  %v3085_v45 = vld [vmem:[%s5049_s1 + $0x1c0] sm:$0xff]  ;;  %vm937_vm0 = vcmp.gt.f32.partialorder %v3086_v44, 0.5 }
  0x92   : > { %728 = vperm.xlu0 %3594, %v715_v23   ;;  %1967 = vmatpush1.bf16.msra.mxu1 %v3685_v13  ;;  %v4437_v23 = vld [vmem:[%s4217_s27 + $0x30] sm:$0xff]  ;;  %vm936_vm1 = vcmp.gt.f32.partialorder %v3085_v45, 0.5  ;;  %v3748_v13 = vld [vmem:[#allocation10 + $0x404] ss:$8 sps:$4 sm:$0xff]   ;;  %s4714_s27 = scalar_select %p343_p4, %s4000_s24, 1 }
  0x93   : > { %731 = vperm.xlu1 %3595, %v716_v22   ;;  %v3691_v22 = vld [vmem:[#allocation10 + $0xa0] ss:$8 sps:$4 sm:$0xff]   ;;  %379 = vst [vmem:[#allocation2 + $0x40] sm:$0xff] %v4437_v23  ;;  %1968 = vmatprep.subr.bf16.mxu1 %v3686_v19  ;;  %v944_v59 = vsel %vm936_vm1, 1, %v4014_v0  ;;  %s4017_s24 = smov [#allocation12]  }
  0x94   : > { %2046 = vmatpush1.bf16.msra.mxu0 %v3643_v55  ;;  %v3715_v55 = vld [vmem:[#allocation10 + $0xe0] ss:$8 sps:$4 sm:$0xff]   ;;  %s3359_s14 = sshll.u32 %s4714_s27, 7  ;;  %s2894_s27 = sshll.u32 %s4770_s18, 4  ;;  %s4998_s27 = int_to_ptr.vmem [resolvable:$true] %s2894_s27 }
  0x95   : > { %2047 = vmatprep.subr.bf16.mxu0 %v3646_v56  ;;  %v4477_v56 = vld [vmem:[#allocation2 + $0x37] sm:$0xff]  ;;  %s4722_s19 = scalar_lea.vmem %s5052_s4, %s3359_s14  ;;  %s4846_s29 = scalar_lea.vmem %s5053_s5, %s3359_s14 }
  0x96   : > { %497 = vperm.xlu0 %3594, %v484_v30   ;;  %v3303_v30 = vpack.c.bf16 %v4382_v48, %v4379_v47  ;;  %1969 = vmatpush1.bf16.msra.mxu1 %v3691_v22  ;;  %v3089_v22 = vld [vmem:[%s5049_s1 + $0x1e0] sm:$0xff]  ;;  %v3860_v48 = vld [vmem:[#allocation2 + $0x38] sm:$0xff]  ;;  %s3922_s9 = scalar_lea.vmem %s4998_s27, 2048  ;;  %s3926_s28 = sshll.u32 %s4017_s24, 4  ;;  %s3927_s28 = int_to_ptr.vmem [resolvable:$false] %s3926_s28 }
  0x97   : > { %500 = vperm.xlu1 %3595, %v485_v29   ;;  %v3043_v29 = vld [vmem:[%s5049_s1 + $0x70] sm:$0xff]  ;;  %1970 = vmatprep.subr.bf16.mxu1 %v3692_v27  ;;  %v3081_v27 = vld [vmem:[%s5049_s1 + $0x1a0] sm:$0xff]  ;;  %p3923_p6 = scmp.ne.s32.totalorder %s4998_s27, %s3922_s9  ;;  %s3928_s10 = scalar_lea.vmem %s3927_s28, 4096 }
  0x98   : > { %2048 = vmatpush1.bf16.msra.mxu0 %v3649_v63  ;;  %vm480_vm13 = vcmp.gt.f32.partialorder %v3043_v29, 0.5  ;;  %v3093_v63 = vld [vmem:[%s5049_s1 + $0x200] sm:$0xff]  ;;  %p3929_p11 = scmp.lt.s32.totalorder %s4998_s27, %s3927_s28  ;;  %p3930_p0 = scmp.lt.s32.totalorder %s3928_s10, %s3922_s9 }
  0x99   : > { %2049 = vmatprep.subr.bf16.mxu0 %v3652_v1  ;;  %v3721_v1 = vld [vmem:[#allocation10 + $0xf0] ss:$8 sps:$4 sm:$0xff]   ;;  %vm1013_vm5 = vcmp.gt.f32.partialorder %v3093_v63, 0.5  ;;  %v4570_v63 = vld [vmem:[#allocation2 + $0x27] sm:$0xff]  ;;  %p3924_p8 = pnand %p3923_p6, %p4154_p10 }
  0x9a   : > { %420 = vperm.xlu0 %3594, %v407_v41   ;;  %1971 = vmatpush1.bf16.msra.mxu1 %v3697_v31  ;;  %v488_v41 = vsel %vm480_vm13, 1, %v4014_v0  ;;  %v4479_v57 = vld [vmem:[#allocation2 + $0x3f] sm:$0xff]  ;;  %v1021_v7 = vsel %vm1013_vm5, 1, %v4014_v0  ;;  %vm940_vm13 = vcmp.gt.f32.partialorder %v3089_v22, 0.5  ;;  %v3098_v31 = vld [vmem:[%s5049_s1 + $0x228] sm:$0xff]  ;;  %p3931_p5 = por %p3930_p0, %p3929_p11 }
  0x9b   : > { %423 = vperm.xlu1 %3595, %v408_v40   ;;  %v489_v40 = vsel %vm481_vm12, 1, %v4014_v0  ;;  %1972 = vmatprep.subr.bf16.mxu1 %v3698_v34  ;;  %v3267_v61 = vpack.c.bf16 %v4479_v57, %v4477_v56  ;;  %v948_v29 = vsel %vm940_vm13, 1, %v4014_v0  ;;  %v4588_v22 = vld [vmem:[#allocation2 + $0x2f] sm:$0xff]  ;;  %p3925_p12 = pneg %p3924_p8 }
  0x9c   : > { %2050 = vmatpush1.bf16.msra.mxu0 %v3655_v11  ;;  %v3080_v11 = vld [vmem:[%s5049_s1 + $0x198] sm:$0xff] }
  0x9d   : > { %2051 = vmatprep.subr.bf16.mxu0 %v3658_v12  ;;  %v3079_v12 = vld [vmem:[%s5049_s1 + $0x190] sm:$0xff]  ;;  %vm862_vm8 = vcmp.gt.f32.partialorder %v3080_v11, 0.5  ;;  %p3932_p9 = pnand %p3931_p5, %p3925_p12 }
  0x9e   : > { %811 = vperm.xlu0 %3594, %v794_v50   ;;  %1973 = vmatpush1.bf16.msra.mxu1 %v3703_v37  ;;  %v411_v50 = vsel %vm403_vm15, 1, %v4014_v0  ;;  %vm861_vm9 = vcmp.gt.f32.partialorder %v3079_v12, 0.5  ;;  %vm863_vm15 = vcmp.gt.f32.partialorder %v3081_v27, 0.5  ;;  %v3684_v27 = vld [vmem:[#allocation10 + $0x234] ss:$8 sps:$4 sm:$0xff]  }
  0x9f   : > { %814 = vperm.xlu1 %3595, %v795_v49   ;;  %v412_v49 = vsel %vm404_vm14, 1, %v4014_v0  ;;  %1974 = vmatprep.subr.bf16.mxu1 %v3704_v42  ;;  %v869_v19 = vsel %vm861_vm9, 1, %v4014_v0  ;;  %v871_v34 = vsel %vm863_vm15, 1, %v4014_v0  ;;  %v3083_v42 = vld [vmem:[%s5049_s1 + $0x1b0] sm:$0xff] }
  0xa0   : > { %2052 = vmatpush1.bf16.msra.mxu0 %v3661_v18  ;;  %v870_v18 = vsel %vm862_vm8, 1, %v4014_v0  ;;  %vm865_vm5 = vcmp.gt.f32.partialorder %v3083_v42, 0.5 }
  0xa1   : > { %2094 = vmatprep.subr.bf16.mxu0 %v3666_v21  ;;  %v3090_v21 = vld [vmem:[%s5049_s1 + $0x1e8] sm:$0xff]  ;;  %v873_v5 = vsel %vm865_vm5, 1, %v4014_v0 }
  0xa2   : > { %734 = vperm.xlu0 %3594, %v717_v60   ;;  %1975 = vmatpush1.bf16.msra.mxu1 %v3709_v46  ;;  %v3716_v60 = vld [vmem:[#allocation10 + $0xf4] ss:$8 sps:$4 sm:$0xff]   ;;  %vm941_vm12 = vcmp.gt.f32.partialorder %v3090_v21, 0.5 }
  0xa3   : > { %737 = vperm.xlu1 %3595, %v718_v58   ;;  %v945_v58 = vsel %vm937_vm0, 1, %v4014_v0  ;;  %1976 = vmatprep.subr.bf16.mxu1 %v3710_v51  ;;  %v949_v28 = vsel %vm941_vm12, 1, %v4014_v0  ;;  %vm1018_vm0 = vcmp.gt.f32.partialorder %v3098_v31, 0.5  ;;  %v4555_v46 = vld [vmem:[#allocation2 + $0xf] sm:$0xff]  ;;  %v951_v51 = vsel %vm943_vm2, 1, %v4014_v0 }
  0xa4   : > { %v1026_v37 = vsel %vm1018_vm0, 1, %v4014_v0  ;;  %v3682_v31 = vld [vmem:[#allocation10 + $0x230] ss:$8 sps:$4 sm:$0xff]  }
  0xa6   : > { %503 = vperm.xlu0 %3594, %v486_v4   ;;  %1977 = vmatpush1.bf16.msra.mxu1 %v3715_v55  ;;  %v3088_v4 = vld [vmem:[%s5049_s1 + $0x1d8] sm:$0xff] }
  0xa7   : > { %506 = vperm.xlu1 %3595, %v487_v3   ;;  %v867_v3 = vsel %vm859_vm3, 1, %v4014_v0  ;;  %1978 = vmatprep.subr.bf16.mxu1 %v3716_v60  ;;  %vm939_vm6 = vcmp.gt.f32.partialorder %v3088_v4, 0.5  ;;  %vm942_vm3 = vcmp.gt.f32.partialorder %v3091_v36, 0.5  ;;  %v3100_v55 = vld [vmem:[%s5049_s1 + $0x238] sm:$0xff] }
  0xa8   : > { %v950_v52 = vsel %vm942_vm3, 1, %v4014_v0  ;;  %vm1020_vm12 = vcmp.gt.f32.partialorder %v3100_v55, 0.5  ;;  %v4612_v55 = vld [vmem:[#allocation2 + $0x41] sm:$0xff] }
  0xaa   : > { %426 = vperm.xlu0 %3594, %v409_v15   ;;  %1979 = vmatpush1.bf16.msra.mxu1 %v3721_v1  ;;  %v946_v15 = vsel %vm938_vm7, 1, %v4014_v0 }
  0xab   : > { %429 = vperm.xlu1 %3595, %v410_v14   ;;  %v947_v14 = vsel %vm939_vm6, 1, %v4014_v0  ;;  %2240 = vmatprep.subr.bf16.mxu1 %v3748_v13  ;;  %v3670_v13 = vld [vmem:[#allocation10 + $0x210] ss:$8 sps:$4 sm:$0xff]  }
  0xae   : > { %817 = vperm.xlu0 %3594, %v796_v26   ;;  %v3082_v26 = vld [vmem:[%s5049_s1 + $0x1a8] sm:$0xff] }
  0xaf   : > { %820 = vperm.xlu1 %3595, %v797_v25   ;;  %v1023_v25 = vsel %vm1015_vm11, 1, %v4014_v0  ;;  %vm864_vm14 = vcmp.gt.f32.partialorder %v3082_v26, 0.5  ;;  %v3282_v26 = vpack.c.bf16 %v4477_v56, %v4588_v22 }
  0xb2   : > { %740 = vperm.xlu0 %3594, %v719_v33   ;;  %v872_v33 = vsel %vm864_vm14, 1, %v4014_v0 }
  0xb3   : > { %743 = vperm.xlu1 %3595, %v720_v32   ;;  %v3097_v32 = vld [vmem:[%s5049_s1 + $0x220] sm:$0xff] }
  0xb4   : > { %vm1017_vm1 = vcmp.gt.f32.partialorder %v3097_v32, 0.5  ;;  %v4597_v32 = vld [vmem:[#allocation2 + $0x29] sm:$0xff] }
  0xb6   : > { %509 = vperm.xlu0 %3594, %v488_v41   ;;  %v3084_v41 = vld [vmem:[%s5049_s1 + $0x1b8] sm:$0xff] }
  0xb7   : > { %512 = vperm.xlu1 %3595, %v489_v40   ;;  %v1025_v40 = vsel %vm1017_vm1, 1, %v4014_v0  ;;  %vm866_vm4 = vcmp.gt.f32.partialorder %v3084_v41, 0.5  ;;  %v3688_v41 = vld [vmem:[#allocation10 + $0x240] ss:$8 sps:$4 sm:$0xff]  }
  0xb8   : > { %v874_v4 = vsel %vm866_vm4, 1, %v4014_v0 }
  0xba   : > { %432 = vperm.xlu0 %3594, %v411_v50   ;;  %v534_v50 = vld [vmem:[#allocation2 + $0x9] sm:$0xff] }
  0xbb   : > { %435 = vperm.xlu1 %3595, %v412_v49   ;;  %v4557_v49 = vld [vmem:[#allocation2 + $0x17] sm:$0xff]  ;;  %v3273_v1 = vpack.c.bf16 %v4561_v54, %v534_v50 }
  0xbc   : > { %v3270_v60 = vpack.c.bf16 %v4557_v49, %v4555_v46 }
  0xbe   : > { %953 = vperm.xlu0 %3594, %v944_v59  }
  0xbf   : > { %956 = vperm.xlu1 %3595, %v945_v58  }
  0xc2   : > { %876 = vperm.xlu0 %3594, %v867_v3   ;;  %v3664_v3 = vld [vmem:[#allocation10 + $0x200] ss:$8 sps:$4 sm:$0xff]  }
  0xc3   : > { %879 = vperm.xlu1 %3595, %v868_v2   ;;  %v3099_v2 = vld [vmem:[%s5049_s1 + $0x230] sm:$0xff] }
  0xc4   : > { %vm1019_vm13 = vcmp.gt.f32.partialorder %v3099_v2, 0.5  ;;  %v3700_v2 = vld [vmem:[#allocation10 + $0x260] ss:$8 sps:$4 sm:$0xff]  }
  0xc5   : > { %v1027_v17 = vsel %vm1019_vm13, 1, %v4014_v0 }
  0xc6   : > { %1030 = vperm.xlu0 %3594, %v1021_v7   ;;  %v3672_v7 = vld [vmem:[#allocation10 + $0x214] ss:$8 sps:$4 sm:$0xff]  }
  0xc7   : > { %1033 = vperm.xlu1 %3595, %v1022_v6   ;;  %v3276_v6 = vpack.c.bf16 %v4570_v63, %v4568_v62 }
  0xca   : > { %959 = vperm.xlu0 %3594, %v946_v15   ;;  %v4583_v15 = vld [vmem:[#allocation2 + $0x19] sm:$0xff] }
  0xcb   : > { %962 = vperm.xlu1 %3595, %v947_v14   ;;  %v1028_v14 = vsel %vm1020_vm12, 1, %v4014_v0 }
  0xce   : > { %882 = vperm.xlu0 %3594, %v869_v19  }
  0xcf   : > { %885 = vperm.xlu1 %3595, %v870_v18   ;;  %v3678_v18 = vld [vmem:[#allocation10 + $0x224] ss:$8 sps:$4 sm:$0xff]  }
  0xd2   : > { %1036 = vperm.xlu0 %3594, %v1023_v25   ;;  %v3676_v25 = vld [vmem:[#allocation10 + $0x220] ss:$8 sps:$4 sm:$0xff]  }
  0xd3   : > { %1039 = vperm.xlu1 %3595, %v1024_v24   ;;  %v4592_v24 = vpack.c.bf16 %v4585_v16, %v4583_v15 }
  0xd6   : > { %965 = vperm.xlu0 %3594, %v948_v29  }
  0xd7   : > { %968 = vperm.xlu1 %3595, %v949_v28  }
  0xda   : > { %888 = vperm.xlu0 %3594, %v871_v34   ;;  %v3690_v34 = vld [vmem:[#allocation10 + $0x244] ss:$8 sps:$4 sm:$0xff]  }
  0xdb   : > { %891 = vperm.xlu1 %3595, %v872_v33   ;;  %v4599_v33 = vld [vmem:[#allocation2 + $0x31] sm:$0xff] }
  0xdd   : > { %v646_v44 = vpop.permute.xlu0 %645 }
  0xde   : > { %v569_v45 = vpop.permute.xlu1 %568  ;;  %1042 = vperm.xlu0 %3594, %v1025_v40   ;;  %vm668_vm10 = vcmp.eq.s32.totalorder %v646_v44, 1  ;;  %v4605_v40 = vpack.c.bf16 %v4599_v33, %v4597_v32  ;;  %v3696_v44 = vld [vmem:[#allocation10 + $0x254] ss:$8 sps:$4 sm:$0xff]  }
  0xdf   : > { %1045 = vperm.xlu1 %3595, %v1026_v37   ;;  %vm591_vm6 = vcmp.eq.s32.totalorder %v569_v45, 1  ;;  %v4601_v37 = vld [vmem:[#allocation2 + $0x47] sm:$0xff] }
  0xe0   : > { %v3288_v42 = vpack.c.bf16 %v4601_v37, %v4479_v57  ;;  %v3785_v57 = vld [vmem:[#allocation10 + $0x380] ss:$8 sps:$4 sm:$0xff]  }
  0xe1   : > { %v649_v58 = vpop.permute.xlu0 %648 }
  0xe2   : > { %v572_v59 = vpop.permute.xlu1 %571  ;;  %971 = vperm.xlu0 %3594, %v950_v52   ;;  %vm669_vm8 = vcmp.eq.s32.totalorder %v649_v58, 1  ;;  %v4610_v52 = vld [vmem:[#allocation2 + $0x39] sm:$0xff]  ;;  %v3702_v58 = vld [vmem:[#allocation10 + $0x264] ss:$8 sps:$4 sm:$0xff]  }
  0xe3   : > { %vm592_vm7 = vcmp.eq.s32.totalorder %v572_v59, 1  ;;  %974 = vperm.xlu1 %3595, %v951_v51   ;;  %vm3269_vm11 = vmpackc.low %vm669_vm8, %vm668_vm10  ;;  %v3694_v51 = vld [vmem:[#allocation10 + $0x250] ss:$8 sps:$4 sm:$0xff]   ;;  %v3306_v39 = vpack.c.bf16 %v4610_v52, %v4599_v33 }
  0xe4   : > { %vm3272_vm9 = vmpackc.low %vm592_vm7, %vm591_vm6  ;;  %3271 = vmatprep.mubr.msk.bf16.mxu0 %vm3269_vm11, %v3270_v60 }
  0xe5   : > { %v652_v11 = vpop.permute.xlu0 %651  ;;  %3274 = vmatmul.mubr.msk.bf16.vlgmr.msra.gmra.mrb[0].mxu0 %vm3272_vm9, %v3273_v1  ;;  %v4616_v1 = vpack.c.bf16 %v4612_v55, %v4610_v52  ;;  %v3761_v52 = vld [vmem:[#allocation10 + $0x340] ss:$8 sps:$4 sm:$0xff]  }
  0xe6   : > { %v655_v12 = vpop.permute.xlu1 %654  ;;  %vm670_vm14 = vcmp.eq.s32.totalorder %v652_v11, 1  ;;  %2095 = vmatpush1.bf16.msra.mxu0 %v3664_v3  ;;  %894 = vperm.xlu0 %3594, %v873_v5   ;;  %v3708_v3 = vld [vmem:[#allocation10 + $0x274] ss:$8 sps:$4 sm:$0xff]   ;;  %v3714_v11 = vld [vmem:[#allocation10 + $0x284] ss:$8 sps:$4 sm:$0xff]  }
  0xe7   : > { %vm671_vm15 = vcmp.eq.s32.totalorder %v655_v12, 1  ;;  %897 = vperm.xlu1 %3595, %v874_v4   ;;  %2096 = vmatprep.subr.bf16.mxu0 %v3672_v7  ;;  %v3294_v4 = vpack.c.bf16 %v4583_v15, %v4561_v54  ;;  %v3706_v7 = vld [vmem:[#allocation10 + $0x270] ss:$8 sps:$4 sm:$0xff]   ;;  %v3720_v15 = vld [vmem:[#allocation10 + $0x294] ss:$8 sps:$4 sm:$0xff]  }
  0xe8   : > { %vm3275_vm0 = vmpackc.low %vm671_vm15, %vm670_vm14 }
  0xe9   : > { %3277 = vmatprep.mubr.msk.bf16.mxu0 %vm3275_vm0, %v3276_v6  ;;  %v575_v19 = vpop.permute.xlu0 %574 }
  0xea   : > { %v578_v21 = vpop.permute.xlu1 %577  ;;  %vm593_vm1 = vcmp.eq.s32.totalorder %v575_v19, 1  ;;  %2097 = vmatpush1.bf16.msra.mxu0 %v3670_v13  ;;  %1048 = vperm.xlu0 %3594, %v1027_v17   ;;  %v3712_v17 = vld [vmem:[#allocation10 + $0x280] ss:$8 sps:$4 sm:$0xff]  }
  0xeb   : > { %vm594_vm2 = vcmp.eq.s32.totalorder %v578_v21, 1  ;;  %1051 = vperm.xlu1 %3595, %v1028_v14   ;;  %2098 = vmatprep.subr.bf16.mxu0 %v3678_v18  ;;  %v457_v14 = vld [vmem:[#allocation2 + $0x8] sm:$0xff] }
  0xec   : > { %vm3278_vm3 = vmpackc.low %vm594_vm2, %vm593_vm1  ;;  %v3246_v54 = vpack.c.bf16 %v4365_v38, %v457_v14  ;;  %v381_v21 = vld [vmem:[#allocation2 + $0x7] sm:$0xff]  ;;  %v3255_v14 = vpack.c.bf16 %v4568_v62, %v4557_v49  ;;  %v3737_v62 = vld [vmem:[#allocation10 + $0x2f0] ss:$8 sps:$4 sm:$0xff]  }
  0xed   : > { %v658_v28 = vpop.permute.xlu0 %657  ;;  %3280 = vmatmul.mubr.msk.bf16.gmra.mrb[4].mxu0 %vm3278_vm3, %v4592_v24  ;;  %v3784_v49 = vld [vmem:[#allocation10 + $0x464] ss:$8 sps:$4 sm:$0xff]   ;;  %v3749_v38 = vld [vmem:[#allocation10 + $0x320] ss:$8 sps:$4 sm:$0xff]  }
  0xee   : > { %v661_v29 = vpop.permute.xlu1 %660  ;;  %vm672_vm4 = vcmp.eq.s32.totalorder %v658_v28, 1  ;;  %2099 = vmatpush1.bf16.msra.mxu0 %v3676_v25  ;;  %v3718_v25 = vld [vmem:[#allocation10 + $0x290] ss:$8 sps:$4 sm:$0xff]  }
  0xef   : > { %vm673_vm5 = vcmp.eq.s32.totalorder %v661_v29, 1  ;;  %2100 = vmatprep.subr.bf16.mxu0 %v3684_v27  ;;  %v3724_v27 = vld [vmem:[#allocation10 + $0x2a4] ss:$8 sps:$4 sm:$0xff]  }
  0xf0   : > { %vm3281_vm6 = vmpackc.low %vm673_vm5, %vm672_vm4 }
  0xf1   : > { %3283 = vmatprep.mubr.msk.bf16.mxu0 %vm3281_vm6, %v3282_v26  ;;  %v581_v35 = vpop.permute.xlu0 %580  ;;  %v3249_v26 = vpack.c.bf16 %v4555_v46, %v381_v21  ;;  %v3760_v46 = vld [vmem:[#allocation10 + $0x424] ss:$8 sps:$4 sm:$0xff]   ;;  %v3734_v21 = vld [vmem:[#allocation10 + $0x2e0] ss:$8 sps:$4 sm:$0xff]  }
  0xf2   : > { %v584_v36 = vpop.permute.xlu1 %583  ;;  %vm595_vm7 = vcmp.eq.s32.totalorder %v581_v35, 1  ;;  %2101 = vmatpush1.bf16.msra.mxu0 %v3682_v31  ;;  %v3746_v31 = vld [vmem:[#allocation10 + $0x400] ss:$8 sps:$4 sm:$0xff]  }
  0xf3   : > { %vm596_vm8 = vcmp.eq.s32.totalorder %v584_v36, 1  ;;  %2102 = vmatprep.subr.bf16.mxu0 %v3690_v34  ;;  %v3754_v34 = vld [vmem:[#allocation10 + $0x414] ss:$8 sps:$4 sm:$0xff]   ;;  %v3722_v35 = vld [vmem:[#allocation10 + $0x2a0] ss:$8 sps:$4 sm:$0xff]  }
  0xf4   : > { %vm3284_vm9 = vmpackc.low %vm596_vm8, %vm595_vm7  ;;  %v3727_v36 = vld [vmem:[#allocation10 + $0x2b4] ss:$8 sps:$4 sm:$0xff]  }
  0xf5   : > { %v664_v45 = vpop.permute.xlu0 %663  ;;  %3286 = vmatmul.mubr.msk.bf16.gmra.mrb[8].mxu0 %vm3284_vm9, %v4605_v40 }
  0xf6   : > { %v667_v50 = vpop.permute.xlu1 %666  ;;  %vm674_vm10 = vcmp.eq.s32.totalorder %v664_v45, 1  ;;  %2103 = vmatpush1.bf16.msra.mxu0 %v3688_v41  ;;  %v3725_v45 = vld [vmem:[#allocation10 + $0x2b0] ss:$8 sps:$4 sm:$0xff]  }
  0xf7   : > { %vm675_vm11 = vcmp.eq.s32.totalorder %v667_v50, 1  ;;  %2104 = vmatprep.subr.bf16.mxu0 %v3696_v44  ;;  %v3752_v44 = vld [vmem:[#allocation10 + $0x410] ss:$8 sps:$4 sm:$0xff]   ;;  %v3730_v50 = vld [vmem:[#allocation10 + $0x2c4] ss:$8 sps:$4 sm:$0xff]  }
  0xf8   : > { %vm3287_vm12 = vmpackc.low %vm675_vm11, %vm674_vm10 }
  0xf9   : > { %3289 = vmatprep.mubr.msk.bf16.mxu0 %vm3287_vm12, %v3288_v42  ;;  %v587_v59 = vpop.permute.xlu0 %586 }
  0xfa   : > { %v590_v60 = vpop.permute.xlu1 %589  ;;  %vm597_vm13 = vcmp.eq.s32.totalorder %v587_v59, 1  ;;  %2105 = vmatpush1.bf16.msra.mxu0 %v3694_v51  ;;  %v3758_v59 = vld [vmem:[#allocation10 + $0x420] ss:$8 sps:$4 sm:$0xff]  }
  0xfb   : > { %vm598_vm14 = vcmp.eq.s32.totalorder %v590_v60, 1  ;;  %2106 = vmatprep.subr.bf16.mxu0 %v3702_v58  ;;  %v3766_v60 = vld [vmem:[#allocation10 + $0x434] ss:$8 sps:$4 sm:$0xff]  }
  0xfc   : > { %vm3290_vm15 = vmpackc.low %vm598_vm14, %vm597_vm13 }
  0xfd   : > { %v800_v5 = vpop.permute.xlu0 %799  ;;  %3292 = vmatmul.mubr.msk.bf16.gmra.mrb[12].mxu0 %vm3290_vm15, %v4616_v1 }
  0xfe   : > { %v803_v6 = vpop.permute.xlu1 %802  ;;  %vm822_vm0 = vcmp.eq.s32.totalorder %v800_v5, 1  ;;  %2107 = vmatpush1.bf16.msra.mxu0 %v3700_v2  ;;  %v3728_v2 = vld [vmem:[#allocation10 + $0x2c0] ss:$8 sps:$4 sm:$0xff]  }
  0xff   : > { %vm823_vm1 = vcmp.eq.s32.totalorder %v803_v6, 1  ;;  %2108 = vmatprep.subr.bf16.mxu0 %v3708_v3  ;;  %v3733_v3 = vld [vmem:[#allocation10 + $0x2d4] ss:$8 sps:$4 sm:$0xff]   ;;  %v3764_v6 = vld [vmem:[#allocation10 + $0x430] ss:$8 sps:$4 sm:$0xff]  }
 0x100   : > { %vm3293_vm2 = vmpackc.low %vm823_vm1, %vm822_vm0 }
 0x101   : > { %3295 = vmatprep.mubr.msk.bf16.mxu0 %vm3293_vm2, %v3294_v4  ;;  %v4621_v12 = vpop.permute.xlu0 %722 }
 0x102   : > { %v4623_v13 = vpop.permute.xlu1 %725  ;;  %2109 = vmatpush1.bf16.msra.mxu0 %v3706_v7  ;;  %v3772_v7 = vld [vmem:[#allocation10 + $0x444] ss:$8 sps:$4 sm:$0xff]   ;;  %vm745_vm15 = vcmp.eq.s32.totalorder %v4621_v12, 1  ;;  %v3788_v12 = vld [vmem:[#allocation10 + $0x470] ss:$8 sps:$4 sm:$0xff]  }
 0x103   : > { %2110 = vmatprep.subr.bf16.mxu0 %v3714_v11  ;;  %v3731_v11 = vld [vmem:[#allocation10 + $0x2d0] ss:$8 sps:$4 sm:$0xff]   ;;  %vm746_vm0 = vcmp.eq.s32.totalorder %v4623_v13, 1 }
 0x104   : > { %v3743_v13 = vld [vmem:[#allocation10 + $0x310] ss:$8 sps:$4 sm:$0xff]  }
 0x105   : > { %v492_v19 = vpop.permute.xlu0 %491 }
 0x106   : > { %v495_v18 = vpop.permute.xlu1 %494  ;;  %vm514_vm4 = vcmp.eq.s32.totalorder %v492_v19, 1  ;;  %2111 = vmatpush1.bf16.msra.mxu0 %v3712_v17  ;;  %v3736_v17 = vld [vmem:[#allocation10 + $0x2e4] ss:$8 sps:$4 sm:$0xff]   ;;  %v3778_v19 = vld [vmem:[#allocation10 + $0x454] ss:$8 sps:$4 sm:$0xff]  }
 0x107   : > { %vm515_vm3 = vcmp.eq.s32.totalorder %v495_v18, 1  ;;  %2112 = vmatprep.subr.bf16.mxu0 %v3720_v15  ;;  %v3770_v18 = vld [vmem:[#allocation10 + $0x440] ss:$8 sps:$4 sm:$0xff]  }
 0x108   : > { %vm3245_vm5 = vmpackc.low %vm515_vm3, %vm514_vm4 }
 0x109   : > { %3247 = vmatprep.mubr.msk.bf16.mxu1 %vm3245_vm5, %v3246_v54  ;;  %v415_v29 = vpop.permute.xlu0 %414  ;;  %vm3296_vm3 = vmpackc.low %vm746_vm0, %vm745_vm15 }
 0x10a   : > { %v418_v28 = vpop.permute.xlu1 %417  ;;  %vm437_vm7 = vcmp.eq.s32.totalorder %v415_v29, 1  ;;  %2113 = vmatpush1.bf16.msra.mxu0 %v3718_v25  ;;  %v3739_v25 = vld [vmem:[#allocation10 + $0x2f4] ss:$8 sps:$4 sm:$0xff]   ;;  %v3742_v29 = vld [vmem:[#allocation10 + $0x304] ss:$8 sps:$4 sm:$0xff]  }
 0x10b   : > { %vm438_vm6 = vcmp.eq.s32.totalorder %v418_v28, 1  ;;  %2114 = vmatprep.subr.bf16.mxu0 %v3724_v27  ;;  %v3776_v28 = vld [vmem:[#allocation10 + $0x450] ss:$8 sps:$4 sm:$0xff]  }
 0x10c   : > { %vm3248_vm8 = vmpackc.low %vm438_vm6, %vm437_vm7 }
 0x10d   : > { %3250 = vmatmul.mubr.msk.bf16.vlgmr.msra.gmra.mrb[0].mxu1 %vm3248_vm8, %v3249_v26  ;;  %v4629_v42 = vpop.permute.xlu0 %805 }
 0x10e   : > { %v4627_v41 = vpop.permute.xlu1 %808  ;;  %2241 = vmatpush1.bf16.msra.mxu1 %v3746_v31  ;;  %2115 = vmatpush1.bf16.msra.mxu0 %v3722_v35  ;;  %v3782_v35 = vld [vmem:[#allocation10 + $0x460] ss:$8 sps:$4 sm:$0xff]   ;;  %vm824_vm2 = vcmp.eq.s32.totalorder %v4629_v42, 1 }
 0x10f   : > { %2242 = vmatprep.subr.bf16.mxu1 %v3754_v34  ;;  %2116 = vmatprep.subr.bf16.mxu0 %v3727_v36  ;;  %v3790_v36 = vld [vmem:[#allocation10 + $0x474] ss:$8 sps:$4 sm:$0xff]   ;;  %vm825_vm1 = vcmp.eq.s32.totalorder %v4627_v41, 1 }
 0x110   : > { %vm3299_vm4 = vmpackc.low %vm825_vm1, %vm824_vm2 }
 0x111   : > { %v4633_v58 = vpop.permute.xlu0 %728 }
 0x112   : > { %v4631_v51 = vpop.permute.xlu1 %731  ;;  %2243 = vmatpush1.bf16.msra.mxu1 %v3752_v44  ;;  %2117 = vmatpush1.bf16.msra.mxu0 %v3725_v45  ;;  %v3740_v44 = vld [vmem:[#allocation10 + $0x300] ss:$8 sps:$4 sm:$0xff]   ;;  %v3745_v45 = vld [vmem:[#allocation10 + $0x314] ss:$8 sps:$4 sm:$0xff]  }
 0x113   : > { %2244 = vmatprep.subr.bf16.mxu1 %v3760_v46  ;;  %2118 = vmatprep.subr.bf16.mxu0 %v3730_v50  ;;  %v3300_v46 = vpack.c.bf16 %v4597_v32, %v4585_v16  ;;  %v3261_v16 = vpack.c.bf16 %v4588_v22, %v4570_v63  ;;  %v3751_v32 = vld [vmem:[#allocation10 + $0x324] ss:$8 sps:$4 sm:$0xff]   ;;  %vm748_vm8 = vcmp.eq.s32.totalorder %v4631_v51, 1  ;;  %v3755_v22 = vld [vmem:[#allocation10 + $0x330] ss:$8 sps:$4 sm:$0xff]  }
 0x114   : > { %v3763_v51 = vld [vmem:[#allocation10 + $0x344] ss:$8 sps:$4 sm:$0xff]  }
 0x115   : > { %v498_v5 = vpop.permute.xlu0 %497 }
 0x116   : > { %v501_v4 = vpop.permute.xlu1 %500  ;;  %2245 = vmatpush1.bf16.msra.mxu1 %v3758_v59  ;;  %vm516_vm10 = vcmp.eq.s32.totalorder %v498_v5, 1  ;;  %2119 = vmatpush1.bf16.msra.mxu0 %v3728_v2  ;;  %v3769_v2 = vld [vmem:[#allocation10 + $0x354] ss:$8 sps:$4 sm:$0xff]   ;;  %v3767_v5 = vld [vmem:[#allocation10 + $0x350] ss:$8 sps:$4 sm:$0xff]  }
 0x117   : > { %vm517_vm9 = vcmp.eq.s32.totalorder %v501_v4, 1  ;;  %2246 = vmatprep.subr.bf16.mxu1 %v3766_v60  ;;  %2120 = vmatprep.subr.bf16.mxu0 %v3733_v3 }
 0x118   : > { %vm3251_vm11 = vmpackc.low %vm517_vm9, %vm516_vm10  ;;  %vm747_vm9 = vcmp.eq.s32.totalorder %v4633_v58, 1  ;;  %v4663_v58 = vld [vmem:[#allocation2 + $0x49] sm:$0xff] }
 0x119   : > { %3253 = vmatprep.mubr.msk.bf16.mxu1 %vm3251_vm11, %v4393_v53  ;;  %v421_v15 = vpop.permute.xlu0 %420  ;;  %vm3302_vm15 = vmpackc.low %vm748_vm8, %vm747_vm9  ;;  %v3312_v47 = vpack.c.bf16 %v4663_v58, %v4612_v55  ;;  %v3775_v55 = vld [vmem:[#allocation10 + $0x364] ss:$8 sps:$4 sm:$0xff]  }
 0x11a   : > { %v424_v54 = vpop.permute.xlu1 %423  ;;  %2247 = vmatpush1.bf16.msra.mxu1 %v3764_v6  ;;  %vm439_vm13 = vcmp.eq.s32.totalorder %v421_v15, 1  ;;  %2121 = vmatpush1.bf16.msra.mxu0 %v3731_v11  ;;  %v4675_v11 = vld [vmem:[#allocation2 + $0x48] sm:$0xff] }
 0x11b   : > { %vm440_vm12 = vcmp.eq.s32.totalorder %v424_v54, 1  ;;  %2248 = vmatprep.subr.bf16.mxu1 %v3772_v7  ;;  %2122 = vmatprep.subr.bf16.mxu0 %v3736_v17  ;;  %v4673_v7 = vld [vmem:[#allocation2 + $0x40] sm:$0xff]  ;;  %v3779_v54 = vld [vmem:[#allocation10 + $0x370] ss:$8 sps:$4 sm:$0xff]  }
 0x11c   : > { %vm3254_vm14 = vmpackc.low %vm440_vm12, %vm439_vm13  ;;  %v3787_v15 = vld [vmem:[#allocation10 + $0x384] ss:$8 sps:$4 sm:$0xff]  }
 0x11d   : > { %3256 = vmatmul.mubr.msk.bf16.gmra.mrb[4].mxu1 %vm3254_vm14, %v3255_v14  ;;  %v812_v27 = vpop.permute.xlu0 %811  ;;  %v3315_v14 = vpack.c.bf16 %v4675_v11, %v4673_v7 }
 0x11e   : > { %v815_v26 = vpop.permute.xlu1 %814  ;;  %2249 = vmatpush1.bf16.msra.mxu1 %v3770_v18  ;;  %2123 = vmatpush1.bf16.msra.mxu0 %v3734_v21  ;;  %vm826_vm13 = vcmp.eq.s32.totalorder %v812_v27, 1 }
 0x11f   : > { %2250 = vmatprep.subr.bf16.mxu1 %v3778_v19  ;;  %2124 = vmatprep.subr.bf16.mxu0 %v3739_v25  ;;  %vm827_vm12 = vcmp.eq.s32.totalorder %v815_v26, 1  ;;  %v3791_v25 = vld [vmem:[#allocation10 + $0x390] ss:$8 sps:$4 sm:$0xff]  }
 0x120   : > { %vm3305_vm0 = vmpackc.low %vm827_vm12, %vm826_vm13 }
 0x121   : > { %v4640_v34 = vpop.permute.xlu0 %734 }
 0x122   : > { %v4638_v31 = vpop.permute.xlu1 %737  ;;  %2251 = vmatpush1.bf16.msra.mxu1 %v3776_v28  ;;  %2125 = vmatpush1.bf16.msra.mxu0 %v3737_v62  ;;  %vm749_vm2 = vcmp.eq.s32.totalorder %v4640_v34, 1  ;;  %v3794_v28 = vld [vmem:[#allocation10 + $0x3a0] ss:$8 sps:$4 sm:$0xff]   ;;  %v3802_v34 = vld [vmem:[#allocation10 + $0x3c4] ss:$8 sps:$4 sm:$0xff]  }
 0x123   : > { %2252 = vmatprep.subr.bf16.mxu1 %v3784_v49  ;;  %2167 = vmatprep.subr.bf16.mxu0 %v3742_v29  ;;  %vm750_vm1 = vcmp.eq.s32.totalorder %v4638_v31, 1  ;;  %v3799_v49 = vld [vmem:[#allocation10 + $0x3b4] ss:$8 sps:$4 sm:$0xff]   ;;  %v3797_v31 = vld [vmem:[#allocation10 + $0x3b0] ss:$8 sps:$4 sm:$0xff]  }
 0x125   : > { %v504_v59 = vpop.permute.xlu0 %503  ;;  %3298 = vmatmul.mubr.msk.bf16.vlgmr.msra.gmra.mrb[0].mxu0 %vm3296_vm3, %v3297_v10  ;;  %v3757_v10 = vld [vmem:[#allocation10 + $0x334] ss:$8 sps:$4 sm:$0xff]  }
 0x126   : > { %v507_v50 = vpop.permute.xlu1 %506  ;;  %2253 = vmatpush1.bf16.msra.mxu1 %v3782_v35  ;;  %vm518_vm6 = vcmp.eq.s32.totalorder %v504_v59, 1  ;;  %3301 = vmatprep.mubr.msk.bf16.mxu0 %vm3299_vm4, %v3300_v46  ;;  %v3808_v59 = vld [vmem:[#allocation10 + $0x3e4] ss:$8 sps:$4 sm:$0xff]  }
 0x127   : > { %vm519_vm5 = vcmp.eq.s32.totalorder %v507_v50, 1  ;;  %2254 = vmatprep.subr.bf16.mxu1 %v3790_v36  ;;  %2168 = vmatpush1.bf16.msra.mxu0 %v3740_v44  ;;  %v3805_v44 = vld [vmem:[#allocation10 + $0x3d4] ss:$8 sps:$4 sm:$0xff]   ;;  %v3803_v50 = vld [vmem:[#allocation10 + $0x3d0] ss:$8 sps:$4 sm:$0xff]  }
 0x128   : > { %vm3257_vm7 = vmpackc.low %vm519_vm5, %vm518_vm6  ;;  %2169 = vmatprep.subr.bf16.mxu0 %v3745_v45 }
 0x129   : > { %3259 = vmatprep.mubr.msk.bf16.mxu1 %vm3257_vm7, %v3258_v20  ;;  %v427_v42 = vpop.permute.xlu0 %426  ;;  %vm3308_vm5 = vmpackc.low %vm750_vm1, %vm749_vm2 }
 0x12a   : > { %v430_v41 = vpop.permute.xlu1 %429  ;;  %2255 = vmatpush1.bf16.msra.mxu1 %v3788_v12  ;;  %vm441_vm11 = vcmp.eq.s32.totalorder %v427_v42, 1 }
 0x12b   : > { %vm442_vm10 = vcmp.eq.s32.totalorder %v430_v41, 1  ;;  %2170 = vmatpush1.bf16.msra.mxu0 %v3743_v13 }
 0x12c   : > { %vm3260_vm14 = vmpackc.low %vm442_vm10, %vm441_vm11  ;;  %2171 = vmatprep.subr.bf16.mxu0 %v3751_v32  ;;  %v3811_v32 = vld [vmem:[#allocation10 + $0x3f4] ss:$8 sps:$4 sm:$0xff]  }
 0x12d   : > { %3262 = vmatmul.mubr.msk.bf16.gmra.mrb[8].mxu1 %vm3260_vm14, %v3261_v16  ;;  %v818_v63 = vpop.permute.xlu0 %817  ;;  %3304 = vmatmul.mubr.msk.bf16.gmra.mrb[4].mxu0 %vm3302_vm15, %v3303_v30  ;;  %v3264_v30 = vpack.c.bf16 %v4437_v23, %v3860_v48  ;;  %v3806_v16 = vld [vmem:[#allocation10 + $0x3e0] ss:$8 sps:$4 sm:$0xff]   ;;  %v845_v48 = vld [vmem:[#allocation2 + $0x2f] sm:$0xff] }
 0x12e   : > { %v821_v20 = vpop.permute.xlu1 %820  ;;  %3307 = vmatprep.mubr.msk.bf16.mxu0 %vm3305_vm0, %v3306_v39  ;;  %vm828_vm4 = vcmp.eq.s32.totalorder %v818_v63, 1  ;;  %v843_v39 = vld [vmem:[#allocation2 + $0x1f] sm:$0xff] }
 0x12f   : > { %2172 = vmatpush1.bf16.msra.mxu0 %v3749_v38  ;;  %vm829_vm3 = vcmp.eq.s32.totalorder %v821_v20, 1  ;;  %v842_v38 = vld [vmem:[#allocation2 + $0x17] sm:$0xff] }
 0x130   : > { %2173 = vmatprep.subr.bf16.mxu0 %v3757_v10  ;;  %vm3311_vm6 = vmpackc.low %vm829_vm3, %vm828_vm4  ;;  %v921_v10 = vld [vmem:[#allocation2 + $0x28] sm:$0xff]  ;;  %v922_v20 = vld [vmem:[#allocation2 + $0x30] sm:$0xff] }
 0x131   : > { %v741_v33 = vpop.permute.xlu0 %740 }
 0x132   : > { %v744_v60 = vpop.permute.xlu1 %743  ;;  %vm751_vm11 = vcmp.eq.s32.totalorder %v741_v33, 1 }
 0x133   : > { %2174 = vmatpush1.bf16.msra.mxu0 %v3755_v22  ;;  %vm752_vm10 = vcmp.eq.s32.totalorder %v744_v60, 1  ;;  %v3324_v60 = vpack.c.bf16 %v922_v20, %v921_v10 }
 0x134   : > { %2175 = vmatprep.subr.bf16.mxu0 %v3763_v51  ;;  %vm3314_vm15 = vmpackc.low %vm752_vm10, %vm751_vm11  ;;  %v3321_v51 = vpack.c.bf16 %v843_v39, %v842_v38 }
 0x135   : > { %v510_v4 = vpop.permute.xlu0 %509  ;;  %3310 = vmatmul.mubr.msk.bf16.gmra.mrb[8].mxu0 %vm3308_vm5, %v3309_v43 }
 0x136   : > { %v513_v3 = vpop.permute.xlu1 %512  ;;  %vm520_vm8 = vcmp.eq.s32.totalorder %v510_v4, 1  ;;  %3313 = vmatprep.mubr.msk.bf16.mxu0 %vm3311_vm6, %v3312_v47  ;;  %v844_v47 = vld [vmem:[#allocation2 + $0x27] sm:$0xff] }
 0x137   : > { %vm521_vm7 = vcmp.eq.s32.totalorder %v513_v3, 1  ;;  %2176 = vmatpush1.bf16.msra.mxu0 %v3761_v52  ;;  %v1003_v52 = vld [vmem:[#allocation2 + $0x51] sm:$0xff]  ;;  %v3327_v4 = vpack.c.bf16 %v845_v48, %v844_v47 }
 0x138   : > { %vm3263_vm9 = vmpackc.low %vm521_vm7, %vm520_vm8  ;;  %2177 = vmatprep.subr.bf16.mxu0 %v3769_v2  ;;  %v3351_v2 = vpack.c.bf16 %v1003_v52, %v4663_v58  ;;  %v926_v58 = vld [vmem:[#allocation2 + $0x50] sm:$0xff] }
 0x139   : > { %3265 = vmatprep.mubr.msk.bf16.mxu1 %vm3263_vm9, %v3264_v30  ;;  %v433_v23 = vpop.permute.xlu0 %432  ;;  %v923_v30 = vld [vmem:[#allocation2 + $0x38] sm:$0xff] }
 0x13a   : > { %v436_v6 = vpop.permute.xlu1 %435  ;;  %vm443_vm13 = vcmp.eq.s32.totalorder %v433_v23, 1 }
 0x13b   : > { %vm444_vm12 = vcmp.eq.s32.totalorder %v436_v6, 1  ;;  %2178 = vmatpush1.bf16.msra.mxu0 %v3767_v5  ;;  %v3330_v5 = vpack.c.bf16 %v4673_v7, %v923_v30  ;;  %v3863_v6 = vld [vmem:[#allocation2 + $0x3f] sm:$0xff]  ;;  %v3336_v7 = vpack.c.bf16 %v926_v58, %v4675_v11  ;;  %v2355_v11 = vld [vmem:[%s4722_s19 + $0x8] sm:$0xff] }
 0x13c   : > { %vm3266_vm14 = vmpackc.low %vm444_vm12, %vm443_vm13  ;;  %2179 = vmatprep.subr.bf16.mxu0 %v3775_v55  ;;  %v846_v55 = vld [vmem:[#allocation2 + $0x37] sm:$0xff]  ;;  %v372_v30 = vld [vmem:[%s5051_s3] sm:$0x3] }
 0x13d   : > { %3268 = vmatmul.mubr.msk.bf16.gmra.mrb[12].mxu1 %vm3266_vm14, %v3267_v61  ;;  %v954_v17 = vpop.permute.xlu0 %953  ;;  %3316 = vmatmul.mubr.msk.bf16.gmra.mrb[12].mxu0 %vm3314_vm15, %v3315_v14  ;;  %v3793_v61 = vld [vmem:[#allocation10 + $0x394] ss:$8 sps:$4 sm:$0xff]   ;;  %v3333_v23 = vpack.c.bf16 %v3863_v6, %v846_v55 }
 0x13e   : > { %v957_v43 = vpop.permute.xlu1 %956  ;;  %2272 = vmatprep.mubr.bf16.mxu1 %v4014_v0  ;;  %vm976_vm1 = vcmp.eq.s32.totalorder %v954_v17, 1  ;;  %v849_v14 = vld [vmem:[#allocation2 + $0x4f] sm:$0xff]  ;;  %v2357_v17 = vld [vmem:[%s4722_s19 + $0x18] sm:$0xff] }
 0x13f   : > { %vm977_vm0 = vcmp.eq.s32.totalorder %v957_v43, 1  ;;  %2180 = vmatpush1.bf16.msra.mxu0 %v3773_v8  ;;  %v3339_v8 = vpack.c.bf16 %v849_v14, %v4601_v37  ;;  %v2354_v37 = vld [vmem:[%s4722_s19] sm:$0xff]  ;;  %v2356_v43 = vld [vmem:[%s4722_s19 + $0x10] sm:$0xff] }
 0x140   : > { %vm3317_vm2 = vmpackc.low %vm977_vm0, %vm976_vm1  ;;  %2181 = vmatprep.subr.bf16.mxu0 %v3781_v9  ;;  %v2370_v9 = vpack.c.bf16 %v2355_v11, %v2354_v37 }
 0x141   : > { %3319 = vmatprep.mubr.msk.bf16.mxu0 %vm3317_vm2, %v4393_v53  ;;  %v4686_v56 = vpop.permute.xlu0 %876  ;;  %v3796_v53 = vld [vmem:[#allocation10 + $0x3a4] ss:$8 sps:$4 sm:$0xff]  }
 0x142   : > { %v4684_v18 = vpop.permute.xlu1 %879  ;;  %vm899_vm13 = vcmp.eq.s32.totalorder %v4686_v56, 1  ;;  %3386 = vmatprep.subr.bf16.mxu1 %v2370_v9 }
 0x143   : > { %2182 = vmatpush1.bf16.msra.mxu0 %v3779_v54  ;;  %vm900_vm12 = vcmp.eq.s32.totalorder %v4684_v18, 1  ;;  %v2358_v54 = vld [vmem:[%s4722_s19 + $0x20] sm:$0xff]  ;;  %v2359_v18 = vld [vmem:[%s4722_s19 + $0x28] sm:$0xff] }
 0x144   : > { %2183 = vmatprep.subr.bf16.mxu0 %v3787_v15  ;;  %vm3320_vm0 = vmpackc.low %vm900_vm12, %vm899_vm13  ;;  %v2371_v15 = vpack.c.bf16 %v2357_v17, %v2356_v43  ;;  %v2372_v56 = vpack.c.bf16 %v2359_v18, %v2358_v54 }
 0x145   : > { %v1031_v21 = vpop.permute.xlu0 %1030 }
 0x146   : > { %v1034_v19 = vpop.permute.xlu1 %1033  ;;  %vm1053_vm4 = vcmp.eq.s32.totalorder %v1031_v21, 1  ;;  %v2362_v21 = vld [vmem:[%s4722_s19 + $0x40] sm:$0xff] }
 0x147   : > { %vm1054_vm3 = vcmp.eq.s32.totalorder %v1034_v19, 1  ;;  %2184 = vmatpush1.bf16.msra.mxu0 %v3785_v57  ;;  %v2360_v57 = vld [vmem:[%s4722_s19 + $0x30] sm:$0xff] }
 0x148   : > { %vm3341_vm5 = vmpackc.low %vm1054_vm3, %vm1053_vm4  ;;  %2185 = vmatprep.subr.bf16.mxu0 %v3793_v61  ;;  %v2361_v61 = vld [vmem:[%s4722_s19 + $0x38] sm:$0xff] }
 0x149   : > { %3343 = vmatmul.mubr.msk.bf16.vlgmr.msra.gmra.mrb[16].mxu1 %vm3341_vm5, %v4592_v24  ;;  %v960_v27 = vpop.permute.xlu0 %959  ;;  %v3800_v24 = vld [vmem:[#allocation10 + $0x3c0] ss:$8 sps:$4 sm:$0xff]   ;;  %v2373_v19 = vpack.c.bf16 %v2361_v61, %v2360_v57 }
 0x14a   : > { %v963_v26 = vpop.permute.xlu1 %962  ;;  %2282 = vmatprep.mubr.bf16.mxu1 %v4014_v0  ;;  %vm978_vm15 = vcmp.eq.s32.totalorder %v960_v27, 1  ;;  %3387 = vmatpush3.bf16.msra.mxu1 %v2370_v9  ;;  %v2365_v27 = vld [vmem:[%s4722_s19 + $0x58] sm:$0xff] }
 0x14b   : > { %2186 = vmatpush1.bf16.msra.mxu0 %v3791_v25  ;;  %vm979_vm14 = vcmp.eq.s32.totalorder %v963_v26, 1  ;;  %3388 = vmatprep.subr.bf16.mxu1 %v2371_v15  ;;  %v2363_v25 = vld [vmem:[%s4722_s19 + $0x48] sm:$0xff]  ;;  %v2364_v26 = vld [vmem:[%s4722_s19 + $0x50] sm:$0xff] }
 0x14c   : > { %2187 = vmatprep.subr.bf16.mxu0 %v3796_v53  ;;  %vm3323_vm1 = vmpackc.low %vm979_vm14, %vm978_vm15  ;;  %v2374_v53 = vpack.c.bf16 %v2363_v25, %v2362_v21 }
 0x14d   : > { %v4692_v29 = vpop.permute.xlu0 %882 }
 0x14e   : > { %v4690_v62 = vpop.permute.xlu1 %885  ;;  %vm901_vm3 = vcmp.eq.s32.totalorder %v4692_v29, 1  ;;  %3389 = vmatpush3.bf16.msra.mxu1 %v2371_v15 }
 0x14f   : > { %2188 = vmatpush1.bf16.msra.mxu0 %v3794_v28  ;;  %vm902_vm2 = vcmp.eq.s32.totalorder %v4690_v62, 1  ;;  %3390 = vmatprep.subr.bf16.mxu1 %v2372_v56  ;;  %v2375_v28 = vpack.c.bf16 %v2365_v27, %v2364_v26  ;;  %v2367_v62 = vld [vmem:[%s4722_s19 + $0x68] sm:$0xff] }
 0x150   : > { %2189 = vmatprep.subr.bf16.mxu0 %v3799_v49  ;;  %v2366_v49 = vld [vmem:[%s4722_s19 + $0x60] sm:$0xff] }
 0x151   : > { %v1037_v36 = vpop.permute.xlu0 %1036  ;;  %v2376_v29 = vpack.c.bf16 %v2367_v62, %v2366_v49 }
 0x152   : > { %v1040_v35 = vpop.permute.xlu1 %1039  ;;  %vm1055_vm7 = vcmp.eq.s32.totalorder %v1037_v36, 1  ;;  %3391 = vmatpush3.bf16.msra.mxu1 %v2372_v56 }
 0x153   : > { %vm1056_vm6 = vcmp.eq.s32.totalorder %v1040_v35, 1  ;;  %2190 = vmatpush1.bf16.msra.mxu0 %v3797_v31  ;;  %3392 = vmatprep.subr.bf16.mxu1 %v2373_v19  ;;  %v2368_v31 = vld [vmem:[%s4722_s19 + $0x70] sm:$0xff] }
 0x154   : > { %vm3344_vm8 = vmpackc.low %vm1056_vm6, %vm1055_vm7  ;;  %2191 = vmatprep.subr.bf16.mxu0 %v3802_v34  ;;  %v2369_v34 = vld [vmem:[%s4722_s19 + $0x78] sm:$0xff]  ;;  %s2881_s19 = scalar_lea.sflag [#allocation9], %s4213_s30 }
 0x155   : > { %3346 = vmatmul.mubr.msk.bf16.gmra.mrb[20].mxu1 %vm3344_vm8, %v4605_v40  ;;  %v966_v45 = vpop.permute.xlu0 %965  ;;  %v3809_v40 = vld [vmem:[#allocation10 + $0x3f0] ss:$8 sps:$4 sm:$0xff]   ;;  %v2377_v35 = vpack.c.bf16 %v2369_v34, %v2368_v31 }
 0x156   : > { %v969_v46 = vpop.permute.xlu1 %968  ;;  %2292 = vmatprep.mubr.bf16.mxu1 %v4014_v0  ;;  %vm980_vm6 = vcmp.eq.s32.totalorder %v966_v45, 1  ;;  %3393 = vmatpush3.bf16.msra.mxu1 %v2373_v19 }
 0x157   : > { %2192 = vmatpush1.bf16.msra.mxu0 %v3800_v24  ;;  %vm981_vm5 = vcmp.eq.s32.totalorder %v969_v46, 1  ;;  %3394 = vmatprep.subr.bf16.mxu1 %v2374_v53 }
 0x158   : > { %2193 = vmatprep.subr.bf16.mxu0 %v3805_v44 }
 0x159   : > { %v4698_v13 = vpop.permute.xlu0 %888 }
 0x15a   : > { %v4696_v12 = vpop.permute.xlu1 %891  ;;  %vm903_vm12 = vcmp.eq.s32.totalorder %v4698_v13, 1  ;;  %3395 = vmatpush3.bf16.msra.mxu1 %v2374_v53 }
 0x15b   : > { %2194 = vmatpush1.bf16.msra.mxu0 %v3803_v50  ;;  %3396 = vmatprep.subr.bf16.mxu1 %v2375_v28 }
 0x15c   : > { %2195 = vmatprep.subr.bf16.mxu0 %v3808_v59 }
 0x15d   : > { %v1043_v42 = vpop.permute.xlu0 %1042 }
 0x15e   : > { %v1046_v41 = vpop.permute.xlu1 %1045  ;;  %vm1057_vm10 = vcmp.eq.s32.totalorder %v1043_v42, 1  ;;  %3397 = vmatpush3.bf16.msra.mxu1 %v2375_v28 }
 0x15f   : > { %vm1058_vm9 = vcmp.eq.s32.totalorder %v1046_v41, 1  ;;  %2196 = vmatpush1.bf16.msra.mxu0 %v3806_v16  ;;  %3398 = vmatprep.subr.bf16.mxu1 %v2376_v29 }
 0x160   : > { %vm3347_vm11 = vmpackc.low %vm1058_vm9, %vm1057_vm10  ;;  %2197 = vmatprep.subr.bf16.mxu0 %v3811_v32 }
 0x161   : > { %3349 = vmatmul.mubr.msk.bf16.gmra.mrb[24].mxu1 %vm3347_vm11, %v4616_v1  ;;  %v972_v22 = vpop.permute.xlu0 %971  ;;  %vm3326_vm9 = vmpackc.low %vm902_vm2, %vm901_vm3  ;;  %vm904_vm11 = vcmp.eq.s32.totalorder %v4696_v12, 1 }
 0x162   : > { %v975_v63 = vpop.permute.xlu1 %974  ;;  %2302 = vmatprep.mubr.bf16.mxu1 %v4014_v0  ;;  %vm3329_vm10 = vmpackc.low %vm981_vm5, %vm980_vm6  ;;  %vm982_vm14 = vcmp.eq.s32.totalorder %v972_v22, 1  ;;  %3399 = vmatpush3.bf16.msra.mxu1 %v2376_v29 }
 0x163   : > { %2198 = vmatpush1.bf16.msra.mxu0 %v3809_v40  ;;  %vm983_vm13 = vcmp.eq.s32.totalorder %v975_v63, 1  ;;  %vm3332_vm15 = vmpackc.low %vm904_vm11, %vm903_vm12  ;;  %3400 = vmatprep.subr.bf16.mxu1 %v2377_v35 }
 0x165   : > { %v895_v1 = vpop.permute.xlu0 %894 }
 0x166   : > { %v898_v33 = vpop.permute.xlu1 %897  ;;  %3322 = vmatmul.mubr.msk.bf16.vlgmr.msra.gmra.mrb[0].mxu0 %vm3320_vm0, %v3321_v51  ;;  %vm3335_vm0 = vmpackc.low %vm983_vm13, %vm982_vm14  ;;  %vm905_vm2 = vcmp.eq.s32.totalorder %v895_v1, 1  ;;  %3401 = vmatpush3.bf16.msra.mxu1 %v2377_v35 }
 0x167   : > { %3325 = vmatprep.mubr.msk.bf16.mxu0 %vm3323_vm1, %v3324_v60  ;;  %vm906_vm1 = vcmp.eq.s32.totalorder %v898_v33, 1  ;;  %v1218_v60 = vlaneseq }
 0x168   : > { %vm3338_vm3 = vmpackc.low %vm906_vm1, %vm905_vm2 }
 0x169   : > { %v1049_v3 = vpop.permute.xlu0 %1048  ;;  %v1219_v47 = vshrl.u32 %v1218_v60, 7 }
 0x16a   : > { %v1052_v0 = vpop.permute.xlu1 %1051  ;;  %vm1059_vm7 = vcmp.eq.s32.totalorder %v1049_v3, 1 }
 0x16b   : > { %vm1060_vm4 = vcmp.eq.s32.totalorder %v1052_v0, 1  ;;  %v1220_v48 = vsub.s32 0, %v1219_v47  ;;  %v1224_v0 = vsub.s32 1, %v1219_v47 }
 0x16c   : > { %vm3350_vm8 = vmpackc.low %vm1060_vm4, %vm1059_vm7  ;;  %vm2329_vm4 = vcmask 7168  }
 0x16d   : > { %3352 = vmatmul.mubr.msk.bf16.gmra.mrb[28].mxu1 %vm3350_vm8, %v3351_v2  ;;  %v4759_v3 = vrot.slane %v372_v30, %v1220_v48 }
 0x16e   : > { %3328 = vmatmul.mubr.msk.bf16.gmra.mrb[4].mxu0 %vm3326_vm9, %v3327_v4 }
 0x16f   : > { %3331 = vmatprep.mubr.msk.bf16.mxu0 %vm3329_vm10, %v3330_v5  ;;  %v4761_v5 = vrot.slane %v372_v30, %v1224_v0 }
 0x176   : > { %3334 = vmatmul.mubr.msk.bf16.gmra.mrb[8].mxu0 %vm3332_vm15, %v3333_v23 }
 0x177   : > { %3337 = vmatprep.mubr.msk.bf16.mxu0 %vm3335_vm0, %v3336_v7 }
 0x17e   : > { %3340 = vmatmul.mubr.msk.bf16.gmra.mrb[12].mxu0 %vm3338_vm3, %v3339_v8 }
 0x1e0   : > { %v1982_v36 = vpop.f32.mrb[0].mxu1 }
 0x1e1   : > { %v1984_v24 = vpop.f32.mrb[1].mxu1  ;;  %v1983_v6 = vadd.f32 %v1982_v36, %v4759_v3 }
 0x1e2   : > { %v1986_v44 = vpop.f32.mrb[2].mxu1  ;;  %v1985_v23 = vadd.f32 %v1984_v24, %v4761_v5 }
 0x1e3   : > { %v1988_v46 = vpop.f32.mrb[3].mxu1  ;;  %v1987_v14 = vadd.f32 %v1986_v44, %v4759_v3 }
 0x1e4   : > { %v1989_v11 = vadd.f32 %v1988_v46, %v4761_v5 }
 0x1f0   : > { %v1992_v45 = vpop.f32.mrb[4].mxu1 }
 0x1f1   : > { %v1994_v50 = vpop.f32.mrb[5].mxu1  ;;  %v1993_v19 = vadd.f32 %v1992_v45, %v4759_v3 }
 0x1f2   : > { %v1996_v59 = vpop.f32.mrb[6].mxu1  ;;  %v1995_v53 = vadd.f32 %v1994_v50, %v4761_v5 }
 0x1f3   : > { %v1998_v12 = vpop.f32.mrb[7].mxu1  ;;  %v1997_v28 = vadd.f32 %v1996_v59, %v4759_v3 }
 0x1f4   : > { %v1999_v31 = vadd.f32 %v1998_v12, %v4761_v5 }
 0x200   : > { %v4740_v13 = vpop.f32.mrb[8].mxu1 }
 0x201   : > { %v4742_v16 = vpop.f32.mrb[9].mxu1  ;;  %v2003_v59 = vadd.f32 %v4740_v13, %v4759_v3 }
 0x202   : > { %v4744_v32 = vpop.f32.mrb[10].mxu1 }
 0x203   : > { %v4746_v41 = vpop.f32.mrb[11].mxu1 }
 0x210   : > { %v4748_v42 = vpop.f32.mrb[12].mxu1 }
 0x211   : > { %v4750_v40 = vpop.f32.mrb[13].mxu1 }
 0x212   : > { %v4752_v38 = vpop.f32.mrb[14].mxu1 }
 0x213   : > { %v4754_v39 = vpop.f32.mrb[15].mxu1 }
 0x21c   : > { %v2274_v10 = vpop.f32.mrb[16].mxu1 }
 0x21d   : > { %v2276_v20 = vpop.f32.mrb[17].mxu1 }
 0x21e   : > { %v2278_v63 = vpop.f32.mrb[18].mxu1 }
 0x21f   : > { %v2280_v22 = vpop.f32.mrb[19].mxu1 }
 0x228   : > { %v2284_v51 = vpop.f32.mrb[20].mxu1 }
 0x229   : > { %v2286_v33 = vpop.f32.mrb[21].mxu1 }
 0x22a   : > { %v2288_v1 = vpop.f32.mrb[22].mxu1 }
 0x22b   : > { %v2290_v52 = vpop.f32.mrb[23].mxu1 }
 0x234   : > { %v2294_v2 = vpop.f32.mrb[24].mxu1 }
 0x235   : > { %v2296_v4 = vpop.f32.mrb[25].mxu1 }
 0x236   : > { %v2298_v55 = vpop.f32.mrb[26].mxu1 }
 0x237   : > { %v4763_v58 = vpop.f32.mrb[27].mxu1 }
 0x239   : > { %v2201_v7 = vpop.f32.mrb[0].mxu0 }
 0x23a   : > { %v3435_v8 = vadd.f32 %v2201_v7, %v1983_v6  ;;  %v2203_v37 = vpop.f32.mrb[1].mxu0 }
 0x23b   : > { %v3438_v9 = vadd.f32 %v2203_v37, %v1985_v23  ;;  %v2205_v43 = vpop.f32.mrb[2].mxu0 }
 0x23c   : > { %v3436_v17 = vadd.f32 %v3435_v8, %v2274_v10  ;;  %v3441_v54 = vadd.f32 %v2205_v43, %v1987_v14  ;;  %v2207_v15 = vpop.f32.mrb[3].mxu0  ;;  %v2015_v14 = vadd.f32 %v4750_v40, %v4761_v5 }
 0x23d   : > { %v3439_v18 = vadd.f32 %v3438_v9, %v2276_v20  ;;  %v3444_v56 = vadd.f32 %v2207_v15, %v1989_v11 }
 0x23e   : > { %v3442_v57 = vadd.f32 %v3441_v54, %v2278_v63 }
 0x23f   : > { %2321 = vst [vmem:[%s4770_s18 + $0x8] sm:$0xff] %v3439_v18  ;;  %v3445_v61 = vadd.f32 %v3444_v56, %v2280_v22  ;;  %v2005_v22 = vadd.f32 %v4742_v16, %v4761_v5 }
 0x240   : > { %v2304_v21 = vpop.f32.mrb[28].mxu1  ;;  %v2313_v25 = vpack.c.bf16 %v3442_v57, %v3436_v17 }
 0x241   : > { %2322 = vst [vmem:[%s4770_s18 + $0x18] sm:$0xff] %v3445_v61  ;;  %v2211_v26 = vpop.f32.mrb[4].mxu0  ;;  %v2306_v27 = vpop.f32.mrb[29].mxu1 }
 0x242   : > { %v3447_v49 = vadd.f32 %v2211_v26, %v1993_v19  ;;  %v2213_v62 = vpop.f32.mrb[5].mxu0  ;;  %3402 = vmatprep.mubr.bf16.mxu1 %v2313_v25  ;;  %v2308_v29 = vpop.f32.mrb[30].mxu1 }
 0x243   : > { %v3450_v34 = vadd.f32 %v2213_v62, %v1995_v53  ;;  %v2215_v35 = vpop.f32.mrb[6].mxu0  ;;  %v2310_v36 = vpop.f32.mrb[31].mxu1 }
 0x244   : > { %v3448_v24 = vadd.f32 %v3447_v49, %v2284_v51  ;;  %v3453_v44 = vadd.f32 %v2215_v35, %v1997_v28  ;;  %v2217_v46 = vpop.f32.mrb[7].mxu0  ;;  %v2007_v51 = vadd.f32 %v4744_v32, %v4759_v3  ;;  %v2013_v32 = vadd.f32 %v4748_v42, %v4759_v3  ;;  %v2380_v35 = vld [vmem:[%s4846_s29 + $0x10] sm:$0xff] }
 0x245   : > { %v3451_v45 = vadd.f32 %v3450_v34, %v2286_v33  ;;  %v3456_v50 = vadd.f32 %v2217_v46, %v1999_v31  ;;  %v2009_v33 = vadd.f32 %v4746_v41, %v4761_v5  ;;  %v2378_v31 = vld [vmem:[%s4846_s29] sm:$0xff]  ;;  %v2379_v34 = vld [vmem:[%s4846_s29 + $0x8] sm:$0xff] }
 0x246   : > { %v3454_v10 = vadd.f32 %v3453_v44, %v2288_v1  ;;  %v2382_v46 = vld [vmem:[%s4846_s29 + $0x20] sm:$0xff] }
 0x247   : > { %2323 = vst [vmem:[%s4770_s18 + $0x28] sm:$0xff] %v3451_v45  ;;  %v3457_v20 = vadd.f32 %v3456_v50, %v2290_v52  ;;  %v2383_v45 = vld [vmem:[%s4846_s29 + $0x28] sm:$0xff] }
 0x248   : > { %v2314_v63 = vpack.c.bf16 %v3454_v10, %v3448_v24  ;;  %v2381_v24 = vld [vmem:[%s4846_s29 + $0x18] sm:$0xff]  ;;  %v2396_v50 = vpack.c.bf16 %v2383_v45, %v2382_v46  ;;  %v2384_v10 = vld [vmem:[%s4846_s29 + $0x30] sm:$0xff] }
 0x249   : > { %2324 = vst [vmem:[%s4770_s18 + $0x38] sm:$0xff] %v3457_v20  ;;  %v2221_v12 = vpop.f32.mrb[8].mxu0  ;;  %v2395_v44 = vpack.c.bf16 %v2381_v24, %v2380_v35  ;;  %v2385_v20 = vld [vmem:[%s4846_s29 + $0x38] sm:$0xff] }
 0x24a   : > { %v3459_v60 = vadd.f32 %v2221_v12, %v2003_v59  ;;  %v2223_v47 = vpop.f32.mrb[9].mxu0  ;;  %3403 = vmatmul.mubr.bf16.vlgmr.msra.gmra.mrb[32].mxu1 %v2314_v63  ;;  %v2397_v59 = vpack.c.bf16 %v2385_v20, %v2384_v10  ;;  %v2386_v63 = vld [vmem:[%s4846_s29 + $0x40] sm:$0xff] }
 0x24b   : > { %v3462_v1 = vadd.f32 %v2223_v47, %v2005_v22  ;;  %v2225_v52 = vpop.f32.mrb[10].mxu0  ;;  %v2387_v22 = vld [vmem:[%s4846_s29 + $0x48] sm:$0xff] }
 0x24c   : > { %v3460_v13 = vadd.f32 %v3459_v60, %v2294_v2  ;;  %v3465_v48 = vadd.f32 %v2225_v52, %v2007_v51  ;;  %v2227_v30 = vpop.f32.mrb[11].mxu0  ;;  %v2017_v2 = vadd.f32 %v4752_v38, %v4759_v3  ;;  %v4015_v38 = vmov -inf   ;;  %v2389_v52 = vld [vmem:[%s4846_s29 + $0x58] sm:$0xff] }
 0x24d   : > { %v3463_v0 = vadd.f32 %v3462_v1, %v2296_v4  ;;  %v3468_v16 = vadd.f32 %v2227_v30, %v2009_v33  ;;  %2330 = vst.msk [vmem:[#allocation4] sm:$0xff] %vm2329_vm4, %v4015_v38  ;;  %2331 = vst.msk [vmem:[#allocation4 + $0x8] sm:$0xff] %vm2329_vm4, %v4015_v38  ;;  %v2398_v12 = vpack.c.bf16 %v2387_v22, %v2386_v63  ;;  %v2388_v1 = vld [vmem:[%s4846_s29 + $0x50] sm:$0xff] }
 0x24e   : > { %v3466_v6 = vadd.f32 %v3465_v48, %v2298_v55  ;;  %v2019_v55 = vadd.f32 %v4754_v39, %v4761_v5  ;;  %2332 = vst.msk [vmem:[#allocation4 + $0x10] sm:$0xff] %vm2329_vm4, %v4015_v38  ;;  %2333 = vst.msk [vmem:[#allocation4 + $0x18] sm:$0xff] %vm2329_vm4, %v4015_v38  ;;  %v2399_v30 = vpack.c.bf16 %v2389_v52, %v2388_v1 }
 0x24f   : > { %2325 = vst [vmem:[%s4770_s18 + $0x48] sm:$0xff] %v3463_v0  ;;  %v3469_v23 = vadd.f32 %v3468_v16, %v4763_v58  ;;  %2334 = vst.msk [vmem:[#allocation4 + $0x20] sm:$0xff] %vm2329_vm4, %v4015_v38 }
 0x250   : > { %v2315_v7 = vpack.c.bf16 %v3466_v6, %v3460_v13  ;;  %2335 = vst.msk [vmem:[#allocation4 + $0x28] sm:$0xff] %vm2329_vm4, %v4015_v38  ;;  %2336 = vst.msk [vmem:[#allocation4 + $0x30] sm:$0xff] %vm2329_vm4, %v4015_v38 }
 0x251   : > { %2326 = vst [vmem:[%s4770_s18 + $0x58] sm:$0xff] %v3469_v23  ;;  %v2231_v41 = vpop.f32.mrb[12].mxu0  ;;  %2337 = vst.msk [vmem:[#allocation4 + $0x38] sm:$0xff] %vm2329_vm4, %v4015_v38 }
 0x252   : > { %v3471_v4 = vadd.f32 %v2231_v41, %v2013_v32  ;;  %v2233_v8 = vpop.f32.mrb[13].mxu0  ;;  %3406 = vmatprep.mubr.bf16.mxu1 %v2315_v7 }
 0x253   : > { %v3474_v58 = vadd.f32 %v2233_v8, %v2015_v14  ;;  %v2235_v37 = vpop.f32.mrb[14].mxu0  ;;  %v2391_v8 = vld [vmem:[%s4846_s29 + $0x68] sm:$0xff] }
 0x254   : > { %v3472_v42 = vadd.f32 %v3471_v4, %v2304_v21  ;;  %v3477_v11 = vadd.f32 %v2235_v37, %v2017_v2  ;;  %v2237_v9 = vpop.f32.mrb[15].mxu0  ;;  %v4858_v51 = vld [vmem:[#allocation4] sm:$0xff]  ;;  %v4860_v47 = vld [vmem:[#allocation4 + $0x8] sm:$0xff] }
 0x255   : > { %v3475_v43 = vadd.f32 %v3474_v58, %v2306_v27  ;;  %v3480_v40 = vadd.f32 %v2237_v9, %v2019_v55  ;;  %v4867_v48 = vld [vmem:[#allocation4 + $0x10] sm:$0xff]  ;;  %v4885_v7 = vld [vmem:[#allocation4 + $0x18] sm:$0xff]  ;;  %v2390_v4 = vld [vmem:[%s4846_s29 + $0x60] sm:$0xff] }
 0x256   : > { %v3478_v17 = vadd.f32 %v3477_v11, %v2308_v29  ;;  %v4016_v29 = vmov 0.0   ;;  %v2400_v55 = vpack.c.bf16 %v2391_v8, %v2390_v4  ;;  %v4902_v37 = vld [vmem:[#allocation4 + $0x20] sm:$0xff] }
 0x257   : > { %2327 = vst [vmem:[%s4770_s18 + $0x68] sm:$0xff] %v3475_v43  ;;  %v3481_v54 = vadd.f32 %v3480_v40, %v2310_v36  ;;  %2339 = vst.msk [vmem:[#allocation5 + $0x8] sm:$0xff] %vm2329_vm4, %v4016_v29  ;;  %v2394_v36 = vpack.c.bf16 %v2379_v34, %v2378_v31  ;;  %v4904_v11 = vld [vmem:[#allocation4 + $0x28] sm:$0xff]  ;;  %v2392_v43 = vld [vmem:[%s4846_s29 + $0x70] sm:$0xff] }
 0x258   : > { %v2316_v15 = vpack.c.bf16 %v3478_v17, %v3472_v42  ;;  %2338 = vst.msk [vmem:[#allocation5] sm:$0xff] %vm2329_vm4, %v4016_v29  ;;  %2340 = vst.msk [vmem:[#allocation5 + $0x10] sm:$0xff] %vm2329_vm4, %v4016_v29  ;;  %v2393_v40 = vld [vmem:[%s4846_s29 + $0x78] sm:$0xff] }
 0x259   : > { %2328 = vst [vmem:[%s4770_s18 + $0x78] sm:$0xff] %v3481_v54  ;;  %2341 = vst.msk [vmem:[#allocation5 + $0x18] sm:$0xff] %vm2329_vm4, %v4016_v29  ;;  %3410 = vmatprep.subr.bf16.mxu1 %v2394_v36  ;;  %v4911_v54 = vld [vmem:[#allocation4 + $0x30] sm:$0xff] }
 0x25a   : > { %3407 = vmatmul.mubr.bf16.gmra.mrb[36].mxu1 %v2316_v15  ;;  %2342 = vst.msk [vmem:[#allocation5 + $0x20] sm:$0xff] %vm2329_vm4, %v4016_v29  ;;  %2343 = vst.msk [vmem:[#allocation5 + $0x28] sm:$0xff] %vm2329_vm4, %v4016_v29  ;;  %v2401_v15 = vpack.c.bf16 %v2393_v40, %v2392_v43 }
 0x25b   : > { %2344 = vst.msk [vmem:[#allocation5 + $0x30] sm:$0xff] %vm2329_vm4, %v4016_v29  ;;  %2345 = vst.msk [vmem:[#allocation5 + $0x38] sm:$0xff] %vm2329_vm4, %v4016_v29  ;;  %3411 = vmatpush3.bf16.xpose.msra.mxu1 %v2394_v36 }
 0x25c   : > { %3412 = vmatprep.subr.bf16.mxu1 %v2395_v44 }
 0x263   : > { %3413 = vmatpush3.bf16.xpose.msra.mxu1 %v2395_v44 }
 0x264   : > { %3414 = vmatprep.subr.bf16.mxu1 %v2396_v50 }
 0x26b   : > { %3415 = vmatpush3.bf16.xpose.msra.mxu1 %v2396_v50 }
 0x26c   : > { %3416 = vmatprep.subr.bf16.mxu1 %v2397_v59 }
 0x273   : > { %3417 = vmatpush3.bf16.xpose.msra.mxu1 %v2397_v59 }
 0x274   : > { %3418 = vmatprep.subr.bf16.mxu1 %v2398_v12 }
 0x27b   : > { %3419 = vmatpush3.bf16.xpose.msra.mxu1 %v2398_v12 }
 0x27c   : > { %3420 = vmatprep.subr.bf16.mxu1 %v2399_v30 }
 0x283   : > { %3421 = vmatpush3.bf16.xpose.msra.mxu1 %v2399_v30 }
 0x284   : > { %3422 = vmatprep.subr.bf16.mxu1 %v2400_v55 }
 0x28b   : > { %3423 = vmatpush3.bf16.xpose.msra.mxu1 %v2400_v55 }
 0x28c   : > { %3424 = vmatprep.subr.bf16.mxu1 %v2401_v15 }
 0x293   : > { %3425 = vmatpush3.bf16.xpose.msra.mxu1 %v2401_v15 }
 0x31d   : > { %v3404_v39 = vpop.f32.mrb[32].mxu1 }
 0x31e   : > { %v2440_v3 = vpop.f32.mrb[33].mxu1  ;;  %v4814_v61 = vmul.f32 0.088388346, %v3404_v39 }
 0x31f   : > { %v4809_v5 = vmul.f32 0.088388346, %v2440_v3  ;;  %v3405_v18 = vpop.f32.mrb[34].mxu1 }
 0x320   : > { %v2443_v56 = vpop.f32.mrb[35].mxu1  ;;  %v4818_v19 = vmul.f32 0.088388346, %v3405_v18  ;;  %v4921_v18 = vld [vmem:[#allocation4 + $0x38] sm:$0xff] }
 0x321   : > { %v4811_v57 = vmul.f32 0.088388346, %v2443_v56  ;;  %2487 = vmax.xlane.f32.xlu0 %v4809_v5 }
 0x323   : > { %2489 = vmax.xlane.f32.xlu1 %v4811_v57 }
 0x325   : > { %2491 = vmax.xlane.f32.xlu0 %v4814_v61 }
 0x329   : > { %2493 = vmax.xlane.f32.xlu0 %v4818_v19 }
 0x32d   : > { %v3408_v21 = vpop.f32.mrb[36].mxu1 }
 0x32e   : > { %v2456_v25 = vpop.f32.mrb[37].mxu1  ;;  %v4826_v49 = vmul.f32 0.088388346, %v3408_v21 }
 0x32f   : > { %v4821_v53 = vmul.f32 0.088388346, %v2456_v25  ;;  %v3409_v26 = vpop.f32.mrb[38].mxu1 }
 0x330   : > { %v2459_v27 = vpop.f32.mrb[39].mxu1  ;;  %v4829_v62 = vmul.f32 0.088388346, %v3409_v26 }
 0x331   : > { %v4823_v28 = vmul.f32 0.088388346, %v2459_v27  ;;  %2495 = vmax.xlane.f32.xlu1 %v4821_v53 }
 0x333   : > { %2497 = vmax.xlane.f32.xlu0 %v4823_v28 }
 0x335   : > { %2499 = vmax.xlane.f32.xlu1 %v4826_v49 }
 0x337   : > { %2501 = vmax.xlane.f32.xlu0 %v4829_v62 }
 0x3ae   : > { %v2488_v60 = vpop.xlane.xlu0 %2487 }
 0x3af   : > { %v4863_v33 = vmax.f32 %v4858_v51, %v2488_v60 }
 0x3b0   : > { %v2490_v13 = vpop.xlane.xlu1 %2489 }
 0x3b1   : > { %v2511_v0 = vsub.f32 %v4858_v51, %v4863_v33  ;;  %2789 = vst.msk [vmem:[#allocation4] sm:$0xff] %vm2329_vm4, %v4863_v33  ;;  %v4874_v16 = vmax.f32 %v4860_v47, %v2490_v13  ;;  %2537 = vperm.xlu1 %3595, %v4863_v33  }
 0x3b2   : > { %v2492_v6 = vpop.xlane.xlu0 %2491 }
 0x3b3   : > { %v2512_v23 = vsub.f32 %v4860_v47, %v4874_v16  ;;  %2790 = vst.msk [vmem:[#allocation4 + $0x8] sm:$0xff] %vm2329_vm4, %v4874_v16  ;;  %v4882_v32 = vmax.f32 %v4867_v48, %v2492_v6  ;;  %2542 = vperm.xlu0 %3594, %v4874_v16  }
 0x3b5   : > { %v2513_v14 = vsub.f32 %v4867_v48, %v4882_v32  ;;  %2791 = vst.msk [vmem:[#allocation4 + $0x10] sm:$0xff] %vm2329_vm4, %v4882_v32  ;;  %2547 = vperm.xlu1 %3595, %v4882_v32  }
 0x3b6   : > { %v2494_v41 = vpop.xlane.xlu0 %2493 }
 0x3b7   : > { %v4893_v2 = vmax.f32 %v4885_v7, %v2494_v41  ;;  %v2523_v15 = vmul.f32 1.442695, %v2513_v14 }
 0x3b9   : > { %v2514_v58 = vsub.f32 %v4885_v7, %v4893_v2  ;;  %2792 = vst.msk [vmem:[#allocation4 + $0x18] sm:$0xff] %vm2329_vm4, %v4893_v2  ;;  %2552 = vperm.xlu1 %3595, %v4893_v2  }
 0x3be   : > { %v2496_v42 = vpop.xlane.xlu1 %2495 }
 0x3bf   : > { %v4907_v9 = vmax.f32 %v4902_v37, %v2496_v42 }
 0x3c0   : > { %v2498_v17 = vpop.xlane.xlu0 %2497 }
 0x3c1   : > { %v2515_v38 = vsub.f32 %v4902_v37, %v4907_v9  ;;  %2793 = vst.msk [vmem:[#allocation4 + $0x20] sm:$0xff] %vm2329_vm4, %v4907_v9  ;;  %v4918_v39 = vmax.f32 %v4904_v11, %v2498_v17  ;;  %2557 = vperm.xlu0 %3594, %v4907_v9   ;;  %v2600_v37 = vld [vmem:[#allocation5 + $0x8] sm:$0xff] }
 0x3c2   : > { %v2500_v3 = vpop.xlane.xlu1 %2499 }
 0x3c3   : > { %v2516_v56 = vsub.f32 %v4904_v11, %v4918_v39  ;;  %2794 = vst.msk [vmem:[#allocation4 + $0x28] sm:$0xff] %vm2329_vm4, %v4918_v39  ;;  %v4928_v21 = vmax.f32 %v4911_v54, %v2500_v3  ;;  %2562 = vperm.xlu1 %3595, %v4918_v39   ;;  %v2521_v3 = vmul.f32 1.442695, %v2512_v23  ;;  %v2527_v51 = vmul.f32 1.442695, %v2515_v38  ;;  %v2601_v11 = vld [vmem:[#allocation5 + $0x10] sm:$0xff] }
 0x3c4   : > { %v2502_v25 = vpop.xlane.xlu0 %2501 }
 0x3c5   : > { %v2517_v26 = vsub.f32 %v4911_v54, %v4928_v21  ;;  %2795 = vst.msk [vmem:[#allocation4 + $0x30] sm:$0xff] %vm2329_vm4, %v4928_v21  ;;  %v4936_v27 = vmax.f32 %v4921_v18, %v2502_v25  ;;  %2567 = vperm.xlu0 %3594, %v4928_v21   ;;  %v2525_v25 = vmul.f32 1.442695, %v2514_v58  ;;  %v2529_v33 = vmul.f32 1.442695, %v2516_v56  ;;  %v2599_v56 = vld [vmem:[#allocation5] sm:$0xff] }
 0x3c7   : > { %v2518_v29 = vsub.f32 %v4921_v18, %v4936_v27  ;;  %2796 = vst.msk [vmem:[#allocation4 + $0x38] sm:$0xff] %vm2329_vm4, %v4936_v27  ;;  %2572 = vperm.xlu1 %3595, %v4936_v27   ;;  %v2531_v47 = vmul.f32 1.442695, %v2517_v26 }
 0x430   : > { %v2538_v31 = vpop.permute.xlu1 %2537 }
 0x431   : > { %v2575_v34 = vsub.f32 %v4809_v5, %v2538_v31 }
 0x432   : > { %v2543_v35 = vpop.permute.xlu0 %2542 }
 0x433   : > { %v2583_v36 = vmul.f32 1.442695, %v2575_v34  ;;  %v2576_v24 = vsub.f32 %v4811_v57, %v2543_v35 }
 0x434   : > { %v2548_v44 = vpop.permute.xlu1 %2547 }
 0x435   : > { %v2585_v46 = vmul.f32 1.442695, %v2576_v24  ;;  %v2577_v45 = vsub.f32 %v4814_v61, %v2548_v44  ;;  %3812 = vpow2.f32 %v2583_v36  ;;  %v2603_v36 = vld [vmem:[#allocation5 + $0x20] sm:$0xff] }
 0x437   : > { %3814 = vpow2.f32 %v2585_v46  ;;  %v2587_v50 = vmul.f32 1.442695, %v2577_v45  ;;  %v2604_v46 = vld [vmem:[#allocation5 + $0x28] sm:$0xff] }
 0x438   : > { %v2553_v10 = vpop.permute.xlu1 %2552 }
 0x439   : > { %3816 = vpow2.f32 %v2587_v50  ;;  %v2578_v20 = vsub.f32 %v4818_v19, %v2553_v10  ;;  %v2605_v10 = vld [vmem:[#allocation5 + $0x30] sm:$0xff] }
 0x43b   : > { %v2589_v59 = vmul.f32 1.442695, %v2578_v20 }
 0x43d   : > { %3818 = vpow2.f32 %v2589_v59 }
 0x43f   : > { %v3813_v63 = vpop.eup %3812 }
 0x440   : > { %v2558_v22 = vpop.permute.xlu0 %2557 }
 0x441   : > { %v3815_v5 = vpop.eup %3814  ;;  %v2579_v12 = vsub.f32 %v4821_v53, %v2558_v22 }
 0x442   : > { %v2563_v60 = vpop.permute.xlu1 %2562  ;;  %2617 = vadd.xlane.f32.xlu1 %v3815_v5  ;;  %v2648_v57 = vpack.c.bf16 %v3815_v5, %v3813_v63  ;;  %v2606_v5 = vld [vmem:[#allocation5 + $0x38] sm:$0xff] }
 0x443   : > { %v3817_v1 = vpop.eup %3816  ;;  %v2591_v52 = vmul.f32 1.442695, %v2579_v12  ;;  %v2580_v61 = vsub.f32 %v4823_v28, %v2563_v60 }
 0x444   : > { %2619 = vadd.xlane.f32.xlu0 %v3817_v1  ;;  %3426 = vmatprep.mubr.bf16.mxu1 %v2648_v57  ;;  %v2568_v13 = vpop.permute.xlu0 %2567 }
 0x445   : > { %3820 = vpow2.f32 %v2591_v52  ;;  %v2593_v30 = vmul.f32 1.442695, %v2580_v61  ;;  %v2581_v19 = vsub.f32 %v4826_v49, %v2568_v13 }
 0x446   : > { %v2573_v6 = vpop.permute.xlu1 %2572 }
 0x447   : > { %v3819_v41 = vpop.eup %3818  ;;  %3822 = vpow2.f32 %v2593_v30  ;;  %v2595_v4 = vmul.f32 1.442695, %v2581_v19  ;;  %v2582_v53 = vsub.f32 %v4829_v62, %v2573_v6  ;;  %v2519_v62 = vmul.f32 1.442695, %v2511_v0 }
 0x448   : > { %2615 = vadd.xlane.f32.xlu0 %v3813_v63  ;;  %v2649_v8 = vpack.c.bf16 %v3819_v41, %v3817_v1  ;;  %v2533_v0 = vmul.f32 1.442695, %v2518_v29  ;;  %v2602_v29 = vld [vmem:[#allocation5 + $0x18] sm:$0xff] }
 0x449   : > { %3824 = vpow2.f32 %v2595_v4  ;;  %v2597_v55 = vmul.f32 1.442695, %v2582_v53 }
 0x44a   : > { %3427 = vmatmul.mubr.bf16.vlgmr.msra.gmra.mrb[40].mxu1 %v2649_v8 }
 0x44b   : > { %3826 = vpow2.f32 %v2597_v55 }
 0x44c   : > { %2621 = vadd.xlane.f32.xlu0 %v3819_v41  ;;  %3828 = vpow2.f32 %v2519_v62 }
 0x44d   : > { %3830 = vpow2.f32 %v2523_v15 }
 0x44e   : > { %3832 = vpow2.f32 %v2521_v3 }
 0x44f   : > { %v3821_v28 = vpop.eup %3820  ;;  %3834 = vpow2.f32 %v2525_v25 }
 0x450   : > { %2623 = vadd.xlane.f32.xlu1 %v3821_v28  ;;  %3836 = vpow2.f32 %v2527_v51 }
 0x451   : > { %v3823_v42 = vpop.eup %3822  ;;  %3838 = vpow2.f32 %v2529_v33 }
 0x452   : > { %2625 = vadd.xlane.f32.xlu0 %v3823_v42  ;;  %v2650_v43 = vpack.c.bf16 %v3823_v42, %v3821_v28  ;;  %3840 = vpow2.f32 %v2531_v47 }
 0x453   : > { %v3825_v40 = vpop.eup %3824  ;;  %3842 = vpow2.f32 %v2533_v0 }
 0x454   : > { %3430 = vmatprep.mubr.bf16.mxu1 %v2650_v43  ;;  %2627 = vadd.xlane.f32.xlu1 %v3825_v40 }
 0x455   : > { %v3827_v49 = vpop.eup %3826 }
 0x456   : > { %2629 = vadd.xlane.f32.xlu0 %v3827_v49  ;;  %v2651_v17 = vpack.c.bf16 %v3827_v49, %v3825_v40  ;;  %v3829_v48 = vpop.eup %3828 }
 0x457   : > { %v3831_v16 = vpop.eup %3830  ;;  %v2607_v26 = vmul.f32 %v3829_v48, %v2599_v56 }
 0x458   : > { %3431 = vmatmul.mubr.bf16.gmra.mrb[44].mxu1 %v2651_v17  ;;  %v3833_v23 = vpop.eup %3832  ;;  %v2609_v39 = vmul.f32 %v3831_v16, %v2601_v11 }
 0x459   : > { %v3835_v32 = vpop.eup %3834  ;;  %v2608_v9 = vmul.f32 %v3833_v23, %v2600_v37 }
 0x45a   : > { %v3837_v7 = vpop.eup %3836  ;;  %v2610_v34 = vmul.f32 %v3835_v32, %v2602_v29 }
 0x45b   : > { %v3839_v14 = vpop.eup %3838  ;;  %v2611_v45 = vmul.f32 %v3837_v7, %v2603_v36 }
 0x45c   : > { %v3841_v2 = vpop.eup %3840  ;;  %v2612_v59 = vmul.f32 %v3839_v14, %v2604_v46 }
 0x45d   : > { %v3843_v58 = vpop.eup %3842  ;;  %v2613_v60 = vmul.f32 %v3841_v2, %v2605_v10 }
 0x45e   : > { %v2614_v52 = vmul.f32 %v3843_v58, %v2606_v5 }
 0x465   : > { %2727 = vperm.xlu1 %3595, %v3829_v48  }
 0x469   : > { %2737 = vperm.xlu1 %3595, %v3831_v16  }
 0x46c   : > { %2732 = vperm.xlu0 %3594, %v3833_v23  }
 0x46d   : > { %2742 = vperm.xlu1 %3595, %v3835_v32  }
 0x470   : > { %2747 = vperm.xlu0 %3594, %v3837_v7  }
 0x471   : > { %2752 = vperm.xlu1 %3595, %v3839_v14  }
 0x474   : > { %2757 = vperm.xlu0 %3594, %v3841_v2  }
 0x475   : > { %2762 = vperm.xlu1 %3595, %v3843_v58  }
 0x4cf   : > { %v2618_v54 = vpop.xlane.xlu1 %2617 }
 0x4d0   : > { %v2632_v38 = vadd.f32 %v2618_v54, %v2608_v9 }
 0x4d1   : > { %v2620_v18 = vpop.xlane.xlu0 %2619 }
 0x4d2   : > { %2641 = vst.msk [vmem:[#allocation5 + $0x8] sm:$0xff] %vm2329_vm4, %v2632_v38  ;;  %v2633_v21 = vadd.f32 %v2620_v18, %v2609_v39 }
 0x4d4   : > { %2642 = vst.msk [vmem:[#allocation5 + $0x10] sm:$0xff] %vm2329_vm4, %v2633_v21 }
 0x4d5   : > { %v2616_v27 = vpop.xlane.xlu0 %2615 }
 0x4d6   : > { %v2631_v31 = vadd.f32 %v2616_v27, %v2607_v26 }
 0x4d8   : > { %2640 = vst.msk [vmem:[#allocation5] sm:$0xff] %vm2329_vm4, %v2631_v31 }
 0x4d9   : > { %v2622_v35 = vpop.xlane.xlu0 %2621  ;;  %v2809_v30 = vld [vmem:[#allocation5 + $0x8] sm:$0xff] }
 0x4da   : > { %v2634_v24 = vadd.f32 %v2622_v35, %v2610_v34 }
 0x4db   : > { %v2810_v44 = vld [vmem:[#allocation5 + $0x10] sm:$0xff] }
 0x4dc   : > { %3844 = vrcp.f32 %v2810_v44  ;;  %2643 = vst.msk [vmem:[#allocation5 + $0x18] sm:$0xff] %vm2329_vm4, %v2634_v24 }
 0x4dd   : > { %v2624_v50 = vpop.xlane.xlu1 %2623 }
 0x4de   : > { %v2635_v20 = vadd.f32 %v2624_v50, %v2611_v45 }
 0x4df   : > { %v2808_v63 = vld [vmem:[#allocation5] sm:$0xff]  ;;  %v2626_v22 = vpop.xlane.xlu0 %2625 }
 0x4e0   : > { %3846 = vrcp.f32 %v2808_v63  ;;  %2644 = vst.msk [vmem:[#allocation5 + $0x20] sm:$0xff] %vm2329_vm4, %v2635_v20  ;;  %v2636_v12 = vadd.f32 %v2626_v22, %v2612_v59 }
 0x4e1   : > { %v2628_v57 = vpop.xlane.xlu1 %2627 }
 0x4e2   : > { %2645 = vst.msk [vmem:[#allocation5 + $0x28] sm:$0xff] %vm2329_vm4, %v2636_v12  ;;  %v2637_v1 = vadd.f32 %v2628_v57, %v2613_v60 }
 0x4e3   : > { %v2811_v61 = vld [vmem:[#allocation5 + $0x18] sm:$0xff]  ;;  %v2630_v13 = vpop.xlane.xlu0 %2629 }
 0x4e4   : > { %3848 = vrcp.f32 %v2811_v61  ;;  %2646 = vst.msk [vmem:[#allocation5 + $0x30] sm:$0xff] %vm2329_vm4, %v2637_v1  ;;  %v2638_v19 = vadd.f32 %v2630_v13, %v2614_v52 }
 0x4e5   : > { %3850 = vrcp.f32 %v2809_v30  ;;  %v2728_v0 = vpop.permute.xlu1 %2727 }
 0x4e6   : > { %v3845_v6 = vpop.eup %3844  ;;  %2647 = vst.msk [vmem:[#allocation5 + $0x38] sm:$0xff] %vm2329_vm4, %v2638_v19  ;;  %v2765_v9 = vmul.f32 0.0, %v2728_v0 }
 0x4e7   : > { %v2812_v41 = vld [vmem:[#allocation5 + $0x20] sm:$0xff]  ;;  %2836 = vperm.xlu0 %3594, %v3845_v6  }
 0x4e8   : > { %3852 = vrcp.f32 %v2812_v41 }
 0x4e9   : > { %v2813_v4 = vld [vmem:[#allocation5 + $0x28] sm:$0xff]  ;;  %v2738_v23 = vpop.permute.xlu1 %2737 }
 0x4ea   : > { %v3847_v53 = vpop.eup %3846  ;;  %3854 = vrcp.f32 %v2813_v4  ;;  %v2767_v2 = vmul.f32 0.0, %v2738_v23 }
 0x4eb   : > { %v2814_v8 = vld [vmem:[#allocation5 + $0x30] sm:$0xff]  ;;  %2826 = vperm.xlu0 %3594, %v3847_v53   ;;  %v2733_v16 = vpop.permute.xlu0 %2732 }
 0x4ec   : > { %3856 = vrcp.f32 %v2814_v8  ;;  %v2766_v29 = vmul.f32 0.0, %v2733_v16 }
 0x4ed   : > { %v2815_v55 = vld [vmem:[#allocation5 + $0x38] sm:$0xff]  ;;  %v2743_v7 = vpop.permute.xlu1 %2742 }
 0x4ee   : > { %v3849_v28 = vpop.eup %3848  ;;  %3858 = vrcp.f32 %v2815_v55  ;;  %v2768_v56 = vmul.f32 0.0, %v2743_v7 }
 0x4ef   : > { %2841 = vperm.xlu1 %3595, %v3849_v28   ;;  %v3851_v42 = vpop.eup %3850  ;;  %v2748_v32 = vpop.permute.xlu0 %2747 }
 0x4f0   : > { %v2769_v31 = vmul.f32 0.0, %v2748_v32 }
 0x4f1   : > { %v2753_v58 = vpop.permute.xlu1 %2752 }
 0x4f2   : > { %v3853_v43 = vpop.eup %3852  ;;  %v2770_v46 = vmul.f32 0.0, %v2753_v58 }
 0x4f3   : > { %2846 = vperm.xlu0 %3594, %v3853_v43   ;;  %2831 = vperm.xlu1 %3595, %v3851_v42   ;;  %v2758_v14 = vpop.permute.xlu0 %2757 }
 0x4f4   : > { %v3855_v40 = vpop.eup %3854  ;;  %v2771_v45 = vmul.f32 0.0, %v2758_v14 }
 0x4f5   : > { %v2763_v39 = vpop.permute.xlu1 %2762 }
 0x4f6   : > { %v3857_v49 = vpop.eup %3856  ;;  %v2772_v5 = vmul.f32 0.0, %v2763_v39 }
 0x4f7   : > { %2856 = vperm.xlu0 %3594, %v3857_v49   ;;  %2851 = vperm.xlu1 %3595, %v3855_v40  }
 0x4f8   : > { %v3859_v62 = vpop.eup %3858 }
 0x4fb   : > { %2861 = vperm.xlu1 %3595, %v3859_v62  }
 0x51d   : > { %v3428_v17 = vpop.f32.mrb[40].mxu1 }
 0x51e   : > { %v2686_v15 = vpop.f32.mrb[41].mxu1  ;;  %v2775_v37 = vadd.f32 %v3428_v17, %v2767_v2 }
 0x51f   : > { %v3429_v3 = vpop.f32.mrb[42].mxu1  ;;  %v2773_v38 = vadd.f32 %v2765_v9, %v2686_v15 }
 0x520   : > { %v2689_v25 = vpop.f32.mrb[43].mxu1  ;;  %v2776_v26 = vadd.f32 %v3429_v3, %v2768_v56 }
 0x521   : > { %v2774_v35 = vadd.f32 %v2766_v29, %v2689_v25 }
 0x52b   : > { %v3432_v51 = vpop.f32.mrb[44].mxu1 }
 0x52c   : > { %v2702_v33 = vpop.f32.mrb[45].mxu1  ;;  %v2779_v20 = vadd.f32 %v3432_v51, %v2771_v45 }
 0x52d   : > { %v3433_v48 = vpop.f32.mrb[46].mxu1  ;;  %v2777_v36 = vadd.f32 %v2769_v31, %v2702_v33 }
 0x52e   : > { %v2705_v47 = vpop.f32.mrb[47].mxu1  ;;  %v2780_v57 = vadd.f32 %v3433_v48, %v2772_v5 }
 0x52f   : > { %v2778_v59 = vadd.f32 %v2770_v46, %v2705_v47 }
 0x566   : > { %v2837_v11 = vpop.permute.xlu0 %2836 }
 0x567   : > { %v2866_v54 = vmul.f32 %v2837_v11, %v2775_v37 }
 0x569   : > { %2874 = vst [vmem:[%s4770_s18 + $0x20] sm:$0xff] %v2866_v54 }
 0x56a   : > { %v2827_v18 = vpop.permute.xlu0 %2826 }
 0x56b   : > { %v2864_v21 = vmul.f32 %v2827_v18, %v2773_v38 }
 0x56d   : > { %2872 = vst [vmem:[%s4770_s18] sm:$0xff] %v2864_v21 }
 0x56e   : > { %v2842_v27 = vpop.permute.xlu1 %2841 }
 0x56f   : > { %v2867_v34 = vmul.f32 %v2842_v27, %v2776_v26 }
 0x571   : > { %2875 = vst [vmem:[%s4770_s18 + $0x30] sm:$0xff] %v2867_v34 }
 0x572   : > { %v2832_v24 = vpop.permute.xlu1 %2831  ;;  %v2847_v44 = vpop.permute.xlu0 %2846 }
 0x573   : > { %v2865_v50 = vmul.f32 %v2832_v24, %v2774_v35  ;;  %v2868_v10 = vmul.f32 %v2847_v44, %v2777_v36 }
 0x575   : > { %2873 = vst [vmem:[%s4770_s18 + $0x10] sm:$0xff] %v2865_v50  ;;  %2876 = vst [vmem:[%s4770_s18 + $0x40] sm:$0xff] %v2868_v10 }
 0x576   : > { %v2852_v63 = vpop.permute.xlu1 %2851  ;;  %v2857_v22 = vpop.permute.xlu0 %2856 }
 0x577   : > { %v2869_v12 = vmul.f32 %v2852_v63, %v2778_v59  ;;  %v2870_v60 = vmul.f32 %v2857_v22, %v2779_v20 }
 0x579   : > { %2877 = vst [vmem:[%s4770_s18 + $0x50] sm:$0xff] %v2869_v12  ;;  %2878 = vst [vmem:[%s4770_s18 + $0x60] sm:$0xff] %v2870_v60 }
 0x57a   : > { %v2862_v1 = vpop.permute.xlu1 %2861 }
 0x57b   : > { %v2871_v52 = vmul.f32 %v2862_v1, %v2780_v57 }
 0x57d   : > { %2879 = vst [vmem:[%s4770_s18 + $0x70] sm:$0xff] %v2871_v52 }
 0x57e   : > { %3935 = shalt.err (!%p3932_p9)
}
 0x57f   : > { %s3936_s18 = scalar_lea.hbm %s4996_s11, 2048  ;;  %s3940_s29 = scalar_lea.hbm %s5054_s6, 4096 }
 0x580   : > { %p3937_p1 = scmp.ne.s32.totalorder %s4996_s11, %s3936_s18  ;;  %p3941_p7 = scmp.lt.u32.totalorder %s4996_s11, %s5054_s6 }
 0x581   : > { %p3942_p13 = scmp.lt.u32.totalorder %s3940_s29, %s3936_s18  ;;  %p3944_p6 = scmp.lt.u32.totalorder %s3936_s18, %s4996_s11 }
 0x582   : > { %p3938_p2 = pnand %p3937_p1, %p4154_p10 }
 0x583   : > { %p3943_p4 = por %p3942_p13, %p3941_p7 }
 0x584   : > { %p3939_p3 = pneg %p3938_p2 }
 0x585   : > { %p3945_p8 = por %p3944_p6, %p3943_p4 }
 0x587   : > { %p3946_p12 = pnand %p3945_p8, %p3939_p3 }
 0x589   : > { %3949 = shalt.err (!%p3946_p12)
}
 0x58a   : > { %s4018_s17 = smov 256   ;;  %s4019_s9 = smov 16  }
 0x58b   : > { %3520 = dma.vmem_to_hbm [thread:$0]  (%p4154_p10), %s4998_s27, 2048, %s4996_s11, %s2881_s19, %s4018_s17, %s4018_s17, %s4019_s9  }
 0x58c PF: > { %s2909_s24 = sand.u32 1, %s3988_s21   ;;  %p5076_p11 = scmp.ne.s32.totalorder %s5064_s8, 0 }
 0x58d   : > { %p5077_p0 = scmp.ge.s32.totalorder %s4008_s26, 2  ;;  %s2910_s28 = scalar_lea.sflag [#allocation9], %s2909_s24 }
 0x58f   : > { %p3531_p5 = pnand %p5077_p0, %p5076_p11 }
 0x591   : > { %3983 = dma.done.wait (!%p3531_p5), %s2910_s28, 2048  }
 0x592   : > { %3985 = vsyncadd (!%p3531_p5), %s2910_s28, 4294965248  ;;  %s23_s26 = sadd.s32 1, %s4008_s26   ;;  %s5078_s21 = smov %s3992_s22 }
 0x593   : > { %p20_p9 = scmp.ge.s32.totalorder %s23_s26, 4   ;;  %s5079_s22 = smov %s3996_s23 }
 0x594   : > { %s5080_s23 = smov %s4163_s20  ;;  %s5081_s24 = smov %s4004_s25 }
 0x595   : > { %s5082_s25 = smov %s5084_s13  ;;  %22 = sbr.rel (!%p20_p9) target bundleno = 7 (0x7), region = 115 }
 0x59c   :  { %2915 = vsyncpa [#allocation8], 1 }
 0x59d   :  { %2917 = vsyncpa [#allocation8 + $0x1], 1 }
 0x59e   :  { %2918 = vsyncpa [#allocation11], 1 }
 0x59f   :  { %2919 = vsyncpa [#allocation9], 1 }
 0x5a0   :  { %2921 = vsyncpa [#allocation9 + $0x1], 1 }

</bundles_post_ra>
